<compile_context>
chip_gen: v6e
topology: v6e:2x2x1
jax: 0.10.0
libtpu: 0.0.40
codegen_flags: <defaults>
</compile_context>

<pallas_src>
import numpy as np
import jax
import jax.numpy as jnp
from jax.experimental import pallas as pl
from jax.experimental.pallas import tpu as pltpu


# ----------------------------------------------------------------------------
# Fused kernel
# ----------------------------------------------------------------------------
def _cnn32_kernel(s_ref, a1_ref, b1_ref, a2_ref, b2_ref,
                  w1_ref, c1_ref, w2_ref, c2_ref, w3_ref, c3_ref, o_ref):
    """Whole CNN32 forward for one batch tile.

    s_ref : (6, 8, bt, 128) bf16   S[j, m, b, :] = conv1 H-padded input row 4m+j
                                   of batch b, lanes = w*3+ci (zero-padded to 128)
    a1_ref: (6, 128, 256)  bf16    conv1 band weights, index = dh*2 + w_parity
    b1_ref: (1, 256)       f32     conv1 bias (BN folded), tiled over wo1
    a2_ref: (6, 256, 256)  bf16    conv2 band weights
    b2_ref: (1, 256)       f32     conv2 bias, tiled over wo2
    w1_ref: (8, 256, 32)   bf16    fc1 weight split into 8 h2-blocks (h,w,c order)
    c1/c2/c3_ref                  fc biases; w2_ref (32,16) f32; w3_ref (16,6) f32
    o_ref : (bt, 6)        f32     logits
    """
    bt = s_ref.shape[2]
    M = 8 * bt
    f32 = jnp.float32

    # LHS row sets for conv1 (rows ordered (m, b)); cheap leading-dim collapse.
    S = [s_ref[j].reshape(M, 128) for j in range(6)]
    A1 = [a1_ref[k] for k in range(6)]
    A2 = [a2_ref[k] for k in range(6)]
    b1 = b1_ref[...]
    b2 = b2_ref[...]

    # ---- conv1 + bn1 + relu + 2x2 pool ------------------------------------
    def conv1_quad(i0, i1, i2, p):
        y = jnp.dot(S[i0], A1[p], preferred_element_type=f32)
        y = y + jnp.dot(S[i1], A1[2 + p], preferred_element_type=f32)
        y = y + jnp.dot(S[i2], A1[4 + p], preferred_element_type=f32)
        return y

    pe = jnp.maximum(jnp.maximum(conv1_quad(0, 1, 2, 0), conv1_quad(0, 1, 2, 1)),
                     jnp.maximum(conv1_quad(1, 2, 3, 0), conv1_quad(1, 2, 3, 1)))
    po = jnp.maximum(jnp.maximum(conv1_quad(2, 3, 4, 0), conv1_quad(2, 3, 4, 1)),
                     jnp.maximum(conv1_quad(3, 4, 5, 0), conv1_quad(3, 4, 5, 1)))
    # bias + ReLU deferred until after the pool max (bias same in all quadrants)
    p1_even = jnp.maximum(pe + b1, 0.0)          # (M, 256) rows = (even k1, b)
    p1_odd = jnp.maximum(po + b1, 0.0)           # (M, 256) rows = (odd  k1, b)

    # ---- conv2 + bn2 + relu + 2x2 pool ------------------------------------
    # conv2-padded row 2*k2 + j  (j = 0..3) per pooled output row k2:
    #   r0 = p1_odd shifted down one pool-row (zero top), r1 = p1_even,
    #   r2 = p1_odd, r3 = p1_even shifted up one pool-row (zero bottom).
    zrow = jnp.zeros((bt, 256), f32)
    r0 = jnp.concatenate([zrow, p1_odd[:M - bt]], axis=0).astype(jnp.bfloat16)
    r1 = p1_even.astype(jnp.bfloat16)
    r2 = p1_odd.astype(jnp.bfloat16)
    r3 = jnp.concatenate([p1_even[bt:], zrow], axis=0).astype(jnp.bfloat16)

    def conv2_quad(x0, x1, x2, p):
        y = jnp.dot(x0, A2[p], preferred_element_type=f32)
        y = y + jnp.dot(x1, A2[2 + p], preferred_element_type=f32)
        y = y + jnp.dot(x2, A2[4 + p], preferred_element_type=f32)
        return y

    q = jnp.maximum(jnp.maximum(conv2_quad(r0, r1, r2, 0), conv2_quad(r0, r1, r2, 1)),
                    jnp.maximum(conv2_quad(r1, r2, r3, 0), conv2_quad(r1, r2, r3, 1)))
    p2 = jnp.maximum(q + b2, 0.0).astype(jnp.bfloat16)   # (M, 256) rows = (k2, b)

    # ---- fc1 -> relu -> fc2 -> relu -> fc3 ---------------------------------
    # fc1 as 8 static block matmuls over the h2 pool-rows (no flatten relayout).
    h = jnp.dot(p2[0:bt], w1_ref[0], preferred_element_type=f32)
    for k2 in range(1, 8):
        h = h + jnp.dot(p2[k2 * bt:(k2 + 1) * bt], w1_ref[k2],
                        preferred_element_type=f32)
    h = jnp.maximum(h + c1_ref[...], 0.0)                                  # (bt, 32)
    h = jnp.maximum(jnp.dot(h, w2_ref[...], preferred_element_type=f32)
                    + c2_ref[...], 0.0)                                    # (bt, 16)
    o_ref[...] = jnp.dot(h, w3_ref[...], preferred_element_type=f32) + c3_ref[...]


# ----------------------------------------------------------------------------
# Wrapper
# ----------------------------------------------------------------------------
def _const_spec(shape):
    n = len(shape)
    return pl.BlockSpec(shape, lambda i, n=n: (0,) * n)


def _pick_batch_tile(B):
    # M = 8*bt conv rows per tile; keep blocks (8,128)-aligned and >=2 grid
    # steps (v7x megacore) once the batch is large enough.
    if B >= 64:
        return 32          # M = 256
    if B >= 16:
        return 8           # M = 128, grid >= 2
    return B               # tiny batch: one grid step, block == full array


def cnn32_forward(params, x_nchw):
    assert x_nchw.shape[1:] == (3, 32, 32), "CNN32 requires 3x32x32 inputs"
    B = x_nchw.shape[0]

    # Pack conv1's LHS once (tiny, 3-channel input): NHWC rows, lane-padded to
    # 128, H-padded, then the six row-sets S[j, m, b, :] = padded row 4m+j.
    x = jnp.transpose(x_nchw, (0, 2, 3, 1)).astype(jnp.float32)       # (B,32,32,3)
    xr = x.reshape(B, 32, 96)
    xr = jnp.pad(xr, ((0, 0), (1, 1), (0, 32)))                       # (B,34,128)
    S = jnp.stack([xr[:, j:j + 29:4, :] for j in range(6)], axis=0)   # (6,B,8,128)
    S = jnp.transpose(S, (0, 2, 1, 3)).astype(jnp.bfloat16)           # (6,8,B,128)

    bt = _pick_batch_tile(B)
    Bp = ((B + bt - 1) // bt) * bt
    if Bp != B:
        S = jnp.pad(S, ((0, 0), (0, 0), (0, Bp - B), (0, 0)))

    weights = (params["conv1_w"], params["conv1_b"],
               params["conv2_w"], params["conv2_b"],
               params["fc1_w"], params["fc1_b"],
               params["fc2_w"], params["fc2_b"],
               params["fc3_w"], params["fc3_b"])

    # Actual MXU work (banded matmuls) + DMA bytes.
    per_b_flops = (2 * 8 * (24 * 128 * 256 + 12 * 256 * 256)
                   + 2 * (2048 * 32 + 32 * 16 + 16 * 6))
    flops = int(Bp * per_b_flops)
    w_bytes = sum(int(np.prod(w.shape)) * w.dtype.itemsize for w in weights)
    bytes_accessed = int(S.size * S.dtype.itemsize + w_bytes + Bp * 6 * 4)

    out = pl.pallas_call(
        _cnn32_kernel,
        grid=(Bp // bt,),
        in_specs=[pl.BlockSpec((6, 8, bt, 128), lambda i: (0, 0, i, 0))]
                 + [_const_spec(w.shape) for w in weights],
        out_specs=pl.BlockSpec((bt, 6), lambda i: (i, 0)),
        out_shape=jax.ShapeDtypeStruct((Bp, 6), jnp.float32),
        compiler_params=pltpu.CompilerParams(dimension_semantics=("parallel",)),
        cost_estimate=pl.CostEstimate(flops=flops, transcendentals=0,
                                      bytes_accessed=bytes_accessed),
    )(S, *weights)
    return out[:B]


# ----------------------------------------------------------------------------
# Parameter construction (BN folding + banded conv weights + fc1 permutation)
# ----------------------------------------------------------------------------
def _band_conv_weights(w_oihw, bias, bn_scale, *, W, Lpad):
    """Banded matmul weights for a 3x3/pad=1 conv with folded BN.

    A[dh*2 + p] : (Lpad, (W//2)*Cout) maps an UNPADDED input row
    (lane = w_in*Cin + ci, zero-extended to Lpad lanes) to conv outputs at
    columns 2*wo + p; the W zero-padding is folded in by omitting OOB taps.
    """
    w = np.asarray(w_oihw, np.float32) * bn_scale[:, None, None, None]
    b = np.asarray(bias, np.float32) * bn_scale
    Cout, Cin, _, _ = w.shape
    Wo = W // 2
    N = Wo * Cout
    A = np.zeros((6, Lpad, N), np.float32)
    for dh in range(3):
        for p in range(2):
            for dw in range(3):
                blk = w[:, :, dh, dw].T                      # (Cin, Cout)
                for wo in range(Wo):
                    w_in = 2 * wo + p + dw - 1
                    if 0 <= w_in < W:
                        A[dh * 2 + p, w_in * Cin:(w_in + 1) * Cin,
                          wo * Cout:(wo + 1) * Cout] = blk
    b_tiled = np.tile(b, Wo).reshape(1, N)
    return A, b_tiled


def _kaiming_uniform(key, shape, fan_in):
    bound = float(np.sqrt(6.0 / fan_in))
    return jax.random.uniform(key, shape, jnp.float32, -bound, bound)


def _bias_uniform(key, shape, fan_in):
    bound = float(1.0 / np.sqrt(fan_in))
    return jax.random.uniform(key, shape, jnp.float32, -bound, bound)


def init_params(key):
    ks = jax.random.split(key, 10)

    w1 = np.asarray(_kaiming_uniform(ks[0], (16, 3, 3, 3), fan_in=3 * 9))
    b1 = np.asarray(_bias_uniform(ks[1], (16,), fan_in=3 * 9))
    w2 = np.asarray(_kaiming_uniform(ks[2], (32, 16, 3, 3), fan_in=16 * 9))
    b2 = np.asarray(_bias_uniform(ks[3], (32,), fan_in=16 * 9))

    # BatchNorm in eval mode with default stats (gamma=1, beta=0, mean=0, var=1):
    # y = x / sqrt(1 + eps), folded into the conv weights and bias.
    s1 = np.full((16,), 1.0 / np.sqrt(1.0 + 1e-5), np.float32)
    s2 = np.full((32,), 1.0 / np.sqrt(1.0 + 1e-5), np.float32)

    A1, bb1 = _band_conv_weights(w1, b1, s1, W=32, Lpad=128)
    A2, bb2 = _band_conv_weights(w2, b2, s2, W=16, Lpad=256)

    wfc1 = np.asarray(_kaiming_uniform(ks[4], (32, 2048), fan_in=2048))
    bfc1 = np.asarray(_bias_uniform(ks[5], (32,), fan_in=2048))
    wfc2 = np.asarray(_kaiming_uniform(ks[6], (16, 32), fan_in=32))
    bfc2 = np.asarray(_bias_uniform(ks[7], (16,), fan_in=32))
    wfc3 = np.asarray(_kaiming_uniform(ks[8], (6, 16), fan_in=16))
    bfc3 = np.asarray(_bias_uniform(ks[9], (6,), fan_in=16))

    # fc1: torch flattens (c2,h2,w2); our kernel consumes (h2,w2,c2) with h2
    # split into 8 VMEM-resident (256,32) blocks -> permute at init.
    w1p = (wfc1.T.reshape(32, 8, 8, 32)          # (c2,h2,w2,n)
           .transpose(1, 2, 0, 3)                # (h2,w2,c2,n)
           .reshape(8, 256, 32))

    return {
        "conv1_w": jnp.asarray(A1, jnp.bfloat16),
        "conv1_b": jnp.asarray(bb1, jnp.float32),
        "conv2_w": jnp.asarray(A2, jnp.bfloat16),
        "conv2_b": jnp.asarray(bb2, jnp.float32),
        "fc1_w": jnp.asarray(w1p, jnp.bfloat16),
        "fc1_b": jnp.asarray(bfc1.reshape(1, 32), jnp.float32),
        "fc2_w": jnp.asarray(wfc2.T, jnp.float32),             # (32, 16)
        "fc2_b": jnp.asarray(bfc2.reshape(1, 16), jnp.float32),
        "fc3_w": jnp.asarray(wfc3.T, jnp.float32),             # (16, 6)
        "fc3_b": jnp.asarray(bfc3.reshape(1, 6), jnp.float32),
    }


# ----------------------------------------------------------------------------
if __name__ == "__main__":
    key = jax.random.PRNGKey(0)
    pkey, xkey = jax.random.split(key)
    params = init_params(pkey)

    # Architecture fixes the spatial size (fc1 = Linear(32*8*8, 32)) => 32x32 RGB.
    x = jax.random.normal(xkey, (2, 3, 32, 32), jnp.float32)

    out = jax.jit(cnn32_forward)(params, x)
    out = jax.block_until_ready(out)
    assert out.shape == (2, 6) and out.dtype == jnp.float32
    assert bool(jnp.all(jnp.isfinite(out)))
    print("KERNEL_OK")
</pallas_src>

<mosaic_0001>
module attributes {stable_mosaic.version = 11 : i64} {
  func.func @_cnn32_kernel(%arg0: i32, %arg1: memref<6x8x2x128xbf16, #tpu.memory_space<vmem>>, %arg2: memref<6x128x256xbf16, #tpu.memory_space<vmem>>, %arg3: memref<1x256xf32, #tpu.memory_space<vmem>>, %arg4: memref<6x256x256xbf16, #tpu.memory_space<vmem>>, %arg5: memref<1x256xf32, #tpu.memory_space<vmem>>, %arg6: memref<8x256x32xbf16, #tpu.memory_space<vmem>>, %arg7: memref<1x32xf32, #tpu.memory_space<vmem>>, %arg8: memref<32x16xf32, #tpu.memory_space<vmem>>, %arg9: memref<1x16xf32, #tpu.memory_space<vmem>>, %arg10: memref<16x6xf32, #tpu.memory_space<vmem>>, %arg11: memref<1x6xf32, #tpu.memory_space<vmem>>, %arg12: memref<2x6xf32, #tpu.memory_space<vmem>>) attributes {dimension_semantics = [#tpu.dimension_semantics<parallel>], iteration_bounds = array<i64: 1>, scalar_prefetch = 0 : i64, scratch_operands = 0 : i64, tpu.core_type = #tpu.core_type<tc>, window_params = [{transform_indices = @transform_0, window_bounds = array<i64: 6, 8, 2, 128>}, {pipeline_mode = #tpu.pipeline_mode<synchronous>, transform_indices = @transform_1, window_bounds = array<i64: 6, 128, 256>}, {pipeline_mode = #tpu.pipeline_mode<synchronous>, transform_indices = @transform_2, window_bounds = array<i64: 1, 256>}, {pipeline_mode = #tpu.pipeline_mode<synchronous>, transform_indices = @transform_3, window_bounds = array<i64: 6, 256, 256>}, {pipeline_mode = #tpu.pipeline_mode<synchronous>, transform_indices = @transform_4, window_bounds = array<i64: 1, 256>}, {pipeline_mode = #tpu.pipeline_mode<synchronous>, transform_indices = @transform_5, window_bounds = array<i64: 8, 256, 32>}, {pipeline_mode = #tpu.pipeline_mode<synchronous>, transform_indices = @transform_6, window_bounds = array<i64: 1, 32>}, {pipeline_mode = #tpu.pipeline_mode<synchronous>, transform_indices = @transform_7, window_bounds = array<i64: 32, 16>}, {pipeline_mode = #tpu.pipeline_mode<synchronous>, transform_indices = @transform_8, window_bounds = array<i64: 1, 16>}, {pipeline_mode = #tpu.pipeline_mode<synchronous>, transform_indices = @transform_9, window_bounds = array<i64: 16, 6>}, {pipeline_mode = #tpu.pipeline_mode<synchronous>, transform_indices = @transform_10, window_bounds = array<i64: 1, 6>}, {transform_indices = @transform_11, window_bounds = array<i64: 2, 6>}]} {
    %c0 = arith.constant 0 : index
    %c0_0 = arith.constant 0 : index
    %c0_1 = arith.constant 0 : index
    %c0_2 = arith.constant 0 : index
    %0 = vector.load %arg1[%c0, %c0_0, %c0_1, %c0_2] : memref<6x8x2x128xbf16, #tpu.memory_space<vmem>>, vector<1x8x2x128xbf16>
    %1 = vector.shape_cast %0 : vector<1x8x2x128xbf16> to vector<8x2x128xbf16>
    %2 = vector.shape_cast %1 : vector<8x2x128xbf16> to vector<16x128xbf16>
    %c1 = arith.constant 1 : index
    %c0_3 = arith.constant 0 : index
    %c0_4 = arith.constant 0 : index
    %c0_5 = arith.constant 0 : index
    %3 = vector.load %arg1[%c1, %c0_3, %c0_4, %c0_5] : memref<6x8x2x128xbf16, #tpu.memory_space<vmem>>, vector<1x8x2x128xbf16>
    %4 = vector.shape_cast %3 : vector<1x8x2x128xbf16> to vector<8x2x128xbf16>
    %5 = vector.shape_cast %4 : vector<8x2x128xbf16> to vector<16x128xbf16>
    %c2 = arith.constant 2 : index
    %c0_6 = arith.constant 0 : index
    %c0_7 = arith.constant 0 : index
    %c0_8 = arith.constant 0 : index
    %6 = vector.load %arg1[%c2, %c0_6, %c0_7, %c0_8] : memref<6x8x2x128xbf16, #tpu.memory_space<vmem>>, vector<1x8x2x128xbf16>
    %7 = vector.shape_cast %6 : vector<1x8x2x128xbf16> to vector<8x2x128xbf16>
    %8 = vector.shape_cast %7 : vector<8x2x128xbf16> to vector<16x128xbf16>
    %c3 = arith.constant 3 : index
    %c0_9 = arith.constant 0 : index
    %c0_10 = arith.constant 0 : index
    %c0_11 = arith.constant 0 : index
    %9 = vector.load %arg1[%c3, %c0_9, %c0_10, %c0_11] : memref<6x8x2x128xbf16, #tpu.memory_space<vmem>>, vector<1x8x2x128xbf16>
    %10 = vector.shape_cast %9 : vector<1x8x2x128xbf16> to vector<8x2x128xbf16>
    %11 = vector.shape_cast %10 : vector<8x2x128xbf16> to vector<16x128xbf16>
    %c4 = arith.constant 4 : index
    %c0_12 = arith.constant 0 : index
    %c0_13 = arith.constant 0 : index
    %c0_14 = arith.constant 0 : index
    %12 = vector.load %arg1[%c4, %c0_12, %c0_13, %c0_14] : memref<6x8x2x128xbf16, #tpu.memory_space<vmem>>, vector<1x8x2x128xbf16>
    %13 = vector.shape_cast %12 : vector<1x8x2x128xbf16> to vector<8x2x128xbf16>
    %14 = vector.shape_cast %13 : vector<8x2x128xbf16> to vector<16x128xbf16>
    %c5 = arith.constant 5 : index
    %c0_15 = arith.constant 0 : index
    %c0_16 = arith.constant 0 : index
    %c0_17 = arith.constant 0 : index
    %15 = vector.load %arg1[%c5, %c0_15, %c0_16, %c0_17] : memref<6x8x2x128xbf16, #tpu.memory_space<vmem>>, vector<1x8x2x128xbf16>
    %16 = vector.shape_cast %15 : vector<1x8x2x128xbf16> to vector<8x2x128xbf16>
    %17 = vector.shape_cast %16 : vector<8x2x128xbf16> to vector<16x128xbf16>
    %c0_18 = arith.constant 0 : index
    %c0_19 = arith.constant 0 : index
    %c0_20 = arith.constant 0 : index
    %18 = vector.load %arg2[%c0_18, %c0_19, %c0_20] : memref<6x128x256xbf16, #tpu.memory_space<vmem>>, vector<1x128x256xbf16>
    %19 = vector.shape_cast %18 : vector<1x128x256xbf16> to vector<128x256xbf16>
    %c1_21 = arith.constant 1 : index
    %c0_22 = arith.constant 0 : index
    %c0_23 = arith.constant 0 : index
    %20 = vector.load %arg2[%c1_21, %c0_22, %c0_23] : memref<6x128x256xbf16, #tpu.memory_space<vmem>>, vector<1x128x256xbf16>
    %21 = vector.shape_cast %20 : vector<1x128x256xbf16> to vector<128x256xbf16>
    %c2_24 = arith.constant 2 : index
    %c0_25 = arith.constant 0 : index
    %c0_26 = arith.constant 0 : index
    %22 = vector.load %arg2[%c2_24, %c0_25, %c0_26] : memref<6x128x256xbf16, #tpu.memory_space<vmem>>, vector<1x128x256xbf16>
    %23 = vector.shape_cast %22 : vector<1x128x256xbf16> to vector<128x256xbf16>
    %c3_27 = arith.constant 3 : index
    %c0_28 = arith.constant 0 : index
    %c0_29 = arith.constant 0 : index
    %24 = vector.load %arg2[%c3_27, %c0_28, %c0_29] : memref<6x128x256xbf16, #tpu.memory_space<vmem>>, vector<1x128x256xbf16>
    %25 = vector.shape_cast %24 : vector<1x128x256xbf16> to vector<128x256xbf16>
    %c4_30 = arith.constant 4 : index
    %c0_31 = arith.constant 0 : index
    %c0_32 = arith.constant 0 : index
    %26 = vector.load %arg2[%c4_30, %c0_31, %c0_32] : memref<6x128x256xbf16, #tpu.memory_space<vmem>>, vector<1x128x256xbf16>
    %27 = vector.shape_cast %26 : vector<1x128x256xbf16> to vector<128x256xbf16>
    %c5_33 = arith.constant 5 : index
    %c0_34 = arith.constant 0 : index
    %c0_35 = arith.constant 0 : index
    %28 = vector.load %arg2[%c5_33, %c0_34, %c0_35] : memref<6x128x256xbf16, #tpu.memory_space<vmem>>, vector<1x128x256xbf16>
    %29 = vector.shape_cast %28 : vector<1x128x256xbf16> to vector<128x256xbf16>
    %c0_36 = arith.constant 0 : index
    %c0_37 = arith.constant 0 : index
    %c0_38 = arith.constant 0 : index
    %30 = vector.load %arg4[%c0_36, %c0_37, %c0_38] : memref<6x256x256xbf16, #tpu.memory_space<vmem>>, vector<1x256x256xbf16>
    %31 = vector.shape_cast %30 : vector<1x256x256xbf16> to vector<256x256xbf16>
    %c1_39 = arith.constant 1 : index
    %c0_40 = arith.constant 0 : index
    %c0_41 = arith.constant 0 : index
    %32 = vector.load %arg4[%c1_39, %c0_40, %c0_41] : memref<6x256x256xbf16, #tpu.memory_space<vmem>>, vector<1x256x256xbf16>
    %33 = vector.shape_cast %32 : vector<1x256x256xbf16> to vector<256x256xbf16>
    %c2_42 = arith.constant 2 : index
    %c0_43 = arith.constant 0 : index
    %c0_44 = arith.constant 0 : index
    %34 = vector.load %arg4[%c2_42, %c0_43, %c0_44] : memref<6x256x256xbf16, #tpu.memory_space<vmem>>, vector<1x256x256xbf16>
    %35 = vector.shape_cast %34 : vector<1x256x256xbf16> to vector<256x256xbf16>
    %c3_45 = arith.constant 3 : index
    %c0_46 = arith.constant 0 : index
    %c0_47 = arith.constant 0 : index
    %36 = vector.load %arg4[%c3_45, %c0_46, %c0_47] : memref<6x256x256xbf16, #tpu.memory_space<vmem>>, vector<1x256x256xbf16>
    %37 = vector.shape_cast %36 : vector<1x256x256xbf16> to vector<256x256xbf16>
    %c4_48 = arith.constant 4 : index
    %c0_49 = arith.constant 0 : index
    %c0_50 = arith.constant 0 : index
    %38 = vector.load %arg4[%c4_48, %c0_49, %c0_50] : memref<6x256x256xbf16, #tpu.memory_space<vmem>>, vector<1x256x256xbf16>
    %39 = vector.shape_cast %38 : vector<1x256x256xbf16> to vector<256x256xbf16>
    %c5_51 = arith.constant 5 : index
    %c0_52 = arith.constant 0 : index
    %c0_53 = arith.constant 0 : index
    %40 = vector.load %arg4[%c5_51, %c0_52, %c0_53] : memref<6x256x256xbf16, #tpu.memory_space<vmem>>, vector<1x256x256xbf16>
    %41 = vector.shape_cast %40 : vector<1x256x256xbf16> to vector<256x256xbf16>
    %c0_54 = arith.constant 0 : index
    %c0_55 = arith.constant 0 : index
    %42 = vector.load %arg3[%c0_54, %c0_55] : memref<1x256xf32, #tpu.memory_space<vmem>>, vector<1x256xf32>
    %c0_56 = arith.constant 0 : index
    %c0_57 = arith.constant 0 : index
    %43 = vector.load %arg5[%c0_56, %c0_57] : memref<1x256xf32, #tpu.memory_space<vmem>>, vector<1x256xf32>
    %cst = arith.constant dense<0.000000e+00> : vector<16x256xf32>
    %44 = tpu.matmul %2, %19, %cst {dimension_numbers = #tpu.dot_dimension_numbers<[1], [0], [0], [1], [0, 0, 1, 1], [], []>} : vector<16x128xbf16>, vector<128x256xbf16>, vector<16x256xf32> -> vector<16x256xf32>
    %cst_58 = arith.constant dense<0.000000e+00> : vector<16x256xf32>
    %45 = tpu.matmul %5, %23, %cst_58 {dimension_numbers = #tpu.dot_dimension_numbers<[1], [0], [0], [1], [0, 0, 1, 1], [], []>} : vector<16x128xbf16>, vector<128x256xbf16>, vector<16x256xf32> -> vector<16x256xf32>
    %46 = arith.addf %44, %45 : vector<16x256xf32>
    %cst_59 = arith.constant dense<0.000000e+00> : vector<16x256xf32>
    %47 = tpu.matmul %8, %27, %cst_59 {dimension_numbers = #tpu.dot_dimension_numbers<[1], [0], [0], [1], [0, 0, 1, 1], [], []>} : vector<16x128xbf16>, vector<128x256xbf16>, vector<16x256xf32> -> vector<16x256xf32>
    %48 = arith.addf %46, %47 : vector<16x256xf32>
    %cst_60 = arith.constant dense<0.000000e+00> : vector<16x256xf32>
    %49 = tpu.matmul %2, %21, %cst_60 {dimension_numbers = #tpu.dot_dimension_numbers<[1], [0], [0], [1], [0, 0, 1, 1], [], []>} : vector<16x128xbf16>, vector<128x256xbf16>, vector<16x256xf32> -> vector<16x256xf32>
    %cst_61 = arith.constant dense<0.000000e+00> : vector<16x256xf32>
    %50 = tpu.matmul %5, %25, %cst_61 {dimension_numbers = #tpu.dot_dimension_numbers<[1], [0], [0], [1], [0, 0, 1, 1], [], []>} : vector<16x128xbf16>, vector<128x256xbf16>, vector<16x256xf32> -> vector<16x256xf32>
    %51 = arith.addf %49, %50 : vector<16x256xf32>
    %cst_62 = arith.constant dense<0.000000e+00> : vector<16x256xf32>
    %52 = tpu.matmul %8, %29, %cst_62 {dimension_numbers = #tpu.dot_dimension_numbers<[1], [0], [0], [1], [0, 0, 1, 1], [], []>} : vector<16x128xbf16>, vector<128x256xbf16>, vector<16x256xf32> -> vector<16x256xf32>
    %53 = arith.addf %51, %52 : vector<16x256xf32>
    %54 = arith.maximumf %48, %53 : vector<16x256xf32>
    %cst_63 = arith.constant dense<0.000000e+00> : vector<16x256xf32>
    %55 = tpu.matmul %5, %19, %cst_63 {dimension_numbers = #tpu.dot_dimension_numbers<[1], [0], [0], [1], [0, 0, 1, 1], [], []>} : vector<16x128xbf16>, vector<128x256xbf16>, vector<16x256xf32> -> vector<16x256xf32>
    %cst_64 = arith.constant dense<0.000000e+00> : vector<16x256xf32>
    %56 = tpu.matmul %8, %23, %cst_64 {dimension_numbers = #tpu.dot_dimension_numbers<[1], [0], [0], [1], [0, 0, 1, 1], [], []>} : vector<16x128xbf16>, vector<128x256xbf16>, vector<16x256xf32> -> vector<16x256xf32>
    %57 = arith.addf %55, %56 : vector<16x256xf32>
    %cst_65 = arith.constant dense<0.000000e+00> : vector<16x256xf32>
    %58 = tpu.matmul %11, %27, %cst_65 {dimension_numbers = #tpu.dot_dimension_numbers<[1], [0], [0], [1], [0, 0, 1, 1], [], []>} : vector<16x128xbf16>, vector<128x256xbf16>, vector<16x256xf32> -> vector<16x256xf32>
    %59 = arith.addf %57, %58 : vector<16x256xf32>
    %cst_66 = arith.constant dense<0.000000e+00> : vector<16x256xf32>
    %60 = tpu.matmul %5, %21, %cst_66 {dimension_numbers = #tpu.dot_dimension_numbers<[1], [0], [0], [1], [0, 0, 1, 1], [], []>} : vector<16x128xbf16>, vector<128x256xbf16>, vector<16x256xf32> -> vector<16x256xf32>
    %cst_67 = arith.constant dense<0.000000e+00> : vector<16x256xf32>
    %61 = tpu.matmul %8, %25, %cst_67 {dimension_numbers = #tpu.dot_dimension_numbers<[1], [0], [0], [1], [0, 0, 1, 1], [], []>} : vector<16x128xbf16>, vector<128x256xbf16>, vector<16x256xf32> -> vector<16x256xf32>
    %62 = arith.addf %60, %61 : vector<16x256xf32>
    %cst_68 = arith.constant dense<0.000000e+00> : vector<16x256xf32>
    %63 = tpu.matmul %11, %29, %cst_68 {dimension_numbers = #tpu.dot_dimension_numbers<[1], [0], [0], [1], [0, 0, 1, 1], [], []>} : vector<16x128xbf16>, vector<128x256xbf16>, vector<16x256xf32> -> vector<16x256xf32>
    %64 = arith.addf %62, %63 : vector<16x256xf32>
    %65 = arith.maximumf %59, %64 : vector<16x256xf32>
    %66 = arith.maximumf %54, %65 : vector<16x256xf32>
    %cst_69 = arith.constant dense<0.000000e+00> : vector<16x256xf32>
    %67 = tpu.matmul %8, %19, %cst_69 {dimension_numbers = #tpu.dot_dimension_numbers<[1], [0], [0], [1], [0, 0, 1, 1], [], []>} : vector<16x128xbf16>, vector<128x256xbf16>, vector<16x256xf32> -> vector<16x256xf32>
    %cst_70 = arith.constant dense<0.000000e+00> : vector<16x256xf32>
    %68 = tpu.matmul %11, %23, %cst_70 {dimension_numbers = #tpu.dot_dimension_numbers<[1], [0], [0], [1], [0, 0, 1, 1], [], []>} : vector<16x128xbf16>, vector<128x256xbf16>, vector<16x256xf32> -> vector<16x256xf32>
    %69 = arith.addf %67, %68 : vector<16x256xf32>
    %cst_71 = arith.constant dense<0.000000e+00> : vector<16x256xf32>
    %70 = tpu.matmul %14, %27, %cst_71 {dimension_numbers = #tpu.dot_dimension_numbers<[1], [0], [0], [1], [0, 0, 1, 1], [], []>} : vector<16x128xbf16>, vector<128x256xbf16>, vector<16x256xf32> -> vector<16x256xf32>
    %71 = arith.addf %69, %70 : vector<16x256xf32>
    %cst_72 = arith.constant dense<0.000000e+00> : vector<16x256xf32>
    %72 = tpu.matmul %8, %21, %cst_72 {dimension_numbers = #tpu.dot_dimension_numbers<[1], [0], [0], [1], [0, 0, 1, 1], [], []>} : vector<16x128xbf16>, vector<128x256xbf16>, vector<16x256xf32> -> vector<16x256xf32>
    %cst_73 = arith.constant dense<0.000000e+00> : vector<16x256xf32>
    %73 = tpu.matmul %11, %25, %cst_73 {dimension_numbers = #tpu.dot_dimension_numbers<[1], [0], [0], [1], [0, 0, 1, 1], [], []>} : vector<16x128xbf16>, vector<128x256xbf16>, vector<16x256xf32> -> vector<16x256xf32>
    %74 = arith.addf %72, %73 : vector<16x256xf32>
    %cst_74 = arith.constant dense<0.000000e+00> : vector<16x256xf32>
    %75 = tpu.matmul %14, %29, %cst_74 {dimension_numbers = #tpu.dot_dimension_numbers<[1], [0], [0], [1], [0, 0, 1, 1], [], []>} : vector<16x128xbf16>, vector<128x256xbf16>, vector<16x256xf32> -> vector<16x256xf32>
    %76 = arith.addf %74, %75 : vector<16x256xf32>
    %77 = arith.maximumf %71, %76 : vector<16x256xf32>
    %cst_75 = arith.constant dense<0.000000e+00> : vector<16x256xf32>
    %78 = tpu.matmul %11, %19, %cst_75 {dimension_numbers = #tpu.dot_dimension_numbers<[1], [0], [0], [1], [0, 0, 1, 1], [], []>} : vector<16x128xbf16>, vector<128x256xbf16>, vector<16x256xf32> -> vector<16x256xf32>
    %cst_76 = arith.constant dense<0.000000e+00> : vector<16x256xf32>
    %79 = tpu.matmul %14, %23, %cst_76 {dimension_numbers = #tpu.dot_dimension_numbers<[1], [0], [0], [1], [0, 0, 1, 1], [], []>} : vector<16x128xbf16>, vector<128x256xbf16>, vector<16x256xf32> -> vector<16x256xf32>
    %80 = arith.addf %78, %79 : vector<16x256xf32>
    %cst_77 = arith.constant dense<0.000000e+00> : vector<16x256xf32>
    %81 = tpu.matmul %17, %27, %cst_77 {dimension_numbers = #tpu.dot_dimension_numbers<[1], [0], [0], [1], [0, 0, 1, 1], [], []>} : vector<16x128xbf16>, vector<128x256xbf16>, vector<16x256xf32> -> vector<16x256xf32>
    %82 = arith.addf %80, %81 : vector<16x256xf32>
    %cst_78 = arith.constant dense<0.000000e+00> : vector<16x256xf32>
    %83 = tpu.matmul %11, %21, %cst_78 {dimension_numbers = #tpu.dot_dimension_numbers<[1], [0], [0], [1], [0, 0, 1, 1], [], []>} : vector<16x128xbf16>, vector<128x256xbf16>, vector<16x256xf32> -> vector<16x256xf32>
    %cst_79 = arith.constant dense<0.000000e+00> : vector<16x256xf32>
    %84 = tpu.matmul %14, %25, %cst_79 {dimension_numbers = #tpu.dot_dimension_numbers<[1], [0], [0], [1], [0, 0, 1, 1], [], []>} : vector<16x128xbf16>, vector<128x256xbf16>, vector<16x256xf32> -> vector<16x256xf32>
    %85 = arith.addf %83, %84 : vector<16x256xf32>
    %cst_80 = arith.constant dense<0.000000e+00> : vector<16x256xf32>
    %86 = tpu.matmul %17, %29, %cst_80 {dimension_numbers = #tpu.dot_dimension_numbers<[1], [0], [0], [1], [0, 0, 1, 1], [], []>} : vector<16x128xbf16>, vector<128x256xbf16>, vector<16x256xf32> -> vector<16x256xf32>
    %87 = arith.addf %85, %86 : vector<16x256xf32>
    %88 = arith.maximumf %82, %87 : vector<16x256xf32>
    %89 = arith.maximumf %77, %88 : vector<16x256xf32>
    %90 = vector.broadcast %42 : vector<1x256xf32> to vector<16x256xf32>
    %91 = arith.addf %66, %90 : vector<16x256xf32>
    %cst_81 = arith.constant 0.000000e+00 : f32
    %92 = vector.broadcast %cst_81 : f32 to vector<16x256xf32>
    %93 = arith.maximumf %91, %92 : vector<16x256xf32>
    %94 = vector.broadcast %42 : vector<1x256xf32> to vector<16x256xf32>
    %95 = arith.addf %89, %94 : vector<16x256xf32>
    %cst_82 = arith.constant 0.000000e+00 : f32
    %96 = vector.broadcast %cst_82 : f32 to vector<16x256xf32>
    %97 = arith.maximumf %95, %96 : vector<16x256xf32>
    %cst_83 = arith.constant 0.000000e+00 : f32
    %98 = vector.broadcast %cst_83 : f32 to vector<2x256xf32>
    %99 = vector.extract_strided_slice %97 {offsets = [0, 0], sizes = [14, 256], strides = [1, 1]} : vector<16x256xf32> to vector<14x256xf32>
    %100 = tpu.concatenate %98, %99 in 0 : vector<2x256xf32>, vector<14x256xf32> -> vector<16x256xf32>
    %101 = arith.truncf %100 : vector<16x256xf32> to vector<16x256xbf16>
    %102 = arith.truncf %93 : vector<16x256xf32> to vector<16x256xbf16>
    %103 = arith.truncf %97 : vector<16x256xf32> to vector<16x256xbf16>
    %104 = vector.extract_strided_slice %93 {offsets = [2, 0], sizes = [14, 256], strides = [1, 1]} : vector<16x256xf32> to vector<14x256xf32>
    %105 = tpu.concatenate %104, %98 in 0 : vector<14x256xf32>, vector<2x256xf32> -> vector<16x256xf32>
    %106 = arith.truncf %105 : vector<16x256xf32> to vector<16x256xbf16>
    %cst_84 = arith.constant dense<0.000000e+00> : vector<16x256xf32>
    %107 = tpu.matmul %101, %31, %cst_84 {dimension_numbers = #tpu.dot_dimension_numbers<[1], [0], [0], [1], [0, 0, 1, 1], [], []>} : vector<16x256xbf16>, vector<256x256xbf16>, vector<16x256xf32> -> vector<16x256xf32>
    %cst_85 = arith.constant dense<0.000000e+00> : vector<16x256xf32>
    %108 = tpu.matmul %102, %35, %cst_85 {dimension_numbers = #tpu.dot_dimension_numbers<[1], [0], [0], [1], [0, 0, 1, 1], [], []>} : vector<16x256xbf16>, vector<256x256xbf16>, vector<16x256xf32> -> vector<16x256xf32>
    %109 = arith.addf %107, %108 : vector<16x256xf32>
    %cst_86 = arith.constant dense<0.000000e+00> : vector<16x256xf32>
    %110 = tpu.matmul %103, %39, %cst_86 {dimension_numbers = #tpu.dot_dimension_numbers<[1], [0], [0], [1], [0, 0, 1, 1], [], []>} : vector<16x256xbf16>, vector<256x256xbf16>, vector<16x256xf32> -> vector<16x256xf32>
    %111 = arith.addf %109, %110 : vector<16x256xf32>
    %cst_87 = arith.constant dense<0.000000e+00> : vector<16x256xf32>
    %112 = tpu.matmul %101, %33, %cst_87 {dimension_numbers = #tpu.dot_dimension_numbers<[1], [0], [0], [1], [0, 0, 1, 1], [], []>} : vector<16x256xbf16>, vector<256x256xbf16>, vector<16x256xf32> -> vector<16x256xf32>
    %cst_88 = arith.constant dense<0.000000e+00> : vector<16x256xf32>
    %113 = tpu.matmul %102, %37, %cst_88 {dimension_numbers = #tpu.dot_dimension_numbers<[1], [0], [0], [1], [0, 0, 1, 1], [], []>} : vector<16x256xbf16>, vector<256x256xbf16>, vector<16x256xf32> -> vector<16x256xf32>
    %114 = arith.addf %112, %113 : vector<16x256xf32>
    %cst_89 = arith.constant dense<0.000000e+00> : vector<16x256xf32>
    %115 = tpu.matmul %103, %41, %cst_89 {dimension_numbers = #tpu.dot_dimension_numbers<[1], [0], [0], [1], [0, 0, 1, 1], [], []>} : vector<16x256xbf16>, vector<256x256xbf16>, vector<16x256xf32> -> vector<16x256xf32>
    %116 = arith.addf %114, %115 : vector<16x256xf32>
    %117 = arith.maximumf %111, %116 : vector<16x256xf32>
    %cst_90 = arith.constant dense<0.000000e+00> : vector<16x256xf32>
    %118 = tpu.matmul %102, %31, %cst_90 {dimension_numbers = #tpu.dot_dimension_numbers<[1], [0], [0], [1], [0, 0, 1, 1], [], []>} : vector<16x256xbf16>, vector<256x256xbf16>, vector<16x256xf32> -> vector<16x256xf32>
    %cst_91 = arith.constant dense<0.000000e+00> : vector<16x256xf32>
    %119 = tpu.matmul %103, %35, %cst_91 {dimension_numbers = #tpu.dot_dimension_numbers<[1], [0], [0], [1], [0, 0, 1, 1], [], []>} : vector<16x256xbf16>, vector<256x256xbf16>, vector<16x256xf32> -> vector<16x256xf32>
    %120 = arith.addf %118, %119 : vector<16x256xf32>
    %cst_92 = arith.constant dense<0.000000e+00> : vector<16x256xf32>
    %121 = tpu.matmul %106, %39, %cst_92 {dimension_numbers = #tpu.dot_dimension_numbers<[1], [0], [0], [1], [0, 0, 1, 1], [], []>} : vector<16x256xbf16>, vector<256x256xbf16>, vector<16x256xf32> -> vector<16x256xf32>
    %122 = arith.addf %120, %121 : vector<16x256xf32>
    %cst_93 = arith.constant dense<0.000000e+00> : vector<16x256xf32>
    %123 = tpu.matmul %102, %33, %cst_93 {dimension_numbers = #tpu.dot_dimension_numbers<[1], [0], [0], [1], [0, 0, 1, 1], [], []>} : vector<16x256xbf16>, vector<256x256xbf16>, vector<16x256xf32> -> vector<16x256xf32>
    %cst_94 = arith.constant dense<0.000000e+00> : vector<16x256xf32>
    %124 = tpu.matmul %103, %37, %cst_94 {dimension_numbers = #tpu.dot_dimension_numbers<[1], [0], [0], [1], [0, 0, 1, 1], [], []>} : vector<16x256xbf16>, vector<256x256xbf16>, vector<16x256xf32> -> vector<16x256xf32>
    %125 = arith.addf %123, %124 : vector<16x256xf32>
    %cst_95 = arith.constant dense<0.000000e+00> : vector<16x256xf32>
    %126 = tpu.matmul %106, %41, %cst_95 {dimension_numbers = #tpu.dot_dimension_numbers<[1], [0], [0], [1], [0, 0, 1, 1], [], []>} : vector<16x256xbf16>, vector<256x256xbf16>, vector<16x256xf32> -> vector<16x256xf32>
    %127 = arith.addf %125, %126 : vector<16x256xf32>
    %128 = arith.maximumf %122, %127 : vector<16x256xf32>
    %129 = arith.maximumf %117, %128 : vector<16x256xf32>
    %130 = vector.broadcast %43 : vector<1x256xf32> to vector<16x256xf32>
    %131 = arith.addf %129, %130 : vector<16x256xf32>
    %cst_96 = arith.constant 0.000000e+00 : f32
    %132 = vector.broadcast %cst_96 : f32 to vector<16x256xf32>
    %133 = arith.maximumf %131, %132 : vector<16x256xf32>
    %134 = arith.truncf %133 : vector<16x256xf32> to vector<16x256xbf16>
    %135 = vector.extract_strided_slice %134 {offsets = [0, 0], sizes = [2, 256], strides = [1, 1]} : vector<16x256xbf16> to vector<2x256xbf16>
    %c0_97 = arith.constant 0 : index
    %c0_98 = arith.constant 0 : index
    %c0_99 = arith.constant 0 : index
    %136 = vector.load %arg6[%c0_97, %c0_98, %c0_99] : memref<8x256x32xbf16, #tpu.memory_space<vmem>>, vector<1x256x32xbf16>
    %137 = vector.shape_cast %136 : vector<1x256x32xbf16> to vector<256x32xbf16>
    %cst_100 = arith.constant dense<0.000000e+00> : vector<2x32xf32>
    %138 = tpu.matmul %135, %137, %cst_100 {dimension_numbers = #tpu.dot_dimension_numbers<[1], [0], [0], [1], [0, 0, 1, 1], [], []>} : vector<2x256xbf16>, vector<256x32xbf16>, vector<2x32xf32> -> vector<2x32xf32>
    %139 = vector.extract_strided_slice %134 {offsets = [2, 0], sizes = [2, 256], strides = [1, 1]} : vector<16x256xbf16> to vector<2x256xbf16>
    %c1_101 = arith.constant 1 : index
    %c0_102 = arith.constant 0 : index
    %c0_103 = arith.constant 0 : index
    %140 = vector.load %arg6[%c1_101, %c0_102, %c0_103] : memref<8x256x32xbf16, #tpu.memory_space<vmem>>, vector<1x256x32xbf16>
    %141 = vector.shape_cast %140 : vector<1x256x32xbf16> to vector<256x32xbf16>
    %cst_104 = arith.constant dense<0.000000e+00> : vector<2x32xf32>
    %142 = tpu.matmul %139, %141, %cst_104 {dimension_numbers = #tpu.dot_dimension_numbers<[1], [0], [0], [1], [0, 0, 1, 1], [], []>} : vector<2x256xbf16>, vector<256x32xbf16>, vector<2x32xf32> -> vector<2x32xf32>
    %143 = arith.addf %138, %142 : vector<2x32xf32>
    %144 = vector.extract_strided_slice %134 {offsets = [4, 0], sizes = [2, 256], strides = [1, 1]} : vector<16x256xbf16> to vector<2x256xbf16>
    %c2_105 = arith.constant 2 : index
    %c0_106 = arith.constant 0 : index
    %c0_107 = arith.constant 0 : index
    %145 = vector.load %arg6[%c2_105, %c0_106, %c0_107] : memref<8x256x32xbf16, #tpu.memory_space<vmem>>, vector<1x256x32xbf16>
    %146 = vector.shape_cast %145 : vector<1x256x32xbf16> to vector<256x32xbf16>
    %cst_108 = arith.constant dense<0.000000e+00> : vector<2x32xf32>
    %147 = tpu.matmul %144, %146, %cst_108 {dimension_numbers = #tpu.dot_dimension_numbers<[1], [0], [0], [1], [0, 0, 1, 1], [], []>} : vector<2x256xbf16>, vector<256x32xbf16>, vector<2x32xf32> -> vector<2x32xf32>
    %148 = arith.addf %143, %147 : vector<2x32xf32>
    %149 = vector.extract_strided_slice %134 {offsets = [6, 0], sizes = [2, 256], strides = [1, 1]} : vector<16x256xbf16> to vector<2x256xbf16>
    %c3_109 = arith.constant 3 : index
    %c0_110 = arith.constant 0 : index
    %c0_111 = arith.constant 0 : index
    %150 = vector.load %arg6[%c3_109, %c0_110, %c0_111] : memref<8x256x32xbf16, #tpu.memory_space<vmem>>, vector<1x256x32xbf16>
    %151 = vector.shape_cast %150 : vector<1x256x32xbf16> to vector<256x32xbf16>
    %cst_112 = arith.constant dense<0.000000e+00> : vector<2x32xf32>
    %152 = tpu.matmul %149, %151, %cst_112 {dimension_numbers = #tpu.dot_dimension_numbers<[1], [0], [0], [1], [0, 0, 1, 1], [], []>} : vector<2x256xbf16>, vector<256x32xbf16>, vector<2x32xf32> -> vector<2x32xf32>
    %153 = arith.addf %148, %152 : vector<2x32xf32>
    %154 = vector.extract_strided_slice %134 {offsets = [8, 0], sizes = [2, 256], strides = [1, 1]} : vector<16x256xbf16> to vector<2x256xbf16>
    %c4_113 = arith.constant 4 : index
    %c0_114 = arith.constant 0 : index
    %c0_115 = arith.constant 0 : index
    %155 = vector.load %arg6[%c4_113, %c0_114, %c0_115] : memref<8x256x32xbf16, #tpu.memory_space<vmem>>, vector<1x256x32xbf16>
    %156 = vector.shape_cast %155 : vector<1x256x32xbf16> to vector<256x32xbf16>
    %cst_116 = arith.constant dense<0.000000e+00> : vector<2x32xf32>
    %157 = tpu.matmul %154, %156, %cst_116 {dimension_numbers = #tpu.dot_dimension_numbers<[1], [0], [0], [1], [0, 0, 1, 1], [], []>} : vector<2x256xbf16>, vector<256x32xbf16>, vector<2x32xf32> -> vector<2x32xf32>
    %158 = arith.addf %153, %157 : vector<2x32xf32>
    %159 = vector.extract_strided_slice %134 {offsets = [10, 0], sizes = [2, 256], strides = [1, 1]} : vector<16x256xbf16> to vector<2x256xbf16>
    %c5_117 = arith.constant 5 : index
    %c0_118 = arith.constant 0 : index
    %c0_119 = arith.constant 0 : index
    %160 = vector.load %arg6[%c5_117, %c0_118, %c0_119] : memref<8x256x32xbf16, #tpu.memory_space<vmem>>, vector<1x256x32xbf16>
    %161 = vector.shape_cast %160 : vector<1x256x32xbf16> to vector<256x32xbf16>
    %cst_120 = arith.constant dense<0.000000e+00> : vector<2x32xf32>
    %162 = tpu.matmul %159, %161, %cst_120 {dimension_numbers = #tpu.dot_dimension_numbers<[1], [0], [0], [1], [0, 0, 1, 1], [], []>} : vector<2x256xbf16>, vector<256x32xbf16>, vector<2x32xf32> -> vector<2x32xf32>
    %163 = arith.addf %158, %162 : vector<2x32xf32>
    %164 = vector.extract_strided_slice %134 {offsets = [12, 0], sizes = [2, 256], strides = [1, 1]} : vector<16x256xbf16> to vector<2x256xbf16>
    %c6 = arith.constant 6 : index
    %c0_121 = arith.constant 0 : index
    %c0_122 = arith.constant 0 : index
    %165 = vector.load %arg6[%c6, %c0_121, %c0_122] : memref<8x256x32xbf16, #tpu.memory_space<vmem>>, vector<1x256x32xbf16>
    %166 = vector.shape_cast %165 : vector<1x256x32xbf16> to vector<256x32xbf16>
    %cst_123 = arith.constant dense<0.000000e+00> : vector<2x32xf32>
    %167 = tpu.matmul %164, %166, %cst_123 {dimension_numbers = #tpu.dot_dimension_numbers<[1], [0], [0], [1], [0, 0, 1, 1], [], []>} : vector<2x256xbf16>, vector<256x32xbf16>, vector<2x32xf32> -> vector<2x32xf32>
    %168 = arith.addf %163, %167 : vector<2x32xf32>
    %169 = vector.extract_strided_slice %134 {offsets = [14, 0], sizes = [2, 256], strides = [1, 1]} : vector<16x256xbf16> to vector<2x256xbf16>
    %c7 = arith.constant 7 : index
    %c0_124 = arith.constant 0 : index
    %c0_125 = arith.constant 0 : index
    %170 = vector.load %arg6[%c7, %c0_124, %c0_125] : memref<8x256x32xbf16, #tpu.memory_space<vmem>>, vector<1x256x32xbf16>
    %171 = vector.shape_cast %170 : vector<1x256x32xbf16> to vector<256x32xbf16>
    %cst_126 = arith.constant dense<0.000000e+00> : vector<2x32xf32>
    %172 = tpu.matmul %169, %171, %cst_126 {dimension_numbers = #tpu.dot_dimension_numbers<[1], [0], [0], [1], [0, 0, 1, 1], [], []>} : vector<2x256xbf16>, vector<256x32xbf16>, vector<2x32xf32> -> vector<2x32xf32>
    %173 = arith.addf %168, %172 : vector<2x32xf32>
    %c0_127 = arith.constant 0 : index
    %c0_128 = arith.constant 0 : index
    %174 = vector.load %arg7[%c0_127, %c0_128] : memref<1x32xf32, #tpu.memory_space<vmem>>, vector<1x32xf32>
    %175 = vector.broadcast %174 : vector<1x32xf32> to vector<2x32xf32>
    %176 = arith.addf %173, %175 : vector<2x32xf32>
    %cst_129 = arith.constant 0.000000e+00 : f32
    %177 = vector.broadcast %cst_129 : f32 to vector<2x32xf32>
    %178 = arith.maximumf %176, %177 : vector<2x32xf32>
    %c0_130 = arith.constant 0 : index
    %c0_131 = arith.constant 0 : index
    %179 = vector.load %arg8[%c0_130, %c0_131] : memref<32x16xf32, #tpu.memory_space<vmem>>, vector<32x16xf32>
    %cst_132 = arith.constant dense<0.000000e+00> : vector<2x16xf32>
    %180 = tpu.matmul %178, %179, %cst_132 {dimension_numbers = #tpu.dot_dimension_numbers<[1], [0], [0], [1], [0, 0, 1, 1], [], []>} : vector<2x32xf32>, vector<32x16xf32>, vector<2x16xf32> -> vector<2x16xf32>
    %c0_133 = arith.constant 0 : index
    %c0_134 = arith.constant 0 : index
    %181 = vector.load %arg9[%c0_133, %c0_134] : memref<1x16xf32, #tpu.memory_space<vmem>>, vector<1x16xf32>
    %182 = vector.broadcast %181 : vector<1x16xf32> to vector<2x16xf32>
    %183 = arith.addf %180, %182 : vector<2x16xf32>
    %cst_135 = arith.constant 0.000000e+00 : f32
    %184 = vector.broadcast %cst_135 : f32 to vector<2x16xf32>
    %185 = arith.maximumf %183, %184 : vector<2x16xf32>
    %c0_136 = arith.constant 0 : index
    %c0_137 = arith.constant 0 : index
    %186 = vector.load %arg10[%c0_136, %c0_137] : memref<16x6xf32, #tpu.memory_space<vmem>>, vector<16x6xf32>
    %cst_138 = arith.constant dense<0.000000e+00> : vector<2x6xf32>
    %187 = tpu.matmul %185, %186, %cst_138 {dimension_numbers = #tpu.dot_dimension_numbers<[1], [0], [0], [1], [0, 0, 1, 1], [], []>} : vector<2x16xf32>, vector<16x6xf32>, vector<2x6xf32> -> vector<2x6xf32>
    %c0_139 = arith.constant 0 : index
    %c0_140 = arith.constant 0 : index
    %188 = vector.load %arg11[%c0_139, %c0_140] : memref<1x6xf32, #tpu.memory_space<vmem>>, vector<1x6xf32>
    %189 = vector.broadcast %188 : vector<1x6xf32> to vector<2x6xf32>
    %190 = arith.addf %187, %189 : vector<2x6xf32>
    %c0_141 = arith.constant 0 : index
    %c0_142 = arith.constant 0 : index
    %191 = vector.load %arg12[%c0_141, %c0_142] : memref<2x6xf32, #tpu.memory_space<vmem>>, vector<2x6xf32>
    tpu.vector_store %arg12[%c0_141, %c0_142], %190 {strides = array<i32>} : memref<2x6xf32, #tpu.memory_space<vmem>>, vector<2x6xf32>,
    return
  }
  func.func @transform_0(%arg0: i32) -> (i32, i32, i32, i32) {
    %c0_i32 = arith.constant 0 : i32
    %c0_i32_0 = arith.constant 0 : i32
    %c0_i32_1 = arith.constant 0 : i32
    %c0_i32_2 = arith.constant 0 : i32
    return %c0_i32, %c0_i32_0, %arg0, %c0_i32_1 : i32, i32, i32, i32
  }
  func.func @transform_1(%arg0: i32) -> (i32, i32, i32) {
    %c0_i32 = arith.constant 0 : i32
    %c0_i32_0 = arith.constant 0 : i32
    %c0_i32_1 = arith.constant 0 : i32
    %c0_i32_2 = arith.constant 0 : i32
    return %c0_i32, %c0_i32_0, %c0_i32_1 : i32, i32, i32
  }
  func.func @transform_2(%arg0: i32) -> (i32, i32) {
    %c0_i32 = arith.constant 0 : i32
    %c0_i32_0 = arith.constant 0 : i32
    %c0_i32_1 = arith.constant 0 : i32
    return %c0_i32, %c0_i32_0 : i32, i32
  }
  func.func @transform_3(%arg0: i32) -> (i32, i32, i32) {
    %c0_i32 = arith.constant 0 : i32
    %c0_i32_0 = arith.constant 0 : i32
    %c0_i32_1 = arith.constant 0 : i32
    %c0_i32_2 = arith.constant 0 : i32
    return %c0_i32, %c0_i32_0, %c0_i32_1 : i32, i32, i32
  }
  func.func @transform_4(%arg0: i32) -> (i32, i32) {
    %c0_i32 = arith.constant 0 : i32
    %c0_i32_0 = arith.constant 0 : i32
    %c0_i32_1 = arith.constant 0 : i32
    return %c0_i32, %c0_i32_0 : i32, i32
  }
  func.func @transform_5(%arg0: i32) -> (i32, i32, i32) {
    %c0_i32 = arith.constant 0 : i32
    %c0_i32_0 = arith.constant 0 : i32
    %c0_i32_1 = arith.constant 0 : i32
    %c0_i32_2 = arith.constant 0 : i32
    return %c0_i32, %c0_i32_0, %c0_i32_1 : i32, i32, i32
  }
  func.func @transform_6(%arg0: i32) -> (i32, i32) {
    %c0_i32 = arith.constant 0 : i32
    %c0_i32_0 = arith.constant 0 : i32
    %c0_i32_1 = arith.constant 0 : i32
    return %c0_i32, %c0_i32_0 : i32, i32
  }
  func.func @transform_7(%arg0: i32) -> (i32, i32) {
    %c0_i32 = arith.constant 0 : i32
    %c0_i32_0 = arith.constant 0 : i32
    %c0_i32_1 = arith.constant 0 : i32
    return %c0_i32, %c0_i32_0 : i32, i32
  }
  func.func @transform_8(%arg0: i32) -> (i32, i32) {
    %c0_i32 = arith.constant 0 : i32
    %c0_i32_0 = arith.constant 0 : i32
    %c0_i32_1 = arith.constant 0 : i32
    return %c0_i32, %c0_i32_0 : i32, i32
  }
  func.func @transform_9(%arg0: i32) -> (i32, i32) {
    %c0_i32 = arith.constant 0 : i32
    %c0_i32_0 = arith.constant 0 : i32
    %c0_i32_1 = arith.constant 0 : i32
    return %c0_i32, %c0_i32_0 : i32, i32
  }
  func.func @transform_10(%arg0: i32) -> (i32, i32) {
    %c0_i32 = arith.constant 0 : i32
    %c0_i32_0 = arith.constant 0 : i32
    %c0_i32_1 = arith.constant 0 : i32
    return %c0_i32, %c0_i32_0 : i32, i32
  }
  func.func @transform_11(%arg0: i32) -> (i32, i32) {
    %c0_i32 = arith.constant 0 : i32
    %c0_i32_0 = arith.constant 0 : i32
    return %arg0, %c0_i32 : i32, i32
  }
}

</mosaic_0001>

<bundles_post_ra>
// kernel: cnn32_forward.1
= control target key start
LH: loop header
LB: loop body
LE: loop exit
PB: predicated region body
PF: predicated region fallthrough
CT: control target
= control target key end

     0   :  { %16 = vsyncpa [#allocation3], 0  ;;  %s10308_s0 = inlined_call_operand.vmem [shape: bf16[6,8,2,128], index: 0, kind: input, shape index: {}]   ;;  %s10309_s1 = inlined_call_operand.hbm [shape: bf16[6,128,256], index: 1, kind: input, shape index: {}]   ;;  %s10310_s2 = inlined_call_operand.vmem [shape: f32[1,256], index: 2, kind: input, shape index: {}]   ;;  %s10311_s3 = inlined_call_operand.vmem [shape: bf16[6,256,256], index: 3, kind: input, shape index: {}]   ;;  %s10312_s4 = inlined_call_operand.vmem [shape: f32[1,256], index: 4, kind: input, shape index: {}]   ;;  %s10313_s5 = inlined_call_operand.vmem [shape: bf16[8,256,32], index: 5, kind: input, shape index: {}]   ;;  %s10314_s6 = inlined_call_operand.vmem [shape: f32[1,32], index: 6, kind: input, shape index: {}]   ;;  %s10315_s7 = inlined_call_operand.vmem [shape: f32[32,16], index: 7, kind: input, shape index: {}]   ;;  %s10316_s8 = inlined_call_operand.vmem [shape: f32[1,16], index: 8, kind: input, shape index: {}]   ;;  %s10317_s9 = inlined_call_operand.vmem [shape: f32[16,6], index: 9, kind: input, shape index: {}]   ;;  %s10318_s10 = inlined_call_operand.vmem [shape: f32[1,6], index: 10, kind: input, shape index: {}]   ;;  %s10319_s11 = inlined_call_operand.hbm [shape: f32[2,6], index: 11, kind: output, shape index: {}]  }
   0x1   :  { %17 = vsyncpa [#allocation4], 0  ;;  %s7291_s17 = smov [#allocation2]  }
   0x2   :  { %s25_s18 = sshll.u32 %s7291_s17, 4  ;;  %s26_s18 = int_to_ptr.vmem [resolvable:$true] %s25_s18 }
   0x3   :  { %s7255_s19 = scalar_lea.vmem %s26_s18, 12288  ;;  %p7260_p1 = scmp.lt.s32.totalorder %s26_s18, %s26_s18 }
   0x4   :  { %p7256_p0 = scmp.ne.s32.totalorder %s26_s18, %s7255_s19  ;;  %p7261_p2 = scmp.lt.s32.totalorder %s7255_s19, %s7255_s19 }
   0x6   :  { %p7262_p3 = por %p7261_p2, %p7260_p1 }
   0x8   :  { %p7263_p4 = pnand %p7262_p3, %p7256_p0 }
   0xa   :  { %7266 = shalt.err (!%p7263_p4)
}
   0xb   :  { %s7292_s20 = smov 128   ;;  %s7293_s21 = smov 8  }
   0xc   :  { %31 = dma.hbm_to_vmem [thread:$0]  %s10309_s1, 12288, %s26_s18, [#allocation3], %s7292_s20, %s7292_s20, %s7293_s21  }
   0xd   :  { %7287 = dma.done.wait [#allocation3], 12288  }
   0xe   :  { %7288 = vsyncadd [#allocation3], 4294955008  ;;  %v10320_v0 = vmov 0   ;;  %v7365_v1 = vld [vmem:[#allocation2 + $0x174] ss:$8 sps:$4 sm:$0xff]   ;;  %v422_v20 = vlaneseq  ;;  %vm2377_vm0 = vcmask 1045504  }
   0xf   :  { %577 = vmatprep.mubr.bf16.mxu0 %v10320_v0  ;;  %758 = vmatprep.mubr.bf16.mxu1 %v10320_v0  ;;  %v7367_v2 = vld [vmem:[#allocation2 + $0x74] ss:$8 sps:$4 sm:$0xff]   ;;  %v7370_v3 = vld [vmem:[#allocation2 + $0x170] ss:$8 sps:$4 sm:$0xff]   ;;  %v7375_v5 = vld [vmem:[#allocation2 + $0x164] ss:$8 sps:$4 sm:$0xff]  }
  0x10   :  { %545 = vmatprep.subr.bf16.mxu0 %v7365_v1  ;;  %v7372_v4 = vld [vmem:[#allocation2 + $0x70] ss:$8 sps:$4 sm:$0xff]   ;;  %726 = vmatprep.subr.bf16.mxu1 %v7367_v2  ;;  %v7379_v6 = vld [vmem:[#allocation2 + $0x64] ss:$8 sps:$4 sm:$0xff]   ;;  %v7381_v7 = vld [vmem:[#allocation2 + $0x160] ss:$8 sps:$4 sm:$0xff]  }
  0x11   :  { %546 = vmatpush1.bf16.msra.mxu0 %v7370_v3  ;;  %727 = vmatpush1.bf16.msra.mxu1 %v7372_v4  ;;  %v7384_v8 = vld [vmem:[#allocation2 + $0x60] ss:$8 sps:$4 sm:$0xff]   ;;  %v7387_v9 = vld [vmem:[#allocation2 + $0x154] ss:$8 sps:$4 sm:$0xff]   ;;  %v7391_v11 = vld [vmem:[#allocation2 + $0x150] ss:$8 sps:$4 sm:$0xff]  }
  0x12   :  { %547 = vmatprep.subr.bf16.mxu0 %v7375_v5  ;;  %728 = vmatprep.subr.bf16.mxu1 %v7379_v6  ;;  %v7389_v10 = vld [vmem:[#allocation2 + $0x54] ss:$8 sps:$4 sm:$0xff]   ;;  %v7393_v12 = vld [vmem:[#allocation2 + $0x50] ss:$8 sps:$4 sm:$0xff]   ;;  %v7397_v13 = vld [vmem:[#allocation2 + $0x144] ss:$8 sps:$4 sm:$0xff]  }
  0x13   :  { %v7401_v14 = vld [vmem:[#allocation2 + $0x44] ss:$8 sps:$4 sm:$0xff]   ;;  %v7403_v15 = vld [vmem:[#allocation2 + $0x140] ss:$8 sps:$4 sm:$0xff]   ;;  %v7409_v17 = vld [vmem:[#allocation2 + $0x134] ss:$8 sps:$4 sm:$0xff]  }
  0x14   :  { %v7407_v16 = vld [vmem:[#allocation2 + $0x40] ss:$8 sps:$4 sm:$0xff]   ;;  %v7295_v18 = vmov 1966171168   ;;  %v7413_v21 = vld [vmem:[#allocation2 + $0x34] ss:$8 sps:$4 sm:$0xff]  }
  0x15   :  { %548 = vmatpush1.bf16.msra.mxu0 %v7381_v7  ;;  %729 = vmatpush1.bf16.msra.mxu1 %v7384_v8  ;;  %v420_v19 = vunpack.c.l.s4 %v7295_v18  ;;  %v7415_v22 = vld [vmem:[#allocation2 + $0x130] ss:$8 sps:$4 sm:$0xff]   ;;  %v7421_v24 = vld [vmem:[#allocation2 + $0x124] ss:$8 sps:$4 sm:$0xff]   ;;  %v7423_v26 = vshrl.u32 %v422_v20, 7  ;;  %vm2354_vm1 = vcmask 1041408  }
  0x16   :  { %549 = vmatprep.subr.bf16.mxu0 %v7387_v9  ;;  %730 = vmatprep.subr.bf16.mxu1 %v7389_v10  ;;  %v7417_v23 = vld [vmem:[#allocation2 + $0x30] ss:$8 sps:$4 sm:$0xff]   ;;  %v7427_v27 = vld [vmem:[#allocation2 + $0x24] ss:$8 sps:$4 sm:$0xff]   ;;  %v7429_v28 = vld [vmem:[#allocation2 + $0x120] ss:$8 sps:$4 sm:$0xff]  }
  0x17   :  { %v421_v25 = vunpack.c.0.s8 %v420_v19  ;;  %10545 = vst [vmem:[#allocation8_spill] sm:$0xff] %v7423_v26  ;;  %v7433_v29 = vld [vmem:[#allocation2 + $0x20] ss:$8 sps:$4 sm:$0xff]   ;;  %v7435_v30 = vld [vmem:[#allocation2 + $0x114] ss:$8 sps:$4 sm:$0xff]   ;;  %vm5859_vm2 = vmneg %vm2354_vm1  ;;  %vm7296_vm3 = vmmov 1  }
  0x18   :  { %v7442_v32 = vld [vmem:[#allocation2 + $0x14] ss:$8 sps:$4 sm:$0xff]   ;;  %v5499_v33 = vld [vmem:[%s10308_s0 + $0x8] sm:$0x1]  ;;  %v5500_v34 = vld [vmem:[%s10308_s0 + $0x9] sm:$0x1] }
  0x19   :  { %550 = vmatpush1.bf16.msra.mxu0 %v7391_v11  ;;  %731 = vmatpush1.bf16.msra.mxu1 %v7393_v12  ;;  %v7438_v31 = vsub.s32 %v421_v25, %v7423_v26  ;;  %v7450_v35 = vld [vmem:[#allocation2 + $0x110] ss:$8 sps:$4 sm:$0xff]   ;;  %v5501_v37 = vld [vmem:[%s10308_s0 + $0xa] sm:$0x1]  ;;  %v5502_v38 = vld [vmem:[%s10308_s0 + $0xb] sm:$0x1]  ;;  %v415_v40 = vcombine.low %v5499_v33, %v5500_v34 }
  0x1a   :  { %551 = vmatprep.subr.bf16.mxu0 %v7397_v13  ;;  %732 = vmatprep.subr.bf16.mxu1 %v7401_v14  ;;  %v7452_v36 = vld [vmem:[#allocation2 + $0x10] ss:$8 sps:$4 sm:$0xff]   ;;  %v5503_v39 = vld [vmem:[%s10308_s0 + $0xc] sm:$0x1]  ;;  %v5504_v43 = vld [vmem:[%s10308_s0 + $0xd] sm:$0x1]  ;;  %v416_v46 = vcombine.low %v5501_v37, %v5502_v38 }
  0x1b   :  { %v7463_v41 = vld [vmem:[#allocation2 + $0x104] ss:$8 sps:$4 sm:$0xff]   ;;  %v417_v47 = vcombine.low %v5503_v39, %v5504_v43  ;;  %v425_v49 = vrot.slane %v415_v40, %v7438_v31  ;;  %v54_v50 = vld [vmem:[%s10308_s0] sm:$0x1]  ;;  %v55_v51 = vld [vmem:[%s10308_s0 + $0x1] sm:$0x1] }
  0x1c   :  { %v7465_v42 = vld [vmem:[#allocation2 + $0x4] ss:$8 sps:$4 sm:$0xff]   ;;  %v56_v52 = vld [vmem:[%s10308_s0 + $0x2] sm:$0x1]  ;;  %v432_v53 = vrot.slane %v416_v46, %v7438_v31  ;;  %v57_v54 = vld [vmem:[%s10308_s0 + $0x3] sm:$0x1]  ;;  %v596_v57 = vcombine.low %v54_v50, %v55_v51 }
  0x1d   :  { %552 = vmatpush1.bf16.msra.mxu0 %v7403_v15  ;;  %733 = vmatpush1.bf16.msra.mxu1 %v7407_v16  ;;  %v5505_v44 = vld [vmem:[%s10308_s0 + $0xe] sm:$0x1]  ;;  %v5506_v45 = vld [vmem:[%s10308_s0 + $0xf] sm:$0x1]  ;;  %v58_v55 = vld [vmem:[%s10308_s0 + $0x4] sm:$0x1]  ;;  %v439_v58 = vrot.slane %v417_v47, %v7438_v31  ;;  %v597_v62 = vcombine.low %v56_v52, %v57_v54 }
  0x1e   :  { %553 = vmatprep.subr.bf16.mxu0 %v7409_v17  ;;  %734 = vmatprep.subr.bf16.mxu1 %v7413_v21  ;;  %v418_v48 = vcombine.low %v5505_v44, %v5506_v45  ;;  %v59_v56 = vld [vmem:[%s10308_s0 + $0x5] sm:$0x1]  ;;  %v60_v60 = vld [vmem:[%s10308_s0 + $0x6] sm:$0x1]  ;;  %v61_v61 = vld [vmem:[%s10308_s0 + $0x7] sm:$0x1]  ;;  %v447_v19 = vcombine.low %v425_v49, %v432_v53  ;;  %v606_v25 = vrot.slane %v596_v57, %v7438_v31 }
  0x1f   :  { %v598_v63 = vcombine.low %v58_v55, %v59_v56  ;;  %v7508_v18 = vld [vmem:[#allocation2 + $0x100] ss:$8 sps:$4 sm:$0xff]   ;;  %v599_v20 = vcombine.low %v60_v60, %v61_v61  ;;  %v613_v37 = vrot.slane %v597_v62, %v7438_v31  ;;  %v7517_v39 = vld [vmem:[#allocation2 + $0x274] ss:$8 sps:$4 sm:$0xff]   ;;  %v7531_v50 = vld [vmem:[#allocation2 + $0x270] ss:$8 sps:$4 sm:$0xff]  }
  0x20   :  { %v446_v59 = vrot.slane %v418_v48, %v7438_v31  ;;  %v7513_v33 = vld [vmem:[#allocation2] ss:$8 sps:$4 sm:$0xff]   ;;  %v455_v40 = vrot.slane %v447_v19, %v7438_v31  ;;  %v7523_v44 = vld [vmem:[#allocation2 + $0x1f4] ss:$8 sps:$4 sm:$0xff]   ;;  %v7536_v52 = vld [vmem:[#allocation2 + $0x264] ss:$8 sps:$4 sm:$0xff]  }
  0x21   :  { %554 = vmatpush1.bf16.msra.mxu0 %v7415_v22  ;;  %735 = vmatpush1.bf16.msra.mxu1 %v7417_v23  ;;  %v620_v38 = vrot.slane %v598_v63, %v7438_v31  ;;  %v627_v43 = vrot.slane %v599_v20, %v7438_v31  ;;  %v628_v46 = vcombine.low %v606_v25, %v613_v37  ;;  %v7538_v53 = vld [vmem:[#allocation2 + $0x1f0] ss:$8 sps:$4 sm:$0xff]   ;;  %v7543_v55 = vld [vmem:[#allocation2 + $0x1e4] ss:$8 sps:$4 sm:$0xff]   ;;  %v7546_v56 = vld [vmem:[#allocation2 + $0x260] ss:$8 sps:$4 sm:$0xff]  }
  0x22   :  { %555 = vmatprep.subr.bf16.mxu0 %v7421_v24  ;;  %736 = vmatprep.subr.bf16.mxu1 %v7427_v27  ;;  %v448_v34 = vcombine.low %v439_v58, %v446_v59  ;;  %v7551_v57 = vld [vmem:[#allocation2 + $0x254] ss:$8 sps:$4 sm:$0xff]   ;;  %v7554_v58 = vld [vmem:[#allocation2 + $0x1e0] ss:$8 sps:$4 sm:$0xff]   ;;  %v7561_v60 = vld [vmem:[#allocation2 + $0x250] ss:$8 sps:$4 sm:$0xff]  }
  0x23   :  { %v629_v47 = vcombine.low %v620_v38, %v627_v43  ;;  %v636_v49 = vrot.slane %v628_v46, %v7438_v31  ;;  %v7558_v59 = vld [vmem:[#allocation2 + $0x1d4] ss:$8 sps:$4 sm:$0xff]   ;;  %10547 = vst [vmem:[#allocation10_spill] sm:$0xff] %v7561_v60  ;;  %v7564_v61 = vld [vmem:[#allocation2 + $0x244] ss:$8 sps:$4 sm:$0xff]   ;;  %vm9053_vm4 = vmpackc.low %vm7296_vm3, %vm5859_vm2  ;;  %vm7298_vm6 = vmmov 0  }
  0x24   :  { %v462_v45 = vrot.slane %v448_v34, %v7438_v31  ;;  %10546 = vst [vmem:[#allocation9_spill] sm:$0xff] %v7558_v59  ;;  %10548 = vst [vmem:[#allocation11_spill] sm:$0xff] %v7564_v61  ;;  %v7567_v62 = vld [vmem:[#allocation2 + $0x1d0] ss:$8 sps:$4 sm:$0xff]   ;;  %v7570_v63 = vld [vmem:[#allocation2 + $0x1c4] ss:$8 sps:$4 sm:$0xff]  }
  0x25   :  { %556 = vmatpush1.bf16.msra.mxu0 %v7429_v28  ;;  %737 = vmatpush1.bf16.msra.mxu1 %v7433_v29  ;;  %v643_v51 = vrot.slane %v629_v47, %v7438_v31  ;;  %10549 = vst [vmem:[#allocation12_spill] sm:$0xff] %v7567_v62  ;;  %10550 = vst [vmem:[#allocation13_spill] sm:$0xff] %v7570_v63  ;;  %v7573_v19 = vld [vmem:[#allocation2 + $0x240] ss:$8 sps:$4 sm:$0xff]   ;;  %v7576_v20 = vld [vmem:[#allocation2 + $0x234] ss:$8 sps:$4 sm:$0xff]  }
  0x26   :  { %557 = vmatprep.subr.bf16.mxu0 %v7435_v30  ;;  %738 = vmatprep.subr.bf16.mxu1 %v7442_v32  ;;  %v7528_v48 = vcombine.low %v455_v40, %v462_v45  ;;  %10551 = vst [vmem:[#allocation14_spill] sm:$0xff] %v7573_v19  ;;  %10552 = vst [vmem:[#allocation15_spill] sm:$0xff] %v7576_v20  ;;  %v7579_v25 = vld [vmem:[#allocation2 + $0x1c0] ss:$8 sps:$4 sm:$0xff]   ;;  %v7582_v34 = vld [vmem:[#allocation2 + $0x1b4] ss:$8 sps:$4 sm:$0xff]  }
  0x27   :  { %v7541_v54 = vcombine.low %v636_v49, %v643_v51  ;;  %10553 = vst [vmem:[#allocation16_spill] sm:$0xff] %v7579_v25  ;;  %v7584_v37 = vld [vmem:[#allocation2 + $0x230] ss:$8 sps:$4 sm:$0xff]   ;;  %v7586_v38 = vld [vmem:[#allocation2 + $0x224] ss:$8 sps:$4 sm:$0xff]   ;;  %vm9673_vm5 = vmpackc.low %vm2377_vm0, %vm7296_vm3  ;;  %vm5324_vm7 = vcmask 261120  }
  0x28   :  { %v7589_v40 = vld [vmem:[#allocation2 + $0x1b0] ss:$8 sps:$4 sm:$0xff]   ;;  %v5511_v49 = vld [vmem:[%s10308_s0 + $0x14] sm:$0x1]  ;;  %v5512_v51 = vld [vmem:[%s10308_s0 + $0x15] sm:$0x1] }
  0x29   :  { %558 = vmatpush1.bf16.msra.mxu0 %v7450_v35  ;;  %739 = vmatpush1.bf16.msra.mxu1 %v7452_v36  ;;  %v5507_v43 = vld [vmem:[%s10308_s0 + $0x10] sm:$0x1]  ;;  %v5508_v45 = vld [vmem:[%s10308_s0 + $0x11] sm:$0x1]  ;;  %v5509_v46 = vld [vmem:[%s10308_s0 + $0x12] sm:$0x1] }
  0x2a   :  { %559 = vmatprep.subr.bf16.mxu0 %v7463_v41  ;;  %740 = vmatprep.subr.bf16.mxu1 %v7465_v42  ;;  %v5510_v47 = vld [vmem:[%s10308_s0 + $0x13] sm:$0x1]  ;;  %v5513_v26 = vld [vmem:[%s10308_s0 + $0x16] sm:$0x1]  ;;  %vm5408_vm8 = vcmask 130048   ;;  %s7299_s14 = smov [#allocation5]  }
  0x2b   :  { %s5490_s15 = sshll.u32 %s7299_s14, 4  ;;  %vm5482_vm9 = vcmask 41984   ;;  %s5491_s15 = int_to_ptr.vmem [resolvable:$true] %s5490_s15 }
  0x2c   :  { %p7272_p6 = scmp.lt.s32.totalorder %s5491_s15, %s5491_s15 }
  0x2d   :  { %560 = vmatpush1.bf16.msra.mxu0 %v7508_v18  ;;  %741 = vmatpush1.bf16.msra.mxu1 %v7513_v33 }
  0x2e   :  { %907 = vmatprep.subr.bf16.mxu0 %v7517_v39  ;;  %1034 = vmatprep.subr.bf16.mxu1 %v7523_v44 }
  0x30   :  { %578 = vmatmul.mubr.bf16.vlgmr.msra.gmra.mxu0 %v7528_v48  ;;  %759 = vmatmul.mubr.bf16.vlgmr.msra.gmra.mxu1 %v7541_v54 }
  0x31   :  { %908 = vmatpush1.bf16.msra.mxu0 %v7531_v50  ;;  %939 = vmatprep.mubr.bf16.mxu0 %v10320_v0 }
  0x32   :  { %909 = vmatprep.subr.bf16.mxu0 %v7536_v52  ;;  %1035 = vmatpush1.bf16.msra.mxu1 %v7538_v53 }
  0x33   :  { %1066 = vmatprep.mubr.bf16.mxu1 %v10320_v0  ;;  %1036 = vmatprep.subr.bf16.mxu1 %v7543_v55  ;;  %v777_v0 = vcombine.low %v5507_v43, %v5508_v45  ;;  %v7622_v43 = vld [vmem:[#allocation2 + $0x220] ss:$8 sps:$4 sm:$0xff]  }
  0x35   :  { %910 = vmatpush1.bf16.msra.mxu0 %v7546_v56 }
  0x36   :  { %911 = vmatprep.subr.bf16.mxu0 %v7551_v57  ;;  %1037 = vmatpush1.bf16.msra.mxu1 %v7554_v58 }
  0x37   :  { %1038 = vmatprep.subr.bf16.mxu1 %v7558_v59  ;;  %v7627_v59 = vld [vmem:[#allocation2 + $0x214] ss:$8 sps:$4 sm:$0xff]  }
  0x39   :  { %912 = vmatpush1.bf16.msra.mxu0 %v7561_v60  ;;  %v787_v60 = vrot.slane %v777_v0, %v7438_v31  ;;  %v7634_v0 = vld [vmem:[#allocation2 + $0x194] ss:$8 sps:$4 sm:$0xff]  }
  0x3a   :  { %913 = vmatprep.subr.bf16.mxu0 %v7564_v61  ;;  %1039 = vmatpush1.bf16.msra.mxu1 %v7567_v62  ;;  %v7618_v62 = vld [vmem:[#allocation2 + $0x1a4] ss:$8 sps:$4 sm:$0xff]   ;;  %10555 = vst [vmem:[#allocation18_spill] sm:$0xff] %v7634_v0 }
  0x3b   :  { %1040 = vmatprep.subr.bf16.mxu1 %v7570_v63  ;;  %v779_v63 = vcombine.low %v5511_v49, %v5512_v51  ;;  %v7646_v49 = vld [vmem:[#allocation2 + $0x184] ss:$8 sps:$4 sm:$0xff]  }
  0x3c   :  { %10559 = vst [vmem:[#allocation22_spill] sm:$0xff] %v7646_v49 }
  0x3d   :  { %914 = vmatpush1.bf16.msra.mxu0 %v7573_v19  ;;  %v778_v19 = vcombine.low %v5509_v46, %v5510_v47  ;;  %v7631_v47 = vld [vmem:[#allocation2 + $0x1a0] ss:$8 sps:$4 sm:$0xff]  }
  0x3e   :  { %915 = vmatprep.subr.bf16.mxu0 %v7576_v20  ;;  %1041 = vmatpush1.bf16.msra.mxu1 %v7579_v25  ;;  %v5514_v20 = vld [vmem:[%s10308_s0 + $0x17] sm:$0x1]  ;;  %v801_v25 = vrot.slane %v779_v63, %v7438_v31  ;;  %10554 = vst [vmem:[#allocation17_spill] sm:$0xff] %v7631_v47  ;;  %v7640_v63 = vld [vmem:[#allocation2 + $0x204] ss:$8 sps:$4 sm:$0xff]  }
  0x3f   :  { %1042 = vmatprep.subr.bf16.mxu1 %v7582_v34  ;;  %v780_v61 = vcombine.low %v5513_v26, %v5514_v20  ;;  %v794_v45 = vrot.slane %v778_v19, %v7438_v31  ;;  %v7637_v19 = vld [vmem:[#allocation2 + $0x210] ss:$8 sps:$4 sm:$0xff]   ;;  %10557 = vst [vmem:[#allocation20_spill] sm:$0xff] %v7640_v63 }
  0x40   :  { %10556 = vst [vmem:[#allocation19_spill] sm:$0xff] %v7637_v19 }
  0x41   :  { %916 = vmatpush1.bf16.msra.mxu0 %v7584_v37  ;;  %v808_v46 = vrot.slane %v780_v61, %v7438_v31  ;;  %v809_v26 = vcombine.low %v787_v60, %v794_v45  ;;  %v7643_v61 = vld [vmem:[#allocation2 + $0x190] ss:$8 sps:$4 sm:$0xff]   ;;  %v7654_v45 = vld [vmem:[#allocation2 + $0xf4] ss:$8 sps:$4 sm:$0xff]  }
  0x42   :  { %917 = vmatprep.subr.bf16.mxu0 %v7586_v38  ;;  %1043 = vmatpush1.bf16.msra.mxu1 %v7589_v40  ;;  %10558 = vst [vmem:[#allocation21_spill] sm:$0xff] %v7643_v61  ;;  %10561 = vst [vmem:[#allocation24_spill] sm:$0xff] %v7654_v45 }
  0x43   :  { %1044 = vmatprep.subr.bf16.mxu1 %v7618_v62  ;;  %v810_v20 = vcombine.low %v801_v25, %v808_v46  ;;  %v817_v51 = vrot.slane %v809_v26, %v7438_v31  ;;  %v7651_v25 = vld [vmem:[#allocation2 + $0x200] ss:$8 sps:$4 sm:$0xff]   ;;  %v7665_v26 = vld [vmem:[#allocation2 + $0xf0] ss:$8 sps:$4 sm:$0xff]  }
  0x44   :  { %10560 = vst [vmem:[#allocation23_spill] sm:$0xff] %v7651_v25  ;;  %v7657_v46 = vld [vmem:[#allocation2 + $0x180] ss:$8 sps:$4 sm:$0xff]   ;;  %10564 = vst [vmem:[#allocation27_spill] sm:$0xff] %v7665_v26 }
  0x45   :  { %918 = vmatpush1.bf16.msra.mxu0 %v7622_v43  ;;  %v824_v60 = vrot.slane %v810_v20, %v7438_v31  ;;  %10562 = vst [vmem:[#allocation25_spill] sm:$0xff] %v7657_v46  ;;  %v7668_v20 = vld [vmem:[#allocation2 + $0xe4] ss:$8 sps:$4 sm:$0xff]  }
  0x46   :  { %919 = vmatprep.subr.bf16.mxu0 %v7627_v59  ;;  %1045 = vmatpush1.bf16.msra.mxu1 %v7631_v47  ;;  %v7662_v47 = vld [vmem:[#allocation2 + $0x2f4] ss:$8 sps:$4 sm:$0xff]   ;;  %10565 = vst [vmem:[#allocation28_spill] sm:$0xff] %v7668_v20 }
  0x47   :  { %1046 = vmatprep.subr.bf16.mxu1 %v7634_v0  ;;  %v7660_v0 = vcombine.low %v817_v51, %v824_v60  ;;  %10563 = vst [vmem:[#allocation26_spill] sm:$0xff] %v7662_v47  ;;  %v7675_v51 = vld [vmem:[#allocation2 + $0x2e4] ss:$8 sps:$4 sm:$0xff]   ;;  %v7678_v60 = vld [vmem:[#allocation2 + $0xe0] ss:$8 sps:$4 sm:$0xff]  }
  0x48   :  { %10567 = vst [vmem:[#allocation30_spill] sm:$0xff] %v7675_v51  ;;  %10568 = vst [vmem:[#allocation31_spill] sm:$0xff] %v7678_v60 }
  0x49   :  { %920 = vmatpush1.bf16.msra.mxu0 %v7637_v19  ;;  %v7715_v19 = vld [vmem:[#allocation2 + $0xb0] ss:$8 sps:$4 sm:$0xff]  }
  0x4a   :  { %921 = vmatprep.subr.bf16.mxu0 %v7640_v63  ;;  %1047 = vmatpush1.bf16.msra.mxu1 %v7643_v61  ;;  %v7671_v63 = vld [vmem:[#allocation2 + $0x2f0] ss:$8 sps:$4 sm:$0xff]   ;;  %v7703_v61 = vld [vmem:[#allocation2 + $0xc0] ss:$8 sps:$4 sm:$0xff]   ;;  %10581 = vst [vmem:[#allocation43_spill] sm:$0xff] %v7715_v19 }
  0x4b   :  { %1048 = vmatprep.subr.bf16.mxu1 %v7646_v49  ;;  %10566 = vst [vmem:[#allocation29_spill] sm:$0xff] %v7671_v63  ;;  %v7696_v49 = vld [vmem:[#allocation2 + $0x2d0] ss:$8 sps:$4 sm:$0xff]   ;;  %10577 = vst [vmem:[#allocation39_spill] sm:$0xff] %v7703_v61 }
  0x4c   :  { %10574 = vst [vmem:[#allocation36_spill] sm:$0xff] %v7696_v49 }
  0x4d   :  { %922 = vmatpush1.bf16.msra.mxu0 %v7651_v25  ;;  %v10569_v25 = vmov 0  }
  0x4e   :  { %1157 = vmatprep.subr.bf16.mxu0 %v7654_v45  ;;  %1049 = vmatpush1.bf16.msra.mxu1 %v7657_v46  ;;  %v7683_v45 = vld [vmem:[#allocation2 + $0xd4] ss:$8 sps:$4 sm:$0xff]   ;;  %v7686_v46 = vld [vmem:[#allocation2 + $0x2e0] ss:$8 sps:$4 sm:$0xff]  }
  0x4f   :  { %1280 = vmatprep.subr.bf16.mxu1 %v7662_v47  ;;  %10570 = vst [vmem:[#allocation32_spill] sm:$0xff] %v7683_v45  ;;  %10571 = vst [vmem:[#allocation33_spill] sm:$0xff] %v7686_v46  ;;  %v7690_v47 = vld [vmem:[#allocation2 + $0x2d4] ss:$8 sps:$4 sm:$0xff]  }
  0x50   :  { %940 = vmatmul.mubr.bf16.vlgmr.msra.gmra.mxu0 %v7660_v0  ;;  %10572 = vst [vmem:[#allocation34_spill] sm:$0xff] %v7690_v47 }
  0x51   :  { %1158 = vmatpush1.bf16.msra.mxu0 %v7665_v26  ;;  %1189 = vmatprep.mubr.bf16.mxu0 %v10569_v25  ;;  %v7693_v26 = vld [vmem:[#allocation2 + $0xd0] ss:$8 sps:$4 sm:$0xff]  }
  0x52   :  { %1067 = vmatmul.mubr.bf16.vlgmr.msra.gmra.mxu1 %v7528_v48  ;;  %1159 = vmatprep.subr.bf16.mxu0 %v7668_v20  ;;  %10573 = vst [vmem:[#allocation35_spill] sm:$0xff] %v7693_v26  ;;  %v7698_v20 = vld [vmem:[#allocation2 + $0xc4] ss:$8 sps:$4 sm:$0xff]  }
  0x53   :  { %1281 = vmatpush1.bf16.msra.mxu1 %v7671_v63  ;;  %1312 = vmatprep.mubr.bf16.mxu1 %v10569_v25  ;;  %10575 = vst [vmem:[#allocation37_spill] sm:$0xff] %v7698_v20  ;;  %v7701_v63 = vld [vmem:[#allocation2 + $0x2c4] ss:$8 sps:$4 sm:$0xff]  }
  0x54   :  { %1282 = vmatprep.subr.bf16.mxu1 %v7675_v51  ;;  %10576 = vst [vmem:[#allocation38_spill] sm:$0xff] %v7701_v63  ;;  %v7706_v51 = vld [vmem:[#allocation2 + $0xb4] ss:$8 sps:$4 sm:$0xff]  }
  0x55   :  { %1160 = vmatpush1.bf16.msra.mxu0 %v7678_v60  ;;  %10578 = vst [vmem:[#allocation40_spill] sm:$0xff] %v7706_v51  ;;  %v7709_v60 = vld [vmem:[#allocation2 + $0x2c0] ss:$8 sps:$4 sm:$0xff]  }
  0x56   :  { %1161 = vmatprep.subr.bf16.mxu0 %v7683_v45  ;;  %10579 = vst [vmem:[#allocation41_spill] sm:$0xff] %v7709_v60  ;;  %v7712_v45 = vld [vmem:[#allocation2 + $0x2b4] ss:$8 sps:$4 sm:$0xff]  }
  0x57   :  { %1283 = vmatpush1.bf16.msra.mxu1 %v7686_v46  ;;  %10580 = vst [vmem:[#allocation42_spill] sm:$0xff] %v7712_v45  ;;  %v7718_v46 = vld [vmem:[#allocation2 + $0xa4] ss:$8 sps:$4 sm:$0xff]  }
  0x58   :  { %1284 = vmatprep.subr.bf16.mxu1 %v7690_v47  ;;  %10582 = vst [vmem:[#allocation44_spill] sm:$0xff] %v7718_v46  ;;  %v7721_v47 = vld [vmem:[#allocation2 + $0x2b0] ss:$8 sps:$4 sm:$0xff]  }
  0x59   :  { %1162 = vmatpush1.bf16.msra.mxu0 %v7693_v26  ;;  %10583 = vst [vmem:[#allocation45_spill] sm:$0xff] %v7721_v47  ;;  %v7724_v26 = vld [vmem:[#allocation2 + $0x2a4] ss:$8 sps:$4 sm:$0xff]  }
  0x5a   :  { %1163 = vmatprep.subr.bf16.mxu0 %v7698_v20  ;;  %v7727_v20 = vld [vmem:[#allocation2 + $0xa0] ss:$8 sps:$4 sm:$0xff]  }
  0x5b   :  { %1285 = vmatpush1.bf16.msra.mxu1 %v7696_v49  ;;  %v7730_v49 = vld [vmem:[#allocation2 + $0x94] ss:$8 sps:$4 sm:$0xff]  }
  0x5c   :  { %1286 = vmatprep.subr.bf16.mxu1 %v7701_v63  ;;  %v7733_v63 = vld [vmem:[#allocation2 + $0x2a0] ss:$8 sps:$4 sm:$0xff]  }
  0x5d   :  { %1164 = vmatpush1.bf16.msra.mxu0 %v7703_v61  ;;  %v7736_v61 = vld [vmem:[#allocation2 + $0x294] ss:$8 sps:$4 sm:$0xff]  }
  0x5e   :  { %1165 = vmatprep.subr.bf16.mxu0 %v7706_v51  ;;  %v7739_v51 = vld [vmem:[#allocation2 + $0x90] ss:$8 sps:$4 sm:$0xff]  }
  0x5f   :  { %1287 = vmatpush1.bf16.msra.mxu1 %v7709_v60  ;;  %v7742_v60 = vld [vmem:[#allocation2 + $0x84] ss:$8 sps:$4 sm:$0xff]  }
  0x60   :  { %1288 = vmatprep.subr.bf16.mxu1 %v7712_v45  ;;  %v7745_v45 = vld [vmem:[#allocation2 + $0x290] ss:$8 sps:$4 sm:$0xff]  }
  0x61   :  { %1166 = vmatpush1.bf16.msra.mxu0 %v7715_v19  ;;  %v7748_v19 = vld [vmem:[#allocation2 + $0x284] ss:$8 sps:$4 sm:$0xff]  }
  0x62   :  { %1167 = vmatprep.subr.bf16.mxu0 %v7718_v46  ;;  %v7751_v46 = vld [vmem:[#allocation2 + $0x80] ss:$8 sps:$4 sm:$0xff]  }
  0x63   :  { %1289 = vmatpush1.bf16.msra.mxu1 %v7721_v47  ;;  %v7755_v47 = vld [vmem:[#allocation2 + $0x280] ss:$8 sps:$4 sm:$0xff]  }
  0x64   :  { %1290 = vmatprep.subr.bf16.mxu1 %v7724_v26 }
  0x65   :  { %1168 = vmatpush1.bf16.msra.mxu0 %v7727_v20 }
  0x66   :  { %1169 = vmatprep.subr.bf16.mxu0 %v7730_v49 }
  0x67   :  { %1291 = vmatpush1.bf16.msra.mxu1 %v7733_v63 }
  0x68   :  { %1292 = vmatprep.subr.bf16.mxu1 %v7736_v61 }
  0x69   :  { %1170 = vmatpush1.bf16.msra.mxu0 %v7739_v51 }
  0x6a   :  { %1171 = vmatprep.subr.bf16.mxu0 %v7742_v60 }
  0x6b   :  { %1293 = vmatpush1.bf16.msra.mxu1 %v7745_v45 }
  0x6c   :  { %1294 = vmatprep.subr.bf16.mxu1 %v7748_v19 }
  0x6d   :  { %1172 = vmatpush1.bf16.msra.mxu0 %v7751_v46 }
  0x6e   :  { %1331 = vmatprep.subr.bf16.mxu0 %v7365_v1  ;;  %v5515_v1 = vld [vmem:[%s10308_s0 + $0x18] sm:$0x1] }
  0x6f   :  { %1295 = vmatpush1.bf16.msra.mxu1 %v7755_v47 }
  0x70   :  { %1190 = vmatmul.mubr.bf16.vlgmr.msra.gmra.mxu0 %v7541_v54  ;;  %1374 = vmatprep.subr.bf16.mxu1 %v7367_v2  ;;  %v5516_v2 = vld [vmem:[%s10308_s0 + $0x19] sm:$0x1]  ;;  %v10600_v54 = vld [vmem:[#allocation25_spill] sm:$0xff] }
  0x71   :  { %1332 = vmatpush1.bf16.msra.mxu0 %v7370_v3  ;;  %1363 = vmatprep.mubr.bf16.mxu0 %v10569_v25  ;;  %v5517_v3 = vld [vmem:[%s10308_s0 + $0x1a] sm:$0x1] }
  0x72   :  { %1313 = vmatmul.mubr.bf16.vlgmr.msra.gmra.mxu1 %v7660_v0  ;;  %1333 = vmatprep.subr.bf16.mxu0 %v7375_v5  ;;  %v5519_v5 = vld [vmem:[%s10308_s0 + $0x1c] sm:$0x1] }
  0x73   :  { %1375 = vmatpush1.bf16.msra.mxu1 %v7372_v4  ;;  %1406 = vmatprep.mubr.bf16.mxu1 %v10569_v25  ;;  %v5518_v4 = vld [vmem:[%s10308_s0 + $0x1b] sm:$0x1] }
  0x74   :  { %1376 = vmatprep.subr.bf16.mxu1 %v7379_v6  ;;  %v5520_v6 = vld [vmem:[%s10308_s0 + $0x1d] sm:$0x1] }
  0x75   :  { %1334 = vmatpush1.bf16.msra.mxu0 %v7381_v7  ;;  %v5521_v7 = vld [vmem:[%s10308_s0 + $0x1e] sm:$0x1] }
  0x76   :  { %1335 = vmatprep.subr.bf16.mxu0 %v7387_v9  ;;  %v10584_v9 = vld [vmem:[#allocation9_spill] sm:$0xff] }
  0x77   :  { %1377 = vmatpush1.bf16.msra.mxu1 %v7384_v8  ;;  %v5522_v8 = vld [vmem:[%s10308_s0 + $0x1f] sm:$0x1] }
  0x78   :  { %1378 = vmatprep.subr.bf16.mxu1 %v7389_v10  ;;  %v10585_v10 = vld [vmem:[#allocation10_spill] sm:$0xff] }
  0x79   :  { %1336 = vmatpush1.bf16.msra.mxu0 %v7391_v11  ;;  %v10586_v11 = vld [vmem:[#allocation11_spill] sm:$0xff] }
  0x7a   :  { %1337 = vmatprep.subr.bf16.mxu0 %v7397_v13  ;;  %v10588_v13 = vld [vmem:[#allocation13_spill] sm:$0xff] }
  0x7b   :  { %1379 = vmatpush1.bf16.msra.mxu1 %v7393_v12  ;;  %v10587_v12 = vld [vmem:[#allocation12_spill] sm:$0xff] }
  0x7c   :  { %1380 = vmatprep.subr.bf16.mxu1 %v7401_v14  ;;  %v1425_v14 = vcombine.low %v5515_v1, %v5516_v2  ;;  %v10612_v1 = vld [vmem:[#allocation36_spill] sm:$0xff]  ;;  %v10613_v2 = vld [vmem:[#allocation38_spill] sm:$0xff] }
  0x7d   :  { %1338 = vmatpush1.bf16.msra.mxu0 %v7403_v15  ;;  %v1426_v15 = vcombine.low %v5517_v3, %v5518_v4  ;;  %v10614_v3 = vld [vmem:[#allocation39_spill] sm:$0xff]  ;;  %v10615_v4 = vld [vmem:[#allocation40_spill] sm:$0xff] }
  0x7e   :  { %1339 = vmatprep.subr.bf16.mxu0 %v7409_v17  ;;  %v1428_v17 = vcombine.low %v5521_v7, %v5522_v8  ;;  %v10618_v7 = vld [vmem:[#allocation43_spill] sm:$0xff]  ;;  %v10619_v8 = vld [vmem:[#allocation44_spill] sm:$0xff] }
  0x7f   :  { %1381 = vmatpush1.bf16.msra.mxu1 %v7407_v16  ;;  %v1427_v16 = vcombine.low %v5519_v5, %v5520_v6  ;;  %v10616_v5 = vld [vmem:[#allocation41_spill] sm:$0xff]  ;;  %v10617_v6 = vld [vmem:[#allocation42_spill] sm:$0xff] }
  0x80   :  { %1382 = vmatprep.subr.bf16.mxu1 %v7413_v21  ;;  %v10589_v21 = vld [vmem:[#allocation14_spill] sm:$0xff] }
  0x81   :  { %1340 = vmatpush1.bf16.msra.mxu0 %v7415_v22  ;;  %v10590_v22 = vld [vmem:[#allocation15_spill] sm:$0xff] }
  0x82   :  { %1341 = vmatprep.subr.bf16.mxu0 %v7421_v24  ;;  %v1435_v24 = vrot.slane %v1425_v14, %v7438_v31  ;;  %v7954_v14 = vld [vmem:[#allocation2 + $0x40] ss:$8 sps:$4 sm:$0xff]  }
  0x83   :  { %1383 = vmatpush1.bf16.msra.mxu1 %v7417_v23  ;;  %v10591_v23 = vld [vmem:[#allocation16_spill] sm:$0xff] }
  0x84   :  { %1384 = vmatprep.subr.bf16.mxu1 %v7427_v27  ;;  %v1442_v27 = vrot.slane %v1426_v15, %v7438_v31  ;;  %v7957_v15 = vld [vmem:[#allocation2 + $0x34] ss:$8 sps:$4 sm:$0xff]  }
  0x85   :  { %1342 = vmatpush1.bf16.msra.mxu0 %v7429_v28  ;;  %v1449_v28 = vrot.slane %v1427_v16, %v7438_v31  ;;  %v7960_v16 = vld [vmem:[#allocation2 + $0x130] ss:$8 sps:$4 sm:$0xff]  }
  0x86   :  { %1343 = vmatprep.subr.bf16.mxu0 %v7435_v30  ;;  %v1457_v30 = vcombine.low %v1435_v24, %v1442_v27  ;;  %v7975_v24 = vld [vmem:[#allocation2 + $0x114] ss:$8 sps:$4 sm:$0xff]   ;;  %v7978_v27 = vld [vmem:[#allocation2 + $0x20] ss:$8 sps:$4 sm:$0xff]  }
  0x87   :  { %1385 = vmatpush1.bf16.msra.mxu1 %v7433_v29  ;;  %v1456_v29 = vrot.slane %v1428_v17, %v7438_v31  ;;  %v7963_v17 = vld [vmem:[#allocation2 + $0x124] ss:$8 sps:$4 sm:$0xff]  }
  0x88   :  { %1386 = vmatprep.subr.bf16.mxu1 %v7442_v32 }
  0x89   :  { %1344 = vmatpush1.bf16.msra.mxu0 %v7450_v35  ;;  %v1458_v32 = vcombine.low %v1449_v28, %v1456_v29  ;;  %v10592_v35 = vld [vmem:[#allocation17_spill] sm:$0xff]  ;;  %v7981_v28 = vld [vmem:[#allocation2 + $0x14] ss:$8 sps:$4 sm:$0xff]  }
  0x8a   :  { %1345 = vmatprep.subr.bf16.mxu0 %v7463_v41  ;;  %v1465_v41 = vrot.slane %v1457_v30, %v7438_v31  ;;  %v7984_v29 = vld [vmem:[#allocation2 + $0x110] ss:$8 sps:$4 sm:$0xff]   ;;  %v7987_v30 = vld [vmem:[#allocation2 + $0x104] ss:$8 sps:$4 sm:$0xff]  }
  0x8b   :  { %1387 = vmatpush1.bf16.msra.mxu1 %v7452_v36  ;;  %v10593_v36 = vld [vmem:[#allocation18_spill] sm:$0xff] }
  0x8c   :  { %1388 = vmatprep.subr.bf16.mxu1 %v7465_v42  ;;  %v1472_v42 = vrot.slane %v1458_v32, %v7438_v31  ;;  %v7990_v32 = vld [vmem:[#allocation2 + $0x10] ss:$8 sps:$4 sm:$0xff]  }
  0x8d   :  { %1346 = vmatpush1.bf16.msra.mxu0 %v7508_v18  ;;  %v10594_v18 = vld [vmem:[#allocation19_spill] sm:$0xff] }
  0x8e   :  { %1475 = vmatprep.subr.bf16.mxu0 %v7517_v39  ;;  %v10596_v39 = vld [vmem:[#allocation21_spill] sm:$0xff] }
  0x8f   :  { %1389 = vmatpush1.bf16.msra.mxu1 %v7513_v33  ;;  %v10595_v33 = vld [vmem:[#allocation20_spill] sm:$0xff] }
  0x90   :  { %1364 = vmatmul.mubr.bf16.vlgmr.msra.gmra.mxu0 %v7660_v0  ;;  %1522 = vmatprep.subr.bf16.mxu1 %v7523_v44  ;;  %v10597_v44 = vld [vmem:[#allocation22_spill] sm:$0xff] }
  0x91   :  { %1476 = vmatpush1.bf16.msra.mxu0 %v7531_v50  ;;  %1507 = vmatprep.mubr.bf16.mxu0 %v10569_v25  ;;  %v7862_v50 = vcombine.low %v1465_v41, %v1472_v42  ;;  %v7999_v41 = vld [vmem:[#allocation2 + $0x274] ss:$8 sps:$4 sm:$0xff]   ;;  %v8002_v42 = vld [vmem:[#allocation2] ss:$8 sps:$4 sm:$0xff]  }
  0x92   :  { %1407 = vmatmul.mubr.bf16.vlgmr.msra.gmra.mxu1 %v7528_v48  ;;  %1477 = vmatprep.subr.bf16.mxu0 %v7536_v52  ;;  %v10598_v52 = vld [vmem:[#allocation23_spill] sm:$0xff] }
  0x93   :  { %1523 = vmatpush1.bf16.msra.mxu1 %v7538_v53  ;;  %1554 = vmatprep.mubr.bf16.mxu1 %v10569_v25  ;;  %v10599_v53 = vld [vmem:[#allocation24_spill] sm:$0xff] }
  0x94   :  { %1524 = vmatprep.subr.bf16.mxu1 %v7543_v55  ;;  %v10601_v55 = vld [vmem:[#allocation26_spill] sm:$0xff] }
  0x95   :  { %1478 = vmatpush1.bf16.msra.mxu0 %v7546_v56  ;;  %v10602_v56 = vld [vmem:[#allocation27_spill] sm:$0xff] }
  0x96   :  { %1479 = vmatprep.subr.bf16.mxu0 %v7551_v57  ;;  %v10603_v57 = vld [vmem:[#allocation28_spill] sm:$0xff] }
  0x97   :  { %1525 = vmatpush1.bf16.msra.mxu1 %v7554_v58  ;;  %v10604_v58 = vld [vmem:[#allocation29_spill] sm:$0xff] }
  0x98   :  { %1526 = vmatprep.subr.bf16.mxu1 %v10584_v9  ;;  %v10620_v9 = vld [vmem:[#allocation45_spill] sm:$0xff] }
  0x99   :  { %1480 = vmatpush1.bf16.msra.mxu0 %v10585_v10  ;;  %v7901_v10 = vld [vmem:[#allocation2 + $0x174] ss:$8 sps:$4 sm:$0xff]  }
  0x9a   :  { %1481 = vmatprep.subr.bf16.mxu0 %v10586_v11  ;;  %v7945_v11 = vld [vmem:[#allocation2 + $0x44] ss:$8 sps:$4 sm:$0xff]  }
  0x9b   :  { %1527 = vmatpush1.bf16.msra.mxu1 %v10587_v12  ;;  %v7948_v12 = vld [vmem:[#allocation2 + $0x140] ss:$8 sps:$4 sm:$0xff]  }
  0x9c   :  { %1528 = vmatprep.subr.bf16.mxu1 %v10588_v13  ;;  %v7951_v13 = vld [vmem:[#allocation2 + $0x134] ss:$8 sps:$4 sm:$0xff]  }
  0x9d   :  { %1482 = vmatpush1.bf16.msra.mxu0 %v10589_v21  ;;  %v7966_v21 = vld [vmem:[#allocation2 + $0x30] ss:$8 sps:$4 sm:$0xff]  }
  0x9e   :  { %1483 = vmatprep.subr.bf16.mxu0 %v10590_v22  ;;  %v7969_v22 = vld [vmem:[#allocation2 + $0x24] ss:$8 sps:$4 sm:$0xff]  }
  0x9f   :  { %1529 = vmatpush1.bf16.msra.mxu1 %v10591_v23  ;;  %v7972_v23 = vld [vmem:[#allocation2 + $0x120] ss:$8 sps:$4 sm:$0xff]  }
  0xa0   :  { %1530 = vmatprep.subr.bf16.mxu1 %v7582_v34  ;;  %v10607_v34 = vld [vmem:[#allocation32_spill] sm:$0xff] }
  0xa1   :  { %1484 = vmatpush1.bf16.msra.mxu0 %v7584_v37  ;;  %v10608_v37 = vld [vmem:[#allocation33_spill] sm:$0xff] }
  0xa2   :  { %1485 = vmatprep.subr.bf16.mxu0 %v7586_v38  ;;  %v10609_v38 = vld [vmem:[#allocation34_spill] sm:$0xff] }
  0xa3   :  { %1531 = vmatpush1.bf16.msra.mxu1 %v7589_v40  ;;  %v10610_v40 = vld [vmem:[#allocation35_spill] sm:$0xff] }
  0xa4   :  { %1532 = vmatprep.subr.bf16.mxu1 %v7618_v62  ;;  %v10606_v62 = vld [vmem:[#allocation31_spill] sm:$0xff] }
  0xa5   :  { %1486 = vmatpush1.bf16.msra.mxu0 %v7622_v43  ;;  %v10611_v43 = vld [vmem:[#allocation37_spill] sm:$0xff] }
  0xa6   :  { %1487 = vmatprep.subr.bf16.mxu0 %v7627_v59  ;;  %v10605_v59 = vld [vmem:[#allocation30_spill] sm:$0xff] }
  0xa7   :  { %1533 = vmatpush1.bf16.msra.mxu1 %v10592_v35  ;;  %v7993_v35 = vld [vmem:[#allocation2 + $0x4] ss:$8 sps:$4 sm:$0xff]  }
  0xa8   :  { %1534 = vmatprep.subr.bf16.mxu1 %v10593_v36  ;;  %v7996_v36 = vld [vmem:[#allocation2 + $0x100] ss:$8 sps:$4 sm:$0xff]  }
  0xa9   :  { %1488 = vmatpush1.bf16.msra.mxu0 %v10594_v18 }
  0xaa   :  { %1489 = vmatprep.subr.bf16.mxu0 %v10595_v33  ;;  %v8006_v33 = vld [vmem:[#allocation2 + $0x1f4] ss:$8 sps:$4 sm:$0xff]  }
  0xab   :  { %1535 = vmatpush1.bf16.msra.mxu1 %v10596_v39  ;;  %v8009_v39 = vld [vmem:[#allocation2 + $0x270] ss:$8 sps:$4 sm:$0xff]  }
  0xac   :  { %1536 = vmatprep.subr.bf16.mxu1 %v10597_v44 }
  0xad   :  { %1490 = vmatpush1.bf16.msra.mxu0 %v10598_v52 }
  0xae   :  { %1565 = vmatprep.subr.bf16.mxu0 %v10599_v53  ;;  %v8016_v53 = vld [vmem:[#allocation2 + $0x264] ss:$8 sps:$4 sm:$0xff]  }
  0xaf   :  { %1537 = vmatpush1.bf16.msra.mxu1 %v10600_v54 }
  0xb0   :  { %1508 = vmatmul.mubr.bf16.vlgmr.msra.gmra.mxu0 %v7862_v50  ;;  %1608 = vmatprep.subr.bf16.mxu1 %v10601_v55  ;;  %v8021_v55 = vld [vmem:[#allocation2 + $0x1f0] ss:$8 sps:$4 sm:$0xff]  }
  0xb1   :  { %1566 = vmatpush1.bf16.msra.mxu0 %v10602_v56  ;;  %1597 = vmatprep.mubr.bf16.mxu0 %v10569_v25 }
  0xb2   :  { %1555 = vmatmul.mubr.bf16.vlgmr.msra.gmra.mxu1 %v7660_v0  ;;  %1567 = vmatprep.subr.bf16.mxu0 %v10603_v57 }
  0xb3   :  { %1609 = vmatpush1.bf16.msra.mxu1 %v10604_v58  ;;  %1640 = vmatprep.mubr.bf16.mxu1 %v10569_v25  ;;  %v8027_v58 = vld [vmem:[#allocation2 + $0x1e4] ss:$8 sps:$4 sm:$0xff]  }
  0xb4   :  { %1610 = vmatprep.subr.bf16.mxu1 %v10605_v59  ;;  %v8030_v59 = vld [vmem:[#allocation2 + $0x260] ss:$8 sps:$4 sm:$0xff]  }
  0xb5   :  { %1568 = vmatpush1.bf16.msra.mxu0 %v10606_v62 }
  0xb6   :  { %1569 = vmatprep.subr.bf16.mxu0 %v10607_v34  ;;  %v8033_v34 = vld [vmem:[#allocation2 + $0x254] ss:$8 sps:$4 sm:$0xff]  }
  0xb7   :  { %1611 = vmatpush1.bf16.msra.mxu1 %v10608_v37 }
  0xb8   :  { %1612 = vmatprep.subr.bf16.mxu1 %v10609_v38  ;;  %v8038_v38 = vld [vmem:[#allocation2 + $0x1e0] ss:$8 sps:$4 sm:$0xff]  }
  0xb9   :  { %1570 = vmatpush1.bf16.msra.mxu0 %v10610_v40  ;;  %v5523_v40 = vld [vmem:[%s10308_s0 + $0x20] sm:$0x1] }
  0xba   :  { %1571 = vmatprep.subr.bf16.mxu0 %v10611_v43  ;;  %v5524_v43 = vld [vmem:[%s10308_s0 + $0x21] sm:$0x1] }
  0xbb   :  { %1613 = vmatpush1.bf16.msra.mxu1 %v10612_v1  ;;  %v8047_v1 = vld [vmem:[#allocation2 + $0x1d4] ss:$8 sps:$4 sm:$0xff]  }
  0xbc   :  { %1614 = vmatprep.subr.bf16.mxu1 %v10613_v2  ;;  %10623 = vst [vmem:[#allocation11_spill] sm:$0xff] %v8047_v1  ;;  %v5525_v2 = vld [vmem:[%s10308_s0 + $0x22] sm:$0x1] }
  0xbd   :  { %1572 = vmatpush1.bf16.msra.mxu0 %v10614_v3  ;;  %v5526_v3 = vld [vmem:[%s10308_s0 + $0x23] sm:$0x1] }
  0xbe   :  { %1573 = vmatprep.subr.bf16.mxu0 %v10615_v4  ;;  %v5527_v4 = vld [vmem:[%s10308_s0 + $0x24] sm:$0x1] }
  0xbf   :  { %1615 = vmatpush1.bf16.msra.mxu1 %v10616_v5  ;;  %v8059_v5 = vld [vmem:[#allocation2 + $0x250] ss:$8 sps:$4 sm:$0xff]  }
  0xc0   :  { %1616 = vmatprep.subr.bf16.mxu1 %v10617_v6  ;;  %10624 = vst [vmem:[#allocation12_spill] sm:$0xff] %v8059_v5  ;;  %v5528_v6 = vld [vmem:[%s10308_s0 + $0x25] sm:$0x1] }
  0xc1   :  { %1574 = vmatpush1.bf16.msra.mxu0 %v10618_v7  ;;  %v5529_v7 = vld [vmem:[%s10308_s0 + $0x26] sm:$0x1] }
  0xc2   :  { %1575 = vmatprep.subr.bf16.mxu0 %v10619_v8  ;;  %v5530_v8 = vld [vmem:[%s10308_s0 + $0x27] sm:$0x1] }
  0xc3   :  { %1617 = vmatpush1.bf16.msra.mxu1 %v10620_v9  ;;  %v8071_v9 = vld [vmem:[#allocation2 + $0x244] ss:$8 sps:$4 sm:$0xff]  }
  0xc4   :  { %1618 = vmatprep.subr.bf16.mxu1 %v7724_v26  ;;  %v7933_v26 = vld [vmem:[#allocation2 + $0x54] ss:$8 sps:$4 sm:$0xff]   ;;  %10625 = vst [vmem:[#allocation13_spill] sm:$0xff] %v8071_v9 }
  0xc5   :  { %1576 = vmatpush1.bf16.msra.mxu0 %v7727_v20  ;;  %v7936_v20 = vld [vmem:[#allocation2 + $0x150] ss:$8 sps:$4 sm:$0xff]  }
  0xc6   :  { %1577 = vmatprep.subr.bf16.mxu0 %v7730_v49  ;;  %v7917_v49 = vld [vmem:[#allocation2 + $0x70] ss:$8 sps:$4 sm:$0xff]  }
  0xc7   :  { %1619 = vmatpush1.bf16.msra.mxu1 %v7733_v63  ;;  %v7906_v63 = vld [vmem:[#allocation2 + $0x74] ss:$8 sps:$4 sm:$0xff]  }
  0xc8   :  { %1620 = vmatprep.subr.bf16.mxu1 %v7736_v61  ;;  %v7909_v61 = vld [vmem:[#allocation2 + $0x170] ss:$8 sps:$4 sm:$0xff]  }
  0xc9   :  { %1578 = vmatpush1.bf16.msra.mxu0 %v7739_v51  ;;  %v7939_v51 = vld [vmem:[#allocation2 + $0x144] ss:$8 sps:$4 sm:$0xff]  }
  0xca   :  { %1579 = vmatprep.subr.bf16.mxu0 %v7742_v60  ;;  %v7942_v60 = vld [vmem:[#allocation2 + $0x50] ss:$8 sps:$4 sm:$0xff]  }
  0xcb   :  { %1621 = vmatpush1.bf16.msra.mxu1 %v7745_v45  ;;  %v7927_v45 = vld [vmem:[#allocation2 + $0x154] ss:$8 sps:$4 sm:$0xff]  }
  0xcc   :  { %1622 = vmatprep.subr.bf16.mxu1 %v7748_v19  ;;  %v7914_v19 = vld [vmem:[#allocation2 + $0x164] ss:$8 sps:$4 sm:$0xff]  }
  0xcd   :  { %1580 = vmatpush1.bf16.msra.mxu0 %v7751_v46  ;;  %v7930_v46 = vld [vmem:[#allocation2 + $0x60] ss:$8 sps:$4 sm:$0xff]  }
  0xce   :  { %1663 = vmatprep.subr.bf16.mxu0 %v7901_v10 }
  0xcf   :  { %1623 = vmatpush1.bf16.msra.mxu1 %v7755_v47  ;;  %v7924_v47 = vld [vmem:[#allocation2 + $0x160] ss:$8 sps:$4 sm:$0xff]  }
  0xd0   :  { %1598 = vmatmul.mubr.bf16.vlgmr.msra.gmra.mxu0 %v7528_v48  ;;  %1706 = vmatprep.subr.bf16.mxu1 %v7906_v63  ;;  %v7921_v48 = vld [vmem:[#allocation2 + $0x64] ss:$8 sps:$4 sm:$0xff]  }
  0xd1   :  { %1664 = vmatpush1.bf16.msra.mxu0 %v7909_v61  ;;  %1695 = vmatprep.mubr.bf16.mxu0 %v10569_v25 }
  0xd2   :  { %1641 = vmatmul.mubr.bf16.vlgmr.msra.gmra.mxu1 %v7862_v50  ;;  %1665 = vmatprep.subr.bf16.mxu0 %v7914_v19 }
  0xd3   :  { %1707 = vmatpush1.bf16.msra.mxu1 %v7917_v49  ;;  %1738 = vmatprep.mubr.bf16.mxu1 %v10569_v25 }
  0xd4   :  { %1708 = vmatprep.subr.bf16.mxu1 %v7921_v48 }
  0xd5   :  { %1666 = vmatpush1.bf16.msra.mxu0 %v7924_v47 }
  0xd6   :  { %1667 = vmatprep.subr.bf16.mxu0 %v7927_v45 }
  0xd7   :  { %1709 = vmatpush1.bf16.msra.mxu1 %v7930_v46 }
  0xd8   :  { %1710 = vmatprep.subr.bf16.mxu1 %v7933_v26 }
  0xd9   :  { %1668 = vmatpush1.bf16.msra.mxu0 %v7936_v20 }
  0xda   :  { %1669 = vmatprep.subr.bf16.mxu0 %v7939_v51 }
  0xdb   :  { %1711 = vmatpush1.bf16.msra.mxu1 %v7942_v60 }
  0xdc   :  { %1712 = vmatprep.subr.bf16.mxu1 %v7945_v11 }
  0xdd   :  { %1670 = vmatpush1.bf16.msra.mxu0 %v7948_v12 }
  0xde   :  { %1671 = vmatprep.subr.bf16.mxu0 %v7951_v13 }
  0xdf   :  { %1713 = vmatpush1.bf16.msra.mxu1 %v7954_v14 }
  0xe0   :  { %1714 = vmatprep.subr.bf16.mxu1 %v7957_v15 }
  0xe1   :  { %1672 = vmatpush1.bf16.msra.mxu0 %v7960_v16 }
  0xe2   :  { %1673 = vmatprep.subr.bf16.mxu0 %v7963_v17 }
  0xe3   :  { %1715 = vmatpush1.bf16.msra.mxu1 %v7966_v21 }
  0xe4   :  { %1716 = vmatprep.subr.bf16.mxu1 %v7969_v22 }
  0xe5   :  { %1674 = vmatpush1.bf16.msra.mxu0 %v7972_v23 }
  0xe6   :  { %1675 = vmatprep.subr.bf16.mxu0 %v7975_v24 }
  0xe7   :  { %1717 = vmatpush1.bf16.msra.mxu1 %v7978_v27 }
  0xe8   :  { %1718 = vmatprep.subr.bf16.mxu1 %v7981_v28 }
  0xe9   :  { %1676 = vmatpush1.bf16.msra.mxu0 %v7984_v29 }
  0xea   :  { %1677 = vmatprep.subr.bf16.mxu0 %v7987_v30 }
  0xeb   :  { %1719 = vmatpush1.bf16.msra.mxu1 %v7990_v32 }
  0xec   :  { %1720 = vmatprep.subr.bf16.mxu1 %v7993_v35 }
  0xed   :  { %1678 = vmatpush1.bf16.msra.mxu0 %v7996_v36 }
  0xee   :  { %1807 = vmatprep.subr.bf16.mxu0 %v7999_v41 }
  0xef   :  { %1721 = vmatpush1.bf16.msra.mxu1 %v8002_v42 }
  0xf0   :  { %v579_v18 = vpop.f32.mrf.mxu0  ;;  %1696 = vmatmul.mubr.bf16.vlgmr.msra.gmra.mxu0 %v7862_v50  ;;  %1854 = vmatprep.subr.bf16.mxu1 %v8006_v33  ;;  %v760_v44 = vpop.f32.mrf.mxu1 }
  0xf1   :  { %1808 = vmatpush1.bf16.msra.mxu0 %v8009_v39  ;;  %1839 = vmatprep.mubr.bf16.mxu0 %v10569_v25  ;;  %v8019_v54 = vadd.f32 %v760_v44, %v579_v18  ;;  %v8074_v18 = vld [vmem:[#allocation2 + $0x1d0] ss:$8 sps:$4 sm:$0xff]   ;;  %v8077_v44 = vld [vmem:[#allocation2 + $0x1c4] ss:$8 sps:$4 sm:$0xff]  }
  0xf2   :  { %1739 = vmatmul.mubr.bf16.vlgmr.msra.gmra.mxu1 %v7660_v0  ;;  %v8014_v52 = vpop.f32.mrf.mxu0  ;;  %1809 = vmatprep.subr.bf16.mxu0 %v8016_v53  ;;  %v8025_v56 = vpop.f32.mrf.mxu1  ;;  %10626 = vst [vmem:[#allocation14_spill] sm:$0xff] %v8074_v18 }
  0xf3   :  { %10621 = vst [vmem:[#allocation9_spill] sm:$0xff] %v8014_v52  ;;  %1855 = vmatpush1.bf16.msra.mxu1 %v8021_v55  ;;  %1886 = vmatprep.mubr.bf16.mxu1 %v10569_v25  ;;  %10622 = vst [vmem:[#allocation10_spill] sm:$0xff] %v8025_v56  ;;  %v1759_v56 = vcombine.low %v5527_v4, %v5528_v6  ;;  %v1760_v52 = vcombine.low %v5529_v7, %v5530_v8  ;;  %v8096_v4 = vld [vmem:[#allocation2 + $0x230] ss:$8 sps:$4 sm:$0xff]   ;;  %v8099_v6 = vld [vmem:[#allocation2 + $0x224] ss:$8 sps:$4 sm:$0xff]  }
  0xf4   :  { %v583_v57 = vpop.f32.mrf.mxu0  ;;  %1856 = vmatprep.subr.bf16.mxu1 %v8027_v58  ;;  %v764_v62 = vpop.f32.mrf.mxu1  ;;  %10627 = vst [vmem:[#allocation15_spill] sm:$0xff] %v8096_v4  ;;  %10628 = vst [vmem:[#allocation16_spill] sm:$0xff] %v8099_v6  ;;  %v8102_v7 = vld [vmem:[#allocation2 + $0x1b0] ss:$8 sps:$4 sm:$0xff]   ;;  %v8105_v8 = vld [vmem:[#allocation2 + $0x1a4] ss:$8 sps:$4 sm:$0xff]  }
  0xf5   :  { %1810 = vmatpush1.bf16.msra.mxu0 %v8030_v59  ;;  %v8036_v37 = vadd.f32 %v764_v62, %v583_v57  ;;  %v1757_v57 = vcombine.low %v5523_v40, %v5524_v43  ;;  %v1758_v62 = vcombine.low %v5525_v2, %v5526_v3  ;;  %v1781_v2 = vrot.slane %v1759_v56, %v7438_v31 }
  0xf6   :  { %1811 = vmatprep.subr.bf16.mxu0 %v8033_v34  ;;  %v1788_v3 = vrot.slane %v1760_v52, %v7438_v31  ;;  %10629 = vst [vmem:[#allocation17_spill] sm:$0xff] %v8105_v8  ;;  %v8111_v52 = vld [vmem:[#allocation2 + $0x214] ss:$8 sps:$4 sm:$0xff]  }
  0xf7   :  { %1857 = vmatpush1.bf16.msra.mxu1 %v8038_v38  ;;  %v1767_v40 = vrot.slane %v1757_v57, %v7438_v31  ;;  %v1774_v43 = vrot.slane %v1758_v62, %v7438_v31  ;;  %v8108_v62 = vld [vmem:[#allocation2 + $0x220] ss:$8 sps:$4 sm:$0xff]  }
  0xf8   :  { %1858 = vmatprep.subr.bf16.mxu1 %v8047_v1  ;;  %v8083_v1 = vld [vmem:[#allocation2 + $0x234] ss:$8 sps:$4 sm:$0xff]   ;;  %v1790_v56 = vcombine.low %v1781_v2, %v1788_v3  ;;  %v8125_v2 = vld [vmem:[#allocation2 + $0x204] ss:$8 sps:$4 sm:$0xff]   ;;  %v8128_v3 = vld [vmem:[#allocation2 + $0x190] ss:$8 sps:$4 sm:$0xff]  }
  0xf9   :  { %1812 = vmatpush1.bf16.msra.mxu0 %v8059_v5  ;;  %v8080_v5 = vld [vmem:[#allocation2 + $0x240] ss:$8 sps:$4 sm:$0xff]   ;;  %v1789_v57 = vcombine.low %v1767_v40, %v1774_v43  ;;  %v8122_v43 = vld [vmem:[#allocation2 + $0x210] ss:$8 sps:$4 sm:$0xff]   ;;  %10633 = vst [vmem:[#allocation21_spill] sm:$0xff] %v8125_v2  ;;  %10634 = vst [vmem:[#allocation22_spill] sm:$0xff] %v8128_v3 }
  0xfa   :  { %1813 = vmatprep.subr.bf16.mxu0 %v8071_v9  ;;  %v8086_v9 = vld [vmem:[#allocation2 + $0x1c0] ss:$8 sps:$4 sm:$0xff]   ;;  %v1804_v40 = vrot.slane %v1790_v56, %v7438_v31  ;;  %10632 = vst [vmem:[#allocation20_spill] sm:$0xff] %v8122_v43  ;;  %v8139_v56 = vpop.f32.mrf.mxu0 }
  0xfb   :  { %1859 = vmatpush1.bf16.msra.mxu1 %v8074_v18  ;;  %v8089_v18 = vld [vmem:[#allocation2 + $0x1b4] ss:$8 sps:$4 sm:$0xff]   ;;  %10637 = vst [vmem:[#allocation25_spill] sm:$0xff] %v8139_v56 }
  0xfc   :  { %1860 = vmatprep.subr.bf16.mxu1 %v8077_v44 }
  0xfd   :  { %1814 = vmatpush1.bf16.msra.mxu0 %v8080_v5 }
  0xfe   :  { %1815 = vmatprep.subr.bf16.mxu0 %v8083_v1 }
  0xff   :  { %1861 = vmatpush1.bf16.msra.mxu1 %v8086_v9 }
 0x100   :  { %1862 = vmatprep.subr.bf16.mxu1 %v8089_v18 }
 0x101   :  { %1816 = vmatpush1.bf16.msra.mxu0 %v8096_v4  ;;  %v8114_v4 = vld [vmem:[#allocation2 + $0x1a0] ss:$8 sps:$4 sm:$0xff]  }
 0x102   :  { %1817 = vmatprep.subr.bf16.mxu0 %v8099_v6  ;;  %10630 = vst [vmem:[#allocation18_spill] sm:$0xff] %v8114_v4  ;;  %v8117_v6 = vld [vmem:[#allocation2 + $0x194] ss:$8 sps:$4 sm:$0xff]  }
 0x103   :  { %1863 = vmatpush1.bf16.msra.mxu1 %v8102_v7  ;;  %10631 = vst [vmem:[#allocation19_spill] sm:$0xff] %v8117_v6 }
 0x104   :  { %1864 = vmatprep.subr.bf16.mxu1 %v8105_v8  ;;  %v1797_v8 = vrot.slane %v1789_v57, %v7438_v31  ;;  %v8136_v57 = vld [vmem:[#allocation2 + $0x200] ss:$8 sps:$4 sm:$0xff]  }
 0x105   :  { %1818 = vmatpush1.bf16.msra.mxu0 %v8108_v62  ;;  %10636 = vst [vmem:[#allocation24_spill] sm:$0xff] %v8136_v57 }
 0x106   :  { %1819 = vmatprep.subr.bf16.mxu0 %v8111_v52 }
 0x107   :  { %1865 = vmatpush1.bf16.msra.mxu1 %v8114_v4  ;;  %v8131_v4 = vld [vmem:[#allocation2 + $0x184] ss:$8 sps:$4 sm:$0xff]  }
 0x108   :  { %1866 = vmatprep.subr.bf16.mxu1 %v8117_v6  ;;  %10635 = vst [vmem:[#allocation23_spill] sm:$0xff] %v8131_v4  ;;  %v8134_v6 = vcombine.low %v1797_v8, %v1804_v40  ;;  %v8154_v40 = vld [vmem:[#allocation2 + $0xf0] ss:$8 sps:$4 sm:$0xff]  }
 0x109   :  { %1820 = vmatpush1.bf16.msra.mxu0 %v8122_v43  ;;  %v8141_v43 = vld [vmem:[#allocation2 + $0xf4] ss:$8 sps:$4 sm:$0xff]   ;;  %10641 = vst [vmem:[#allocation29_spill] sm:$0xff] %v8154_v40 }
 0x10a   :  { %1821 = vmatprep.subr.bf16.mxu0 %v8125_v2  ;;  %10638 = vst [vmem:[#allocation26_spill] sm:$0xff] %v8141_v43  ;;  %v8144_v2 = vld [vmem:[#allocation2 + $0x180] ss:$8 sps:$4 sm:$0xff]  }
 0x10b   :  { %1867 = vmatpush1.bf16.msra.mxu1 %v8128_v3  ;;  %10639 = vst [vmem:[#allocation27_spill] sm:$0xff] %v8144_v2 }
 0x10c   :  { %1868 = vmatprep.subr.bf16.mxu1 %v8131_v4  ;;  %v8148_v4 = vld [vmem:[#allocation2 + $0x2f4] ss:$8 sps:$4 sm:$0xff]  }
 0x10d   :  { %1822 = vmatpush1.bf16.msra.mxu0 %v8136_v57  ;;  %10640 = vst [vmem:[#allocation28_spill] sm:$0xff] %v8148_v4  ;;  %v8238_v57 = vld [vmem:[#allocation2 + $0x90] ss:$8 sps:$4 sm:$0xff]  }
 0x10e   :  { %1897 = vmatprep.subr.bf16.mxu0 %v8141_v43  ;;  %v8164_v43 = vld [vmem:[#allocation2 + $0x2f0] ss:$8 sps:$4 sm:$0xff]   ;;  %10668 = vst [vmem:[#allocation56_spill] sm:$0xff] %v8238_v57 }
 0x10f   :  { %1869 = vmatpush1.bf16.msra.mxu1 %v8144_v2  ;;  %v8161_v2 = vld [vmem:[#allocation2 + $0xe4] ss:$8 sps:$4 sm:$0xff]   ;;  %10644 = vst [vmem:[#allocation32_spill] sm:$0xff] %v8164_v43 }
 0x110   :  { %v941_v3 = vpop.f32.mrf.mxu0  ;;  %1840 = vmatmul.mubr.bf16.vlgmr.msra.gmra.mxu0 %v8134_v6  ;;  %1940 = vmatprep.subr.bf16.mxu1 %v8148_v4  ;;  %10643 = vst [vmem:[#allocation31_spill] sm:$0xff] %v8161_v2  ;;  %v8174_v4 = vld [vmem:[#allocation2 + $0xe0] ss:$8 sps:$4 sm:$0xff]  }
 0x111   :  { %v8152_v8 = vadd.f32 %v941_v3, %v8019_v54  ;;  %1898 = vmatpush1.bf16.msra.mxu0 %v8154_v40  ;;  %1929 = vmatprep.mubr.bf16.mxu0 %v10569_v25  ;;  %v8168_v3 = vld [vmem:[#allocation2 + $0x2e4] ss:$8 sps:$4 sm:$0xff]   ;;  %10646 = vst [vmem:[#allocation34_spill] sm:$0xff] %v8174_v4 }
 0x112   :  { %1887 = vmatmul.mubr.bf16.vlgmr.msra.gmra.mxu1 %v7862_v50  ;;  %v8159_v56 = vpop.f32.mrf.mxu0  ;;  %1899 = vmatprep.subr.bf16.mxu0 %v8161_v2  ;;  %10645 = vst [vmem:[#allocation33_spill] sm:$0xff] %v8168_v3  ;;  %v8180_v2 = vld [vmem:[#allocation2 + $0x2e0] ss:$8 sps:$4 sm:$0xff]  }
 0x113   :  { %10642 = vst [vmem:[#allocation30_spill] sm:$0xff] %v8159_v56  ;;  %1941 = vmatpush1.bf16.msra.mxu1 %v8164_v43  ;;  %1972 = vmatprep.mubr.bf16.mxu1 %v10569_v25  ;;  %v8177_v56 = vld [vmem:[#allocation2 + $0xd4] ss:$8 sps:$4 sm:$0xff]   ;;  %10648 = vst [vmem:[#allocation37_spill] sm:$0xff] %v8180_v2 }
 0x114   :  { %v945_v54 = vpop.f32.mrf.mxu0  ;;  %1942 = vmatprep.subr.bf16.mxu1 %v8168_v3  ;;  %10647 = vst [vmem:[#allocation35_spill] sm:$0xff] %v8177_v56  ;;  %v8183_v43 = vld [vmem:[#allocation2 + $0x2d4] ss:$8 sps:$4 sm:$0xff]   ;;  %v8186_v3 = vld [vmem:[#allocation2 + $0xd0] ss:$8 sps:$4 sm:$0xff]  }
 0x115   :  { %v8172_v40 = vadd.f32 %v945_v54, %v8036_v37  ;;  %1900 = vmatpush1.bf16.msra.mxu0 %v8174_v4  ;;  %10649 = vst [vmem:[#allocation36_spill] sm:$0xff] %v8183_v43  ;;  %10650 = vst [vmem:[#allocation38_spill] sm:$0xff] %v8186_v3  ;;  %v8189_v37 = vld [vmem:[#allocation2 + $0xc4] ss:$8 sps:$4 sm:$0xff]   ;;  %v8192_v54 = vld [vmem:[#allocation2 + $0x2d0] ss:$8 sps:$4 sm:$0xff]  }
 0x116   :  { %1901 = vmatprep.subr.bf16.mxu0 %v8177_v56  ;;  %10651 = vst [vmem:[#allocation39_spill] sm:$0xff] %v8189_v37  ;;  %10652 = vst [vmem:[#allocation40_spill] sm:$0xff] %v8192_v54  ;;  %v8195_v56 = vld [vmem:[#allocation2 + $0x2c4] ss:$8 sps:$4 sm:$0xff]  }
 0x117   :  { %1943 = vmatpush1.bf16.msra.mxu1 %v8180_v2  ;;  %10653 = vst [vmem:[#allocation41_spill] sm:$0xff] %v8195_v56  ;;  %v8198_v2 = vld [vmem:[#allocation2 + $0xc0] ss:$8 sps:$4 sm:$0xff]   ;;  %v8215_v4 = vld [vmem:[#allocation2 + $0xa4] ss:$8 sps:$4 sm:$0xff]  }
 0x118   :  { %1944 = vmatprep.subr.bf16.mxu1 %v8183_v43  ;;  %10654 = vst [vmem:[#allocation42_spill] sm:$0xff] %v8198_v2  ;;  %v8201_v43 = vld [vmem:[#allocation2 + $0xb4] ss:$8 sps:$4 sm:$0xff]   ;;  %10660 = vst [vmem:[#allocation48_spill] sm:$0xff] %v8215_v4 }
 0x119   :  { %1902 = vmatpush1.bf16.msra.mxu0 %v8186_v3  ;;  %10655 = vst [vmem:[#allocation43_spill] sm:$0xff] %v8201_v43  ;;  %v8204_v3 = vld [vmem:[#allocation2 + $0x2c0] ss:$8 sps:$4 sm:$0xff]  }
 0x11a   :  { %1903 = vmatprep.subr.bf16.mxu0 %v8189_v37  ;;  %10656 = vst [vmem:[#allocation44_spill] sm:$0xff] %v8204_v3  ;;  %v8207_v37 = vld [vmem:[#allocation2 + $0x2b4] ss:$8 sps:$4 sm:$0xff]  }
 0x11b   :  { %1945 = vmatpush1.bf16.msra.mxu1 %v8192_v54  ;;  %10657 = vst [vmem:[#allocation45_spill] sm:$0xff] %v8207_v37  ;;  %v8210_v54 = vld [vmem:[#allocation2 + $0xb0] ss:$8 sps:$4 sm:$0xff]  }
 0x11c   :  { %1946 = vmatprep.subr.bf16.mxu1 %v8195_v56  ;;  %10658 = vst [vmem:[#allocation46_spill] sm:$0xff] %v8210_v54  ;;  %v8213_v56 = vpop.f32.mrf.mxu1 }
 0x11d   :  { %1904 = vmatpush1.bf16.msra.mxu0 %v8198_v2  ;;  %10659 = vst [vmem:[#allocation47_spill] sm:$0xff] %v8213_v56  ;;  %v8218_v2 = vld [vmem:[#allocation2 + $0x2b0] ss:$8 sps:$4 sm:$0xff]   ;;  %v8230_v56 = vld [vmem:[#allocation2 + $0x2a0] ss:$8 sps:$4 sm:$0xff]  }
 0x11e   :  { %1905 = vmatprep.subr.bf16.mxu0 %v8201_v43  ;;  %10661 = vst [vmem:[#allocation49_spill] sm:$0xff] %v8218_v2  ;;  %v1068_v43 = vpop.f32.mrf.mxu1  ;;  %10665 = vst [vmem:[#allocation53_spill] sm:$0xff] %v8230_v56 }
 0x11f   :  { %1947 = vmatpush1.bf16.msra.mxu1 %v8204_v3  ;;  %v8221_v3 = vld [vmem:[#allocation2 + $0x2a4] ss:$8 sps:$4 sm:$0xff]  }
 0x120   :  { %1948 = vmatprep.subr.bf16.mxu1 %v8207_v37  ;;  %10662 = vst [vmem:[#allocation50_spill] sm:$0xff] %v8221_v3  ;;  %v8224_v37 = vld [vmem:[#allocation2 + $0xa0] ss:$8 sps:$4 sm:$0xff]  }
 0x121   :  { %1906 = vmatpush1.bf16.msra.mxu0 %v8210_v54  ;;  %10663 = vst [vmem:[#allocation51_spill] sm:$0xff] %v8224_v37  ;;  %v8227_v54 = vld [vmem:[#allocation2 + $0x94] ss:$8 sps:$4 sm:$0xff]  }
 0x122   :  { %1907 = vmatprep.subr.bf16.mxu0 %v8215_v4  ;;  %10664 = vst [vmem:[#allocation52_spill] sm:$0xff] %v8227_v54  ;;  %v8233_v4 = vpop.f32.mrf.mxu1 }
 0x123   :  { %1949 = vmatpush1.bf16.msra.mxu1 %v8218_v2  ;;  %10666 = vst [vmem:[#allocation54_spill] sm:$0xff] %v8233_v4  ;;  %v8235_v2 = vld [vmem:[#allocation2 + $0x294] ss:$8 sps:$4 sm:$0xff]   ;;  %v8250_v4 = vld [vmem:[#allocation2 + $0x80] ss:$8 sps:$4 sm:$0xff]  }
 0x124   :  { %1950 = vmatprep.subr.bf16.mxu1 %v8221_v3  ;;  %10667 = vst [vmem:[#allocation55_spill] sm:$0xff] %v8235_v2  ;;  %v8241_v3 = vld [vmem:[#allocation2 + $0x84] ss:$8 sps:$4 sm:$0xff]   ;;  %10672 = vst [vmem:[#allocation60_spill] sm:$0xff] %v8250_v4 }
 0x125   :  { %1908 = vmatpush1.bf16.msra.mxu0 %v8224_v37  ;;  %10669 = vst [vmem:[#allocation57_spill] sm:$0xff] %v8241_v3  ;;  %v8244_v37 = vld [vmem:[#allocation2 + $0x290] ss:$8 sps:$4 sm:$0xff]  }
 0x126   :  { %1909 = vmatprep.subr.bf16.mxu0 %v8227_v54  ;;  %10670 = vst [vmem:[#allocation58_spill] sm:$0xff] %v8244_v37  ;;  %v1072_v54 = vpop.f32.mrf.mxu1 }
 0x127   :  { %1951 = vmatpush1.bf16.msra.mxu1 %v8230_v56  ;;  %v8247_v56 = vld [vmem:[#allocation2 + $0x284] ss:$8 sps:$4 sm:$0xff]  }
 0x128   :  { %1952 = vmatprep.subr.bf16.mxu1 %v8235_v2  ;;  %10671 = vst [vmem:[#allocation59_spill] sm:$0xff] %v8247_v56  ;;  %v8253_v2 = vpop.f32.mrf.mxu0 }
 0x129   :  { %1910 = vmatpush1.bf16.msra.mxu0 %v8238_v57  ;;  %10673 = vst [vmem:[#allocation61_spill] sm:$0xff] %v8253_v2  ;;  %v8256_v57 = vld [vmem:[#allocation2 + $0x280] ss:$8 sps:$4 sm:$0xff]  }
 0x12a   :  { %1911 = vmatprep.subr.bf16.mxu0 %v8241_v3  ;;  %v8259_v3 = vpop.f32.mrf.mxu1 }
 0x12b   :  { %1953 = vmatpush1.bf16.msra.mxu1 %v8244_v37 }
 0x12c   :  { %1954 = vmatprep.subr.bf16.mxu1 %v8247_v56 }
 0x12d   :  { %1912 = vmatpush1.bf16.msra.mxu0 %v8250_v4 }
 0x12e   :  { %1991 = vmatprep.subr.bf16.mxu0 %v7901_v10 }
 0x12f   :  { %1955 = vmatpush1.bf16.msra.mxu1 %v8256_v57 }
 0x130   :  { %v1191_v37 = vpop.f32.mrf.mxu0  ;;  %1930 = vmatmul.mubr.bf16.vlgmr.msra.gmra.mxu0 %v7660_v0  ;;  %2034 = vmatprep.subr.bf16.mxu1 %v7906_v63 }
 0x131   :  { %v1192_v56 = vadd.f32 %v1191_v37, %v1068_v43  ;;  %1992 = vmatpush1.bf16.msra.mxu0 %v7909_v61  ;;  %2023 = vmatprep.mubr.bf16.mxu0 %v10569_v25 }
 0x132   :  { %v1314_v4 = vpop.f32.mrf.mxu1  ;;  %1973 = vmatmul.mubr.bf16.vlgmr.msra.gmra.mxu1 %v8134_v6  ;;  %v8266_v10 = vpop.f32.mrf.mxu0  ;;  %1993 = vmatprep.subr.bf16.mxu0 %v7914_v19 }
 0x133   :  { %v8269_v2 = vadd.f32 %v1314_v4, %v1192_v56  ;;  %2035 = vmatpush1.bf16.msra.mxu1 %v7917_v49  ;;  %2066 = vmatprep.mubr.bf16.mxu1 %v10569_v25 }
 0x134   :  { %v8273_v0 = vpop.f32.mrf.mxu1  ;;  %v1195_v63 = vpop.f32.mrf.mxu0  ;;  %2036 = vmatprep.subr.bf16.mxu1 %v7921_v48  ;;  %v5531_v48 = vld [vmem:[%s10308_s0 + $0x28] sm:$0x1] }
 0x135   :  { %v1327_v61 = vmax.f32 %v8152_v8, %v8269_v2  ;;  %v1196_v43 = vadd.f32 %v1195_v63, %v1072_v54  ;;  %1994 = vmatpush1.bf16.msra.mxu0 %v7924_v47  ;;  %v5532_v47 = vld [vmem:[%s10308_s0 + $0x29] sm:$0x1]  ;;  %v10696_v54 = vld [vmem:[#allocation35_spill] sm:$0xff]  ;;  %v10697_v63 = vld [vmem:[#allocation37_spill] sm:$0xff] }
 0x136   :  { %v1318_v37 = vpop.f32.mrf.mxu1  ;;  %1995 = vmatprep.subr.bf16.mxu0 %v7927_v45  ;;  %v10674_v45 = vld [vmem:[#allocation11_spill] sm:$0xff] }
 0x137   :  { %v8280_v19 = vadd.f32 %v1318_v37, %v1196_v43  ;;  %2037 = vmatpush1.bf16.msra.mxu1 %v7930_v46  ;;  %v5533_v46 = vld [vmem:[%s10308_s0 + $0x2a] sm:$0x1]  ;;  %v10699_v37 = vld [vmem:[#allocation38_spill] sm:$0xff] }
 0x138   :  { %2038 = vmatprep.subr.bf16.mxu1 %v7933_v26  ;;  %v5534_v26 = vld [vmem:[%s10308_s0 + $0x2b] sm:$0x1]  ;;  %v8387_v4 = vpop.f32.mrf.mxu1  ;;  %v6778_v2 = vld [vmem:[%s10311_s3 + $0x70] ss:$8 sps:$4 sm:$0xff]   ;;  %v8497_v8 = vld [vmem:[%s10311_s3 + $0x234] ss:$8 sps:$4 sm:$0xff]  }
 0x139   :  { %v1329_v49 = vmax.f32 %v8172_v40, %v8280_v19  ;;  %1996 = vmatpush1.bf16.msra.mxu0 %v7936_v20  ;;  %v5535_v20 = vld [vmem:[%s10308_s0 + $0x2c] sm:$0x1]  ;;  %v6784_v40 = vld [vmem:[%s10311_s3 + $0x60] ss:$8 sps:$4 sm:$0xff]  }
 0x13a   :  { %1997 = vmatprep.subr.bf16.mxu0 %v7939_v51  ;;  %v10675_v51 = vld [vmem:[#allocation12_spill] sm:$0xff] }
 0x13b   :  { %2039 = vmatpush1.bf16.msra.mxu1 %v7942_v60  ;;  %v5536_v60 = vld [vmem:[%s10308_s0 + $0x2d] sm:$0x1] }
 0x13c   :  { %2040 = vmatprep.subr.bf16.mxu1 %v7945_v11  ;;  %v5537_v11 = vld [vmem:[%s10308_s0 + $0x2e] sm:$0x1] }
 0x13d   :  { %1998 = vmatpush1.bf16.msra.mxu0 %v7948_v12  ;;  %v5538_v12 = vld [vmem:[%s10308_s0 + $0x2f] sm:$0x1] }
 0x13e   :  { %1999 = vmatprep.subr.bf16.mxu0 %v7951_v13  ;;  %v10676_v13 = vld [vmem:[#allocation13_spill] sm:$0xff] }
 0x13f   :  { %2041 = vmatpush1.bf16.msra.mxu1 %v7954_v14  ;;  %v10677_v14 = vld [vmem:[#allocation14_spill] sm:$0xff]  ;;  %10730 = vst [vmem:[#allocation13_spill] sm:$0xff] %v8497_v8  ;;  %v8523_v19 = vld [vmem:[%s10311_s3 + $0x224] ss:$8 sps:$4 sm:$0xff]  }
 0x140   :  { %2042 = vmatprep.subr.bf16.mxu1 %v7957_v15  ;;  %v2085_v15 = vcombine.low %v5531_v48, %v5532_v47  ;;  %v10700_v47 = vld [vmem:[#allocation39_spill] sm:$0xff] }
 0x141   :  { %2000 = vmatpush1.bf16.msra.mxu0 %v7960_v16  ;;  %v2086_v16 = vcombine.low %v5533_v46, %v5534_v26  ;;  %v10702_v46 = vld [vmem:[#allocation41_spill] sm:$0xff]  ;;  %v10703_v26 = vld [vmem:[#allocation42_spill] sm:$0xff] }
 0x142   :  { %2001 = vmatprep.subr.bf16.mxu0 %v7963_v17  ;;  %v2087_v17 = vcombine.low %v5535_v20, %v5536_v60  ;;  %v10705_v60 = vld [vmem:[#allocation44_spill] sm:$0xff] }
 0x143   :  { %2043 = vmatpush1.bf16.msra.mxu1 %v7966_v21  ;;  %v2088_v21 = vcombine.low %v5537_v11, %v5538_v12  ;;  %v10706_v12 = vld [vmem:[#allocation45_spill] sm:$0xff] }
 0x144   :  { %2044 = vmatprep.subr.bf16.mxu1 %v7969_v22  ;;  %v2095_v22 = vrot.slane %v2085_v15, %v7438_v31 }
 0x145   :  { %2002 = vmatpush1.bf16.msra.mxu0 %v7972_v23  ;;  %v2102_v23 = vrot.slane %v2086_v16, %v7438_v31  ;;  %v10708_v16 = vld [vmem:[#allocation48_spill] sm:$0xff] }
 0x146   :  { %2003 = vmatprep.subr.bf16.mxu0 %v7975_v24  ;;  %v2109_v24 = vrot.slane %v2087_v17, %v7438_v31  ;;  %v10709_v17 = vld [vmem:[#allocation49_spill] sm:$0xff] }
 0x147   :  { %2045 = vmatpush1.bf16.msra.mxu1 %v7978_v27  ;;  %v2116_v27 = vrot.slane %v2088_v21, %v7438_v31 }
 0x148   :  { %2046 = vmatprep.subr.bf16.mxu1 %v7981_v28  ;;  %v10678_v28 = vld [vmem:[#allocation15_spill] sm:$0xff] }
 0x149   :  { %2004 = vmatpush1.bf16.msra.mxu0 %v7984_v29  ;;  %v10679_v29 = vld [vmem:[#allocation16_spill] sm:$0xff]  ;;  %10732 = vst [vmem:[#allocation15_spill] sm:$0xff] %v8523_v19 }
 0x14a   :  { %2005 = vmatprep.subr.bf16.mxu0 %v7987_v30  ;;  %v10680_v30 = vld [vmem:[#allocation17_spill] sm:$0xff] }
 0x14b   :  { %2047 = vmatpush1.bf16.msra.mxu1 %v7990_v32  ;;  %v2117_v32 = vcombine.low %v2095_v22, %v2102_v23  ;;  %v10710_v22 = vld [vmem:[#allocation50_spill] sm:$0xff]  ;;  %v10711_v23 = vld [vmem:[#allocation51_spill] sm:$0xff] }
 0x14c   :  { %2048 = vmatprep.subr.bf16.mxu1 %v7993_v35  ;;  %v2118_v35 = vcombine.low %v2109_v24, %v2116_v27  ;;  %v10712_v27 = vld [vmem:[#allocation52_spill] sm:$0xff] }
 0x14d   :  { %2006 = vmatpush1.bf16.msra.mxu0 %v7996_v36  ;;  %v10681_v36 = vld [vmem:[#allocation18_spill] sm:$0xff] }
 0x14e   :  { %2135 = vmatprep.subr.bf16.mxu0 %v7999_v41  ;;  %v10682_v41 = vld [vmem:[#allocation19_spill] sm:$0xff] }
 0x14f   :  { %2049 = vmatpush1.bf16.msra.mxu1 %v8002_v42  ;;  %v2125_v42 = vrot.slane %v2117_v32, %v7438_v31  ;;  %v10715_v32 = vld [vmem:[#allocation56_spill] sm:$0xff] }
 0x150   :  { %2024 = vmatmul.mubr.bf16.vlgmr.msra.gmra.mxu0 %v8134_v6  ;;  %2182 = vmatprep.subr.bf16.mxu1 %v8006_v33  ;;  %v2132_v33 = vrot.slane %v2118_v35, %v7438_v31  ;;  %v10691_v31 = vld [vmem:[#allocation29_spill] sm:$0xff] }
 0x151   :  { %2136 = vmatpush1.bf16.msra.mxu0 %v8009_v39  ;;  %2167 = vmatprep.mubr.bf16.mxu0 %v10569_v25  ;;  %v10683_v39 = vld [vmem:[#allocation20_spill] sm:$0xff] }
 0x152   :  { %2067 = vmatmul.mubr.bf16.vlgmr.msra.gmra.mxu1 %v7862_v50  ;;  %2137 = vmatprep.subr.bf16.mxu0 %v8016_v53  ;;  %v10684_v53 = vld [vmem:[#allocation21_spill] sm:$0xff]  ;;  %v1408_v56 = vpop.f32.mrf.mxu1 }
 0x153   :  { %2183 = vmatpush1.bf16.msra.mxu1 %v8021_v55  ;;  %2214 = vmatprep.mubr.bf16.mxu1 %v10569_v25  ;;  %v10685_v55 = vld [vmem:[#allocation22_spill] sm:$0xff] }
 0x154   :  { %2184 = vmatprep.subr.bf16.mxu1 %v8027_v58  ;;  %v10686_v58 = vld [vmem:[#allocation23_spill] sm:$0xff]  ;;  %v1410_v48 = vpop.f32.mrf.mxu1 }
 0x155   :  { %2138 = vmatpush1.bf16.msra.mxu0 %v8030_v59  ;;  %v8372_v59 = vcombine.low %v2125_v42, %v2132_v33  ;;  %v10717_v42 = vld [vmem:[#allocation58_spill] sm:$0xff] }
 0x156   :  { %2139 = vmatprep.subr.bf16.mxu0 %v8033_v34  ;;  %v10687_v34 = vld [vmem:[#allocation24_spill] sm:$0xff]  ;;  %v1412_v20 = vpop.f32.mrf.mxu1 }
 0x157   :  { %2185 = vmatpush1.bf16.msra.mxu1 %v8038_v38  ;;  %v10688_v38 = vld [vmem:[#allocation26_spill] sm:$0xff] }
 0x158   :  { %2186 = vmatprep.subr.bf16.mxu1 %v10674_v45 }
 0x159   :  { %2140 = vmatpush1.bf16.msra.mxu0 %v10675_v51  ;;  %v10704_v51 = vld [vmem:[#allocation43_spill] sm:$0xff] }
 0x15a   :  { %2141 = vmatprep.subr.bf16.mxu0 %v10676_v13  ;;  %v10707_v13 = vld [vmem:[#allocation46_spill] sm:$0xff] }
 0x15b   :  { %2187 = vmatpush1.bf16.msra.mxu1 %v10677_v14  ;;  %v8405_v14 = vpop.f32.mrf.mxu1 }
 0x15c   :  { %2188 = vmatprep.subr.bf16.mxu1 %v8077_v44  ;;  %v10693_v44 = vld [vmem:[#allocation32_spill] sm:$0xff] }
 0x15d   :  { %2142 = vmatpush1.bf16.msra.mxu0 %v8080_v5  ;;  %v10690_v5 = vld [vmem:[#allocation28_spill] sm:$0xff] }
 0x15e   :  { %2143 = vmatprep.subr.bf16.mxu0 %v8083_v1  ;;  %v10689_v1 = vld [vmem:[#allocation27_spill] sm:$0xff] }
 0x15f   :  { %2189 = vmatpush1.bf16.msra.mxu1 %v8086_v9  ;;  %v8381_v9 = vpop.f32.mrf.mxu0 }
 0x160   :  { %2190 = vmatprep.subr.bf16.mxu1 %v8089_v18  ;;  %v10692_v18 = vld [vmem:[#allocation31_spill] sm:$0xff] }
 0x161   :  { %2144 = vmatpush1.bf16.msra.mxu0 %v10678_v28  ;;  %v10713_v28 = vld [vmem:[#allocation53_spill] sm:$0xff] }
 0x162   :  { %2145 = vmatprep.subr.bf16.mxu0 %v10679_v29 }
 0x163   :  { %2191 = vmatpush1.bf16.msra.mxu1 %v8102_v7  ;;  %v1365_v7 = vpop.f32.mrf.mxu0 }
 0x164   :  { %2192 = vmatprep.subr.bf16.mxu1 %v10680_v30  ;;  %v10714_v30 = vld [vmem:[#allocation55_spill] sm:$0xff] }
 0x165   :  { %2146 = vmatpush1.bf16.msra.mxu0 %v8108_v62  ;;  %v10694_v62 = vld [vmem:[#allocation33_spill] sm:$0xff]  ;;  %v1367_v43 = vpop.f32.mrf.mxu0 }
 0x166   :  { %2147 = vmatprep.subr.bf16.mxu0 %v8111_v52  ;;  %v10695_v52 = vld [vmem:[#allocation34_spill] sm:$0xff] }
 0x167   :  { %2193 = vmatpush1.bf16.msra.mxu1 %v10681_v36  ;;  %v1369_v45 = vpop.f32.mrf.mxu0  ;;  %v10716_v36 = vld [vmem:[#allocation57_spill] sm:$0xff] }
 0x168   :  { %2194 = vmatprep.subr.bf16.mxu1 %v10682_v41  ;;  %v6729_v41 = vld [vmem:[%s10311_s3 + $0x274] ss:$8 sps:$4 sm:$0xff]  }
 0x169   :  { %2148 = vmatpush1.bf16.msra.mxu0 %v10683_v39  ;;  %v8401_v11 = vpop.f32.mrf.mxu0  ;;  %v10718_v39 = vld [vmem:[#allocation59_spill] sm:$0xff] }
 0x16a   :  { %2149 = vmatprep.subr.bf16.mxu0 %v10684_v53  ;;  %v10719_v53 = vld [vmem:[#allocation60_spill] sm:$0xff] }
 0x16b   :  { %2195 = vmatpush1.bf16.msra.mxu1 %v10685_v55  ;;  %v6727_v55 = vld [vmem:[%s10311_s3 + $0x270] ss:$8 sps:$4 sm:$0xff]  }
 0x16c   :  { %2196 = vmatprep.subr.bf16.mxu1 %v10686_v58  ;;  %v10720_v58 = vld [vmem:[#allocation54_spill] sm:$0xff] }
 0x16d   :  { %2150 = vmatpush1.bf16.msra.mxu0 %v10687_v34  ;;  %v1194_v34 = vadd.f32 %v8266_v10, %v10720_v58  ;;  %v1409_v10 = vadd.f32 %v1408_v56, %v1365_v7 }
 0x16e   :  { %2225 = vmatprep.subr.bf16.mxu0 %v10688_v38 }
 0x16f   :  { %2197 = vmatpush1.bf16.msra.mxu1 %v10689_v1  ;;  %v6732_v1 = vld [vmem:[%s10311_s3 + $0x264] ss:$8 sps:$4 sm:$0xff]  }
 0x170   :  { %2168 = vmatmul.mubr.bf16.vlgmr.msra.gmra.mxu0 %v8372_v59  ;;  %2268 = vmatprep.subr.bf16.mxu1 %v10690_v5  ;;  %v1509_v15 = vpop.f32.mrf.mxu0 }
 0x171   :  { %2226 = vmatpush1.bf16.msra.mxu0 %v10691_v31  ;;  %2257 = vmatprep.mubr.bf16.mxu0 %v10569_v25 }
 0x172   :  { %2215 = vmatmul.mubr.bf16.vlgmr.msra.gmra.mxu1 %v8134_v6  ;;  %2227 = vmatprep.subr.bf16.mxu0 %v10692_v18  ;;  %v10698_v6 = vld [vmem:[#allocation36_spill] sm:$0xff]  ;;  %v1556_v21 = vpop.f32.mrf.mxu1  ;;  %v1511_v24 = vpop.f32.mrf.mxu0 }
 0x173   :  { %2269 = vmatpush1.bf16.msra.mxu1 %v10693_v44  ;;  %2300 = vmatprep.mubr.bf16.mxu1 %v10569_v25  ;;  %v10701_v25 = vld [vmem:[#allocation40_spill] sm:$0xff] }
 0x174   :  { %2270 = vmatprep.subr.bf16.mxu1 %v10694_v62  ;;  %v1558_v29 = vpop.f32.mrf.mxu1  ;;  %v1513_v35 = vpop.f32.mrf.mxu0  ;;  %v10721_v18 = vld [vmem:[#allocation8_spill] sm:$0xff] }
 0x175   :  { %2228 = vmatpush1.bf16.msra.mxu0 %v10695_v52  ;;  %v10408_v44 = vsub.s32 0, %v10721_v18  ;;  %v10407_v62 = vsub.s32 1, %v10721_v18  ;;  %v10722_v52 = vld [vmem:[#allocation9_spill] sm:$0xff] }
 0x176   :  { %2229 = vmatprep.subr.bf16.mxu0 %v10696_v54  ;;  %v1560_v33 = vpop.f32.mrf.mxu1  ;;  %v1515_v38 = vpop.f32.mrf.mxu0  ;;  %v10723_v54 = vld [vmem:[#allocation10_spill] sm:$0xff] }
 0x177   :  { %2271 = vmatpush1.bf16.msra.mxu1 %v10697_v63  ;;  %v763_v63 = vadd.f32 %v10723_v54, %v10722_v52  ;;  %v6786_v52 = vld [vmem:[%s10311_s3 + $0x64] ss:$8 sps:$4 sm:$0xff]   ;;  %v8837_v18 = vld [vmem:[%s10311_s3 + $0xb0] ss:$8 sps:$4 sm:$0xff]  }
 0x178   :  { %2272 = vmatprep.subr.bf16.mxu1 %v10698_v6  ;;  %v1562_v5 = vpop.f32.mrf.mxu1  ;;  %10784 = vst [vmem:[#allocation65_spill] sm:$0xff] %v8837_v18 }
 0x179   :  { %2230 = vmatpush1.bf16.msra.mxu0 %v10699_v37  ;;  %v405_v37 = vld [vmem:[%s10310_s2] sm:$0x3] }
 0x17a   :  { %2231 = vmatprep.subr.bf16.mxu0 %v10700_v47  ;;  %v10724_v47 = vld [vmem:[#allocation25_spill] sm:$0xff] }
 0x17b   :  { %2273 = vmatpush1.bf16.msra.mxu1 %v10701_v25  ;;  %v10725_v25 = vld [vmem:[#allocation47_spill] sm:$0xff] }
 0x17c   :  { %2274 = vmatprep.subr.bf16.mxu1 %v10702_v46  ;;  %v1324_v46 = vadd.f32 %v8273_v0, %v1194_v34  ;;  %v1413_v0 = vadd.f32 %v1412_v20, %v1369_v45  ;;  %v8488_v34 = vld [vmem:[%s10311_s3 + $0x240] ss:$8 sps:$4 sm:$0xff]  }
 0x17d   :  { %2232 = vmatpush1.bf16.msra.mxu0 %v10703_v26  ;;  %v1198_v26 = vadd.f32 %v8381_v9, %v8259_v3  ;;  %v8458_v3 = vrot.slane %v405_v37, %v10408_v44  ;;  %10729 = vst [vmem:[#allocation12_spill] sm:$0xff] %v8488_v34  ;;  %v8832_v44 = vld [vmem:[%s10311_s3 + $0x440] ss:$8 sps:$4 sm:$0xff]  }
 0x17e   :  { %2233 = vmatprep.subr.bf16.mxu0 %v10704_v51  ;;  %v8453_v51 = vld [vmem:[%s10311_s3 + $0x254] ss:$8 sps:$4 sm:$0xff]   ;;  %10783 = vst [vmem:[#allocation64_spill] sm:$0xff] %v8832_v44 }
 0x17f   :  { %2275 = vmatpush1.bf16.msra.mxu1 %v10705_v60  ;;  %v1411_v60 = vadd.f32 %v1410_v48, %v1367_v43  ;;  %v8468_v48 = vld [vmem:[%s10311_s3 + $0x250] ss:$8 sps:$4 sm:$0xff]   ;;  %v1326_v20 = vadd.f32 %v8387_v4, %v1198_v26  ;;  %v8530_v26 = vld [vmem:[%s10311_s3 + $0x220] ss:$8 sps:$4 sm:$0xff]  }
 0x180   :  { %2276 = vmatprep.subr.bf16.mxu1 %v10706_v12  ;;  %v1518_v12 = vadd.f32 %v1509_v15, %v1409_v10  ;;  %v1415_v15 = vadd.f32 %v8405_v14, %v8401_v11  ;;  %10733 = vst [vmem:[#allocation16_spill] sm:$0xff] %v8530_v26 }
 0x181   :  { %2234 = vmatpush1.bf16.msra.mxu0 %v10707_v13 }
 0x182   :  { %2235 = vmatprep.subr.bf16.mxu0 %v10708_v16  ;;  %v1521_v11 = vadd.f32 %v1515_v38, %v1415_v15  ;;  %v8597_v15 = vld [vmem:[%s10311_s3 + $0x50] ss:$8 sps:$4 sm:$0xff]  }
 0x183   :  { %2277 = vmatpush1.bf16.msra.mxu1 %v10709_v17  ;;  %v10726_v17 = vld [vmem:[#allocation30_spill] sm:$0xff]  ;;  %10744 = vst [vmem:[#allocation28_spill] sm:$0xff] %v8597_v15 }
 0x184   :  { %2278 = vmatprep.subr.bf16.mxu1 %v10710_v22 }
 0x185   :  { %2236 = vmatpush1.bf16.msra.mxu0 %v10711_v23  ;;  %v1519_v23 = vadd.f32 %v1511_v24, %v1411_v60  ;;  %v8477_v24 = vld [vmem:[%s10311_s3 + $0x244] ss:$8 sps:$4 sm:$0xff]  }
 0x186   :  { %2237 = vmatprep.subr.bf16.mxu0 %v10712_v27  ;;  %10727 = vst [vmem:[#allocation11_spill] sm:$0xff] %v8477_v24 }
 0x187   :  { %2279 = vmatpush1.bf16.msra.mxu1 %v10713_v28 }
 0x188   :  { %2280 = vmatprep.subr.bf16.mxu1 %v10714_v30 }
 0x189   :  { %2238 = vmatpush1.bf16.msra.mxu0 %v10715_v32 }
 0x18a   :  { %2239 = vmatprep.subr.bf16.mxu0 %v10716_v36 }
 0x18b   :  { %2281 = vmatpush1.bf16.msra.mxu1 %v10717_v42 }
 0x18c   :  { %2282 = vmatprep.subr.bf16.mxu1 %v10718_v39 }
 0x18d   :  { %2240 = vmatpush1.bf16.msra.mxu0 %v10719_v53 }
 0x18e   :  { %2552 = vmatprep.subr.bf16.mxu0 %v6729_v41 }
 0x18f   :  { %2283 = vmatpush1.bf16.msra.mxu1 %v8256_v57  ;;  %v8442_v57 = vld [vmem:[%s10311_s3 + $0x260] ss:$8 sps:$4 sm:$0xff]  }
 0x190   :  { %v1599_v31 = vpop.f32.mrf.mxu0  ;;  %2258 = vmatmul.mubr.bf16.vlgmr.msra.gmra.mxu0 %v7862_v50  ;;  %v767_v50 = vadd.f32 %v10725_v25, %v10724_v47 }
 0x191   :  { %v1600_v6 = vadd.f32 %v1599_v31, %v1556_v21  ;;  %2553 = vmatpush1.bf16.msra.mxu0 %v6727_v55  ;;  %v951_v21 = vadd.f32 %v10726_v17, %v763_v63 }
 0x192   :  { %v1642_v7 = vpop.f32.mrf.mxu1  ;;  %2301 = vmatmul.mubr.bf16.vlgmr.msra.gmra.mxu1 %v8372_v59  ;;  %v1601_v56 = vpop.f32.mrf.mxu0  ;;  %2554 = vmatprep.subr.bf16.mxu0 %v6732_v1  ;;  %v8462_v59 = vrot.slane %v405_v37, %v10407_v62  ;;  %v8826_v62 = vld [vmem:[%s10311_s3 + $0xb4] ss:$8 sps:$4 sm:$0xff]  }
 0x193   :  { %v1651_v13 = vadd.f32 %v1642_v7, %v1600_v6  ;;  %v1602_v16 = vadd.f32 %v1601_v56, %v1558_v29  ;;  %v1328_v45 = vmax.f32 %v951_v21, %v1324_v46  ;;  %v1520_v29 = vadd.f32 %v1513_v35, %v1413_v0  ;;  %v8514_v6 = vld [vmem:[%s10311_s3 + $0x230] ss:$8 sps:$4 sm:$0xff]   ;;  %v8538_v56 = vld [vmem:[%s10311_s3 + $0x214] ss:$8 sps:$4 sm:$0xff]   ;;  %10782 = vst [vmem:[#allocation63_spill] sm:$0xff] %v8826_v62 }
 0x194   :  { %v1644_v9 = vpop.f32.mrf.mxu1  ;;  %v1603_v22 = vpop.f32.mrf.mxu0  ;;  %10731 = vst [vmem:[#allocation14_spill] sm:$0xff] %v8514_v6  ;;  %10734 = vst [vmem:[#allocation17_spill] sm:$0xff] %v8538_v56  ;;  %v8550_v21 = vld [vmem:[%s10311_s3 + $0x210] ss:$8 sps:$4 sm:$0xff]  }
 0x195   :  { %v1655_v27 = vmax.f32 %v1518_v12, %v1651_v13  ;;  %v1652_v28 = vadd.f32 %v1644_v9, %v1602_v16  ;;  %v1604_v43 = vadd.f32 %v1603_v22, %v1560_v33  ;;  %2555 = vmatpush1.bf16.msra.mxu0 %v8442_v57  ;;  %v10728_v33 = vld [vmem:[#allocation61_spill] sm:$0xff]  ;;  %10736 = vst [vmem:[#allocation19_spill] sm:$0xff] %v8550_v21 }
 0x196   :  { %v1646_v30 = vpop.f32.mrf.mxu1  ;;  %v1605_v32 = vpop.f32.mrf.mxu0  ;;  %2556 = vmatprep.subr.bf16.mxu0 %v8453_v51  ;;  %v953_v39 = vadd.f32 %v10728_v33, %v767_v50  ;;  %v8557_v9 = vld [vmem:[%s10311_s3 + $0x204] ss:$8 sps:$4 sm:$0xff]   ;;  %v8644_v33 = vld [vmem:[%s10311_s3 + $0x2c0] ss:$8 sps:$4 sm:$0xff]  }
 0x197   :  { %v1659_v36 = vmax.f32 %v1327_v61, %v1655_v27  ;;  %v1656_v41 = vmax.f32 %v1519_v23, %v1652_v28  ;;  %v1653_v42 = vadd.f32 %v1646_v30, %v1604_v43  ;;  %v1606_v4 = vadd.f32 %v1605_v32, %v1562_v5  ;;  %v6780_v61 = vld [vmem:[%s10311_s3 + $0x74] ss:$8 sps:$4 sm:$0xff]   ;;  %10737 = vst [vmem:[#allocation20_spill] sm:$0xff] %v8557_v9  ;;  %v8565_v23 = vld [vmem:[%s10311_s3 + $0x200] ss:$8 sps:$4 sm:$0xff]  }
 0x198   :  { %v1648_v14 = vpop.f32.mrf.mxu1  ;;  %v1330_v38 = vmax.f32 %v953_v39, %v1326_v20  ;;  %2755 = vmatprep.subr.bf16.mxu1 %v6780_v61  ;;  %10739 = vst [vmem:[#allocation22_spill] sm:$0xff] %v8565_v23  ;;  %v8571_v27 = vld [vmem:[%s10311_s3 + $0x2f4] ss:$8 sps:$4 sm:$0xff]   ;;  %v8577_v28 = vld [vmem:[%s10311_s3 + $0x2f0] ss:$8 sps:$4 sm:$0xff]   ;;  %10752 = vst [vmem:[#allocation36_spill] sm:$0xff] %v8644_v33 }
 0x199   :  { %v2334_v35 = vadd.f32 %v8458_v3, %v1659_v36  ;;  %v1660_v53 = vmax.f32 %v1328_v45, %v1656_v41  ;;  %v1657_v55 = vmax.f32 %v1520_v29, %v1653_v42  ;;  %v1654_v58 = vadd.f32 %v1648_v14, %v1606_v4  ;;  %2557 = vmatpush1.bf16.msra.mxu0 %v8468_v48  ;;  %v8583_v43 = vld [vmem:[%s10311_s3 + $0x2e4] ss:$8 sps:$4 sm:$0xff]   ;;  %v6792_v45 = vld [vmem:[%s10311_s3 + $0x54] ss:$8 sps:$4 sm:$0xff]   ;;  %v8592_v20 = vld [vmem:[%s10311_s3 + $0x2e0] ss:$8 sps:$4 sm:$0xff]  }
 0x19a   :  { %2558 = vmatprep.subr.bf16.mxu0 %v8477_v24  ;;  %2756 = vmatpush1.bf16.msra.mxu1 %v6778_v2  ;;  %10740 = vst [vmem:[#allocation23_spill] sm:$0xff] %v8571_v27  ;;  %10741 = vst [vmem:[#allocation24_spill] sm:$0xff] %v8577_v28  ;;  %v8603_v29 = vld [vmem:[%s10311_s3 + $0x2d4] ss:$8 sps:$4 sm:$0xff]   ;;  %v8609_v30 = vld [vmem:[%s10311_s3 + $0x44] ss:$8 sps:$4 sm:$0xff]  }
 0x19b   :  { %v2335_v1 = vadd.f32 %v8462_v59, %v1660_v53  ;;  %v1661_v5 = vmax.f32 %v1329_v49, %v1657_v55  ;;  %v1658_v31 = vmax.f32 %v1521_v11, %v1654_v58  ;;  %v2338_v54 = vmax.f32 %v2334_v35, 0.0  ;;  %2757 = vmatprep.subr.bf16.mxu1 %v6786_v52  ;;  %10742 = vst [vmem:[#allocation26_spill] sm:$0xff] %v8583_v43  ;;  %v8615_v32 = vld [vmem:[%s10311_s3 + $0x2d0] ss:$8 sps:$4 sm:$0xff]   ;;  %v8620_v36 = vld [vmem:[%s10311_s3 + $0x40] ss:$8 sps:$4 sm:$0xff]  }
 0x19c   :  { %10743 = vst [vmem:[#allocation27_spill] sm:$0xff] %v8592_v20  ;;  %10745 = vst [vmem:[#allocation29_spill] sm:$0xff] %v8603_v29  ;;  %v8626_v41 = vld [vmem:[%s10311_s3 + $0x2c4] ss:$8 sps:$4 sm:$0xff]   ;;  %v8633_v42 = vld [vmem:[%s10311_s3 + $0x30] ss:$8 sps:$4 sm:$0xff]  }
 0x19d   :  { %v2336_v63 = vadd.f32 %v8458_v3, %v1661_v5  ;;  %v1662_v10 = vmax.f32 %v1330_v38, %v1658_v31  ;;  %2559 = vmatpush1.bf16.msra.mxu0 %v8488_v34  ;;  %v2339_v49 = vmax.f32 %v2335_v1, 0.0  ;;  %v2378_v25 = vrot.slane %v2338_v54, 2  ;;  %10746 = vst [vmem:[#allocation31_spill] sm:$0xff] %v8609_v30  ;;  %10747 = vst [vmem:[#allocation32_spill] sm:$0xff] %v8615_v32  ;;  %v8638_v4 = vld [vmem:[%s10311_s3 + $0x34] ss:$8 sps:$4 sm:$0xff]  }
 0x19e   :  { %2560 = vmatprep.subr.bf16.mxu0 %v8497_v8  ;;  %2758 = vmatpush1.bf16.msra.mxu1 %v6784_v40  ;;  %10748 = vst [vmem:[#allocation33_spill] sm:$0xff] %v8620_v36  ;;  %10749 = vst [vmem:[#allocation34_spill] sm:$0xff] %v8626_v41  ;;  %v8649_v39 = vld [vmem:[%s10311_s3 + $0x24] ss:$8 sps:$4 sm:$0xff]   ;;  %v8655_v11 = vld [vmem:[%s10311_s3 + $0x2b4] ss:$8 sps:$4 sm:$0xff]  }
 0x19f   :  { %v2340_v37 = vmax.f32 %v2336_v63, 0.0  ;;  %v2337_v47 = vadd.f32 %v8462_v59, %v1662_v10  ;;  %v2381_v60 = vrot.slane %v2339_v49, 2  ;;  %2759 = vmatprep.subr.bf16.mxu1 %v6792_v45  ;;  %10750 = vst [vmem:[#allocation35_spill] sm:$0xff] %v8633_v42  ;;  %10751 = vst [vmem:[#allocation37_spill] sm:$0xff] %v8638_v4  ;;  %v8662_v14 = vld [vmem:[%s10311_s3 + $0x20] ss:$8 sps:$4 sm:$0xff]  }
 0x1a0   :  { %10753 = vst [vmem:[#allocation38_spill] sm:$0xff] %v8649_v39  ;;  %10754 = vst [vmem:[#allocation39_spill] sm:$0xff] %v8655_v11  ;;  %v8668_v35 = vld [vmem:[%s10311_s3 + $0x14] ss:$8 sps:$4 sm:$0xff]   ;;  %v8674_v53 = vld [vmem:[%s10311_s3 + $0x2b0] ss:$8 sps:$4 sm:$0xff]  }
 0x1a1   :  { %v2379_v50 = vrot.slane %v2340_v37, 2  ;;  %v2341_v46 = vmax.f32 %v2337_v47, 0.0  ;;  %2561 = vmatpush1.bf16.msra.mxu0 %v8514_v6  ;;  %v8532_v7 = vpack.c.bf16 %v2340_v37, %v2338_v54  ;;  %10755 = vst [vmem:[#allocation40_spill] sm:$0xff] %v8662_v14  ;;  %10756 = vst [vmem:[#allocation41_spill] sm:$0xff] %v8668_v35  ;;  %v8680_v55 = vld [vmem:[%s10311_s3 + $0x2a4] ss:$8 sps:$4 sm:$0xff]  }
 0x1a2   :  { %2562 = vmatprep.subr.bf16.mxu0 %v8523_v19  ;;  %2760 = vmatpush1.bf16.msra.mxu1 %v8597_v15  ;;  %10757 = vst [vmem:[#allocation42_spill] sm:$0xff] %v8674_v53  ;;  %10758 = vst [vmem:[#allocation43_spill] sm:$0xff] %v8680_v55  ;;  %v8686_v58 = vld [vmem:[%s10311_s3 + $0x10] ss:$8 sps:$4 sm:$0xff]   ;;  %v8692_v2 = vld [vmem:[%s10311_s3 + $0x4] ss:$8 sps:$4 sm:$0xff]  }
 0x1a3   :  { %v2382_v12 = vrot.slane %v2341_v46, 2  ;;  %v8540_v13 = vpack.c.bf16 %v2341_v46, %v2339_v49  ;;  %v2380_v16 = vsel %vm2377_vm0, %v2378_v25, %v2379_v50  ;;  %2761 = vmatprep.subr.bf16.mxu1 %v8609_v30  ;;  %10759 = vst [vmem:[#allocation44_spill] sm:$0xff] %v8686_v58  ;;  %10760 = vst [vmem:[#allocation45_spill] sm:$0xff] %v8692_v2  ;;  %v8698_v61 = vld [vmem:[%s10311_s3 + $0x2a0] ss:$8 sps:$4 sm:$0xff]  }
 0x1a4   :  { %v8543_v17 = vpack.c.bf16 %v2379_v50, %v2380_v16  ;;  %10761 = vst [vmem:[#allocation46_spill] sm:$0xff] %v8698_v61  ;;  %v8704_v38 = vld [vmem:[%s10311_s3 + $0x294] ss:$8 sps:$4 sm:$0xff]   ;;  %v8710_v1 = vld [vmem:[%s10311_s3] ss:$8 sps:$4 sm:$0xff]  }
 0x1a5   :  { %2563 = vmatpush1.bf16.msra.mxu0 %v8530_v26  ;;  %2584 = vmatprep.mubr.bf16.mxu0 %v8540_v13  ;;  %v2383_v0 = vsel %vm2377_vm0, %v2381_v60, %v2382_v12  ;;  %10762 = vst [vmem:[#allocation48_spill] sm:$0xff] %v8704_v38  ;;  %10763 = vst [vmem:[#allocation49_spill] sm:$0xff] %v8710_v1  ;;  %v8716_v5 = vld [vmem:[%s10311_s3 + $0xf4] ss:$8 sps:$4 sm:$0xff]   ;;  %v8722_v31 = vld [vmem:[%s10311_s3 + $0x290] ss:$8 sps:$4 sm:$0xff]  }
 0x1a6   :  { %10735 = vst [vmem:[#allocation18_spill] sm:$0xff] %v8543_v17  ;;  %2564 = vmatprep.subr.bf16.mxu0 %v8538_v56  ;;  %v8559_v22 = vpack.c.bf16 %v2382_v12, %v2383_v0  ;;  %2762 = vmatpush1.bf16.msra.mxu1 %v8620_v36  ;;  %10764 = vst [vmem:[#allocation50_spill] sm:$0xff] %v8716_v5  ;;  %v8728_v52 = vld [vmem:[%s10311_s3 + $0x284] ss:$8 sps:$4 sm:$0xff]   ;;  %v8734_v54 = vld [vmem:[%s10311_s3 + $0xf0] ss:$8 sps:$4 sm:$0xff]  }
 0x1a7   :  { %2763 = vmatprep.subr.bf16.mxu1 %v8638_v4  ;;  %10765 = vst [vmem:[#allocation51_spill] sm:$0xff] %v8722_v31  ;;  %10766 = vst [vmem:[#allocation52_spill] sm:$0xff] %v8728_v52  ;;  %v8740_v63 = vld [vmem:[%s10311_s3 + $0xe4] ss:$8 sps:$4 sm:$0xff]   ;;  %v8746_v10 = vld [vmem:[%s10311_s3 + $0x280] ss:$8 sps:$4 sm:$0xff]  }
 0x1a8   :  { %10738 = vst [vmem:[#allocation21_spill] sm:$0xff] %v8559_v22  ;;  %10767 = vst [vmem:[#allocation53_spill] sm:$0xff] %v8734_v54  ;;  %v8752_v40 = vld [vmem:[%s10311_s3 + $0x474] ss:$8 sps:$4 sm:$0xff]   ;;  %v8758_v49 = vld [vmem:[%s10311_s3 + $0xe0] ss:$8 sps:$4 sm:$0xff]  }
 0x1a9   :  { %2565 = vmatpush1.bf16.msra.mxu0 %v8550_v21  ;;  %10768 = vst [vmem:[#allocation55_spill] sm:$0xff] %v8740_v63  ;;  %10769 = vst [vmem:[#allocation56_spill] sm:$0xff] %v8746_v10  ;;  %v8765_v37 = vld [vmem:[%s10311_s3 + $0x470] ss:$8 sps:$4 sm:$0xff]   ;;  %v8771_v47 = vld [vmem:[%s10311_s3 + $0x464] ss:$8 sps:$4 sm:$0xff]  }
 0x1aa   :  { %2566 = vmatprep.subr.bf16.mxu0 %v8557_v9  ;;  %2764 = vmatpush1.bf16.msra.mxu1 %v8633_v42  ;;  %10770 = vst [vmem:[#allocation57_spill] sm:$0xff] %v8752_v40  ;;  %10771 = vst [vmem:[#allocation58_spill] sm:$0xff] %v8758_v49  ;;  %v8778_v25 = vld [vmem:[%s10311_s3 + $0xd4] ss:$8 sps:$4 sm:$0xff]   ;;  %v8784_v50 = vld [vmem:[%s10311_s3 + $0x460] ss:$8 sps:$4 sm:$0xff]  }
 0x1ab   :  { %2765 = vmatprep.subr.bf16.mxu1 %v8649_v39  ;;  %10772 = vst [vmem:[#allocation59_spill] sm:$0xff] %v8765_v37  ;;  %10773 = vst [vmem:[#allocation60_spill] sm:$0xff] %v8771_v47  ;;  %v8789_v46 = vld [vmem:[%s10311_s3 + $0xd0] ss:$8 sps:$4 sm:$0xff]   ;;  %v8795_v60 = vld [vmem:[%s10311_s3 + $0x454] ss:$8 sps:$4 sm:$0xff]  }
 0x1ac   :  { %10774 = vst [vmem:[#allocation54_spill] sm:$0xff] %v8778_v25  ;;  %10775 = vst [vmem:[#allocation9_spill] sm:$0xff] %v8784_v50  ;;  %v8802_v12 = vld [vmem:[%s10311_s3 + $0xc4] ss:$8 sps:$4 sm:$0xff]   ;;  %v8808_v16 = vld [vmem:[%s10311_s3 + $0x450] ss:$8 sps:$4 sm:$0xff]  }
 0x1ad   :  { %2567 = vmatpush1.bf16.msra.mxu0 %v8565_v23  ;;  %10776 = vst [vmem:[#allocation10_spill] sm:$0xff] %v8789_v46  ;;  %10777 = vst [vmem:[#allocation25_spill] sm:$0xff] %v8795_v60  ;;  %v8813_v0 = vld [vmem:[%s10311_s3 + $0xc0] ss:$8 sps:$4 sm:$0xff]   ;;  %v8819_v45 = vld [vmem:[%s10311_s3 + $0x444] ss:$8 sps:$4 sm:$0xff]  }
 0x1ae   :  { %2568 = vmatprep.subr.bf16.mxu0 %v8571_v27  ;;  %2766 = vmatpush1.bf16.msra.mxu1 %v8662_v14  ;;  %10778 = vst [vmem:[#allocation47_spill] sm:$0xff] %v8802_v12  ;;  %10779 = vst [vmem:[#allocation30_spill] sm:$0xff] %v8808_v16  ;;  %v8843_v17 = vld [vmem:[%s10311_s3 + $0x434] ss:$8 sps:$4 sm:$0xff]  }
 0x1af   :  { %2767 = vmatprep.subr.bf16.mxu1 %v8668_v35  ;;  %10780 = vst [vmem:[#allocation61_spill] sm:$0xff] %v8813_v0  ;;  %10781 = vst [vmem:[#allocation62_spill] sm:$0xff] %v8819_v45 }
 0x1b0   :  { %10785 = vst [vmem:[#allocation66_spill] sm:$0xff] %v8843_v17 }
 0x1b1   :  { %2569 = vmatpush2.bf16.msra.mxu0 %v8577_v28 }
 0x1b2   :  { %2570 = vmatprep.subr.bf16.mxu0 %v8583_v43  ;;  %2768 = vmatpush1.bf16.msra.mxu1 %v8686_v58 }
 0x1b3   :  { %2769 = vmatprep.subr.bf16.mxu1 %v8692_v2  ;;  %v8959_v2 = vld [vmem:[%s10311_s3 + $0x4d4] ss:$8 sps:$4 sm:$0xff]  }
 0x1b4   :  { %10804 = vst [vmem:[#allocation85_spill] sm:$0xff] %v8959_v2 }
 0x1b5   :  { %2571 = vmatpush2.bf16.msra.mxu0 %v8592_v20 }
 0x1b6   :  { %2572 = vmatprep.subr.bf16.mxu0 %v8603_v29  ;;  %2770 = vmatpush1.bf16.msra.mxu1 %v8710_v1  ;;  %v8947_v1 = vld [vmem:[%s10311_s3 + $0x4e4] ss:$8 sps:$4 sm:$0xff]  }
 0x1b7   :  { %2771 = vmatprep.subr.bf16.mxu1 %v8716_v5  ;;  %v8934_v5 = vld [vmem:[%s10311_s3 + $0x4f4] ss:$8 sps:$4 sm:$0xff]   ;;  %10802 = vst [vmem:[#allocation83_spill] sm:$0xff] %v8947_v1 }
 0x1b8   :  { %10800 = vst [vmem:[#allocation81_spill] sm:$0xff] %v8934_v5 }
 0x1b9   :  { %2573 = vmatpush2.bf16.msra.mxu0 %v8615_v32 }
 0x1ba   :  { %2574 = vmatprep.subr.bf16.mxu0 %v8626_v41  ;;  %2772 = vmatpush2.bf16.msra.mxu1 %v8734_v54  ;;  %v8909_v54 = vld [vmem:[%s10311_s3 + $0x410] ss:$8 sps:$4 sm:$0xff]  }
 0x1bb   :  { %2773 = vmatprep.subr.bf16.mxu1 %v8740_v63  ;;  %v8903_v63 = vld [vmem:[%s10311_s3 + $0x84] ss:$8 sps:$4 sm:$0xff]   ;;  %10796 = vst [vmem:[#allocation77_spill] sm:$0xff] %v8909_v54 }
 0x1bc   :  { %10795 = vst [vmem:[#allocation76_spill] sm:$0xff] %v8903_v63 }
 0x1bd   :  { %2575 = vmatpush2.bf16.msra.mxu0 %v8644_v33 }
 0x1be   :  { %2576 = vmatprep.subr.bf16.mxu0 %v8655_v11  ;;  %2774 = vmatpush2.bf16.msra.mxu1 %v8758_v49  ;;  %v8885_v49 = vld [vmem:[%s10311_s3 + $0x90] ss:$8 sps:$4 sm:$0xff]  }
 0x1bf   :  { %2775 = vmatprep.subr.bf16.mxu1 %v8778_v25  ;;  %v8880_v25 = vld [vmem:[%s10311_s3 + $0x420] ss:$8 sps:$4 sm:$0xff]   ;;  %10792 = vst [vmem:[#allocation73_spill] sm:$0xff] %v8885_v49 }
 0x1c0   :  { %10791 = vst [vmem:[#allocation72_spill] sm:$0xff] %v8880_v25 }
 0x1c1   :  { %2577 = vmatpush2.bf16.msra.mxu0 %v8674_v53 }
 0x1c2   :  { %2578 = vmatprep.subr.bf16.mxu0 %v8680_v55  ;;  %2776 = vmatpush2.bf16.msra.mxu1 %v8789_v46  ;;  %v8861_v46 = vld [vmem:[%s10311_s3 + $0xa0] ss:$8 sps:$4 sm:$0xff]  }
 0x1c3   :  { %2777 = vmatprep.subr.bf16.mxu1 %v8802_v12  ;;  %v8856_v12 = vld [vmem:[%s10311_s3 + $0x430] ss:$8 sps:$4 sm:$0xff]   ;;  %10788 = vst [vmem:[#allocation69_spill] sm:$0xff] %v8861_v46 }
 0x1c4   :  { %10787 = vst [vmem:[#allocation68_spill] sm:$0xff] %v8856_v12 }
 0x1c5   :  { %2579 = vmatpush2.bf16.msra.mxu0 %v8698_v61 }
 0x1c6   :  { %2580 = vmatprep.subr.bf16.mxu0 %v8704_v38  ;;  %2778 = vmatpush2.bf16.msra.mxu1 %v8813_v0  ;;  %v8850_v0 = vld [vmem:[%s10311_s3 + $0xa4] ss:$8 sps:$4 sm:$0xff]  }
 0x1c7   :  { %2779 = vmatprep.subr.bf16.mxu1 %v8826_v62  ;;  %10786 = vst [vmem:[#allocation67_spill] sm:$0xff] %v8850_v0  ;;  %v8874_v62 = vld [vmem:[%s10311_s3 + $0x94] ss:$8 sps:$4 sm:$0xff]  }
 0x1c8   :  { %10790 = vst [vmem:[#allocation71_spill] sm:$0xff] %v8874_v62 }
 0x1c9   :  { %2581 = vmatpush2.bf16.msra.mxu0 %v8722_v31 }
 0x1ca   :  { %2582 = vmatprep.subr.bf16.mxu0 %v8728_v52  ;;  %2780 = vmatpush2.bf16.msra.mxu1 %v8837_v18  ;;  %v8867_v18 = vld [vmem:[%s10311_s3 + $0x424] ss:$8 sps:$4 sm:$0xff]  }
 0x1cb   :  { %10789 = vst [vmem:[#allocation70_spill] sm:$0xff] %v8867_v18  ;;  %2781 = vmatprep.subr.bf16.mxu1 %v8850_v0  ;;  %v8898_v0 = vld [vmem:[%s10311_s3 + $0x80] ss:$8 sps:$4 sm:$0xff]  }
 0x1cc   :  { %10794 = vst [vmem:[#allocation75_spill] sm:$0xff] %v8898_v0 }
 0x1cd   :  { %2583 = vmatpush2.bf16.msra.mxu0 %v8746_v10 }
 0x1ce   :  { %2958 = vmatprep.subr.bf16.mxu0 %v8752_v40  ;;  %2782 = vmatpush2.bf16.msra.mxu1 %v8861_v46  ;;  %v8891_v46 = vld [vmem:[%s10311_s3 + $0x414] ss:$8 sps:$4 sm:$0xff]  }
 0x1cf   :  { %10793 = vst [vmem:[#allocation74_spill] sm:$0xff] %v8891_v46  ;;  %2783 = vmatprep.subr.bf16.mxu1 %v8874_v62  ;;  %v8922_v62 = vld [vmem:[%s10311_s3 + $0x374] ss:$8 sps:$4 sm:$0xff]  }
 0x1d0   :  { %2585 = vmatmul.mubr.bf16.vlgmr.msra.gmra.mxu0 %v8532_v7  ;;  %10798 = vst [vmem:[#allocation79_spill] sm:$0xff] %v8922_v62 }
 0x1d1   :  { %2959 = vmatpush1.bf16.msra.mxu0 %v8765_v37 }
 0x1d2   :  { %2960 = vmatprep.subr.bf16.mxu0 %v8771_v47  ;;  %2784 = vmatpush2.bf16.msra.mxu1 %v8885_v49  ;;  %v8916_v49 = vld [vmem:[%s10311_s3 + $0x404] ss:$8 sps:$4 sm:$0xff]  }
 0x1d3   :  { %2785 = vmatprep.subr.bf16.mxu1 %v8903_v63  ;;  %10797 = vst [vmem:[#allocation78_spill] sm:$0xff] %v8916_v49  ;;  %v8928_v63 = vld [vmem:[%s10311_s3 + $0x400] ss:$8 sps:$4 sm:$0xff]  }
 0x1d4   :  { %10799 = vst [vmem:[#allocation80_spill] sm:$0xff] %v8928_v63 }
 0x1d5   :  { %2961 = vmatpush1.bf16.msra.mxu0 %v8784_v50 }
 0x1d6   :  { %2962 = vmatprep.subr.bf16.mxu0 %v8795_v60  ;;  %2786 = vmatpush2.bf16.msra.mxu1 %v8898_v0  ;;  %v8941_v0 = vld [vmem:[%s10311_s3 + $0x4f0] ss:$8 sps:$4 sm:$0xff]  }
 0x1d7   :  { %3165 = vmatprep.subr.bf16.mxu1 %v8922_v62  ;;  %10801 = vst [vmem:[#allocation82_spill] sm:$0xff] %v8941_v0  ;;  %v8953_v62 = vld [vmem:[%s10311_s3 + $0x4e0] ss:$8 sps:$4 sm:$0xff]  }
 0x1d8   :  { %10803 = vst [vmem:[#allocation84_spill] sm:$0xff] %v8953_v62 }
 0x1d9   :  { %2963 = vmatpush1.bf16.msra.mxu0 %v8808_v16 }
 0x1da   :  { %2964 = vmatprep.subr.bf16.mxu0 %v8819_v45 }
 0x1dd   :  { %2965 = vmatpush1.bf16.msra.mxu0 %v8832_v44 }
 0x1de   :  { %2966 = vmatprep.subr.bf16.mxu0 %v8843_v17 }
 0x1e1   :  { %2967 = vmatpush1.bf16.msra.mxu0 %v8856_v12 }
 0x1e2   :  { %2968 = vmatprep.subr.bf16.mxu0 %v8867_v18 }
 0x1e5   :  { %2969 = vmatpush1.bf16.msra.mxu0 %v8880_v25 }
 0x1e6   :  { %2970 = vmatprep.subr.bf16.mxu0 %v8891_v46 }
 0x1e9   :  { %2971 = vmatpush1.bf16.msra.mxu0 %v8909_v54 }
 0x1ea   :  { %2972 = vmatprep.subr.bf16.mxu0 %v8916_v49 }
 0x1ed   :  { %2973 = vmatpush1.bf16.msra.mxu0 %v8928_v63  ;;  %v9031_v63 = vld [vmem:[%s10311_s3 + $0x174] ss:$8 sps:$4 sm:$0xff]  }
 0x1ee   :  { %2974 = vmatprep.subr.bf16.mxu0 %v8934_v5  ;;  %v8965_v5 = vld [vmem:[%s10311_s3 + $0x4d0] ss:$8 sps:$4 sm:$0xff]   ;;  %10816 = vst [vmem:[#allocation97_spill] sm:$0xff] %v9031_v63 }
 0x1ef   :  { %10805 = vst [vmem:[#allocation86_spill] sm:$0xff] %v8965_v5 }
 0x1f1   :  { %2975 = vmatpush2.bf16.msra.mxu0 %v8941_v0  ;;  %v8971_v0 = vld [vmem:[%s10311_s3 + $0x4c4] ss:$8 sps:$4 sm:$0xff]  }
 0x1f2   :  { %2976 = vmatprep.subr.bf16.mxu0 %v8947_v1  ;;  %10806 = vst [vmem:[#allocation87_spill] sm:$0xff] %v8971_v0  ;;  %v8977_v1 = vld [vmem:[%s10311_s3 + $0x4c0] ss:$8 sps:$4 sm:$0xff]  }
 0x1f3   :  { %10807 = vst [vmem:[#allocation88_spill] sm:$0xff] %v8977_v1 }
 0x1f5   :  { %2977 = vmatpush2.bf16.msra.mxu0 %v8953_v62  ;;  %v8983_v62 = vld [vmem:[%s10311_s3 + $0x4b4] ss:$8 sps:$4 sm:$0xff]  }
 0x1f6   :  { %2978 = vmatprep.subr.bf16.mxu0 %v8959_v2  ;;  %10808 = vst [vmem:[#allocation89_spill] sm:$0xff] %v8983_v62  ;;  %v8989_v2 = vld [vmem:[%s10311_s3 + $0x4b0] ss:$8 sps:$4 sm:$0xff]  }
 0x1f7   :  { %10809 = vst [vmem:[#allocation90_spill] sm:$0xff] %v8989_v2 }
 0x1f9   :  { %2979 = vmatpush2.bf16.msra.mxu0 %v8965_v5  ;;  %v8995_v5 = vld [vmem:[%s10311_s3 + $0x4a4] ss:$8 sps:$4 sm:$0xff]  }
 0x1fa   :  { %2980 = vmatprep.subr.bf16.mxu0 %v8971_v0  ;;  %10810 = vst [vmem:[#allocation91_spill] sm:$0xff] %v8995_v5  ;;  %v9001_v0 = vld [vmem:[%s10311_s3 + $0x4a0] ss:$8 sps:$4 sm:$0xff]  }
 0x1fb   :  { %10811 = vst [vmem:[#allocation92_spill] sm:$0xff] %v9001_v0 }
 0x1fd   :  { %2981 = vmatpush2.bf16.msra.mxu0 %v8977_v1  ;;  %v9007_v1 = vld [vmem:[%s10311_s3 + $0x494] ss:$8 sps:$4 sm:$0xff]  }
 0x1fe   :  { %2982 = vmatprep.subr.bf16.mxu0 %v8983_v62  ;;  %10812 = vst [vmem:[#allocation93_spill] sm:$0xff] %v9007_v1  ;;  %v9013_v62 = vld [vmem:[%s10311_s3 + $0x490] ss:$8 sps:$4 sm:$0xff]  }
 0x1ff   :  { %10813 = vst [vmem:[#allocation94_spill] sm:$0xff] %v9013_v62 }
 0x201   :  { %2983 = vmatpush2.bf16.msra.mxu0 %v8989_v2  ;;  %v9019_v2 = vld [vmem:[%s10311_s3 + $0x484] ss:$8 sps:$4 sm:$0xff]  }
 0x202   :  { %2984 = vmatprep.subr.bf16.mxu0 %v8995_v5  ;;  %10814 = vst [vmem:[#allocation95_spill] sm:$0xff] %v9019_v2  ;;  %v9025_v5 = vld [vmem:[%s10311_s3 + $0x480] ss:$8 sps:$4 sm:$0xff]  }
 0x203   :  { %10815 = vst [vmem:[#allocation96_spill] sm:$0xff] %v9025_v5 }
 0x205   :  { %2985 = vmatpush2.bf16.msra.mxu0 %v9001_v0  ;;  %v1697_v0 = vpop.f32.mrf.mxu0 }
 0x206   :  { %2986 = vmatprep.subr.bf16.mxu0 %v9007_v1  ;;  %v1740_v1 = vpop.f32.mrf.mxu1 }
 0x207   :  { %v1699_v58 = vpop.f32.mrf.mxu0  ;;  %v1741_v32 = vadd.f32 %v1740_v1, %v1697_v0  ;;  %v9074_v0 = vld [vmem:[%s10311_s3 + $0x160] ss:$8 sps:$4 sm:$0xff]  }
 0x209   :  { %2987 = vmatpush2.bf16.msra.mxu0 %v9013_v62  ;;  %v1742_v62 = vpop.f32.mrf.mxu1  ;;  %v1701_v49 = vpop.f32.mrf.mxu0 }
 0x20a   :  { %2988 = vmatprep.subr.bf16.mxu0 %v9019_v2  ;;  %v1743_v29 = vadd.f32 %v1742_v62, %v1699_v58 }
 0x20b   :  { %v1744_v35 = vpop.f32.mrf.mxu1  ;;  %v1703_v54 = vpop.f32.mrf.mxu0 }
 0x20c   :  { %v1745_v23 = vadd.f32 %v1744_v35, %v1701_v49 }
 0x20d   :  { %2989 = vmatpush2.bf16.msra.mxu0 %v9025_v5  ;;  %v1746_v14 = vpop.f32.mrf.mxu1  ;;  %v1841_v46 = vpop.f32.mrf.mxu0 }
 0x20e   :  { %3368 = vmatprep.subr.bf16.mxu0 %v9031_v63  ;;  %v1747_v9 = vadd.f32 %v1746_v14, %v1703_v54  ;;  %v1850_v26 = vadd.f32 %v1841_v46, %v1741_v32  ;;  %v9060_v46 = vld [vmem:[%s10311_s3 + $0x164] ss:$8 sps:$4 sm:$0xff]  }
 0x20f   :  { %v1888_v39 = vpop.f32.mrf.mxu1  ;;  %v1843_v25 = vpop.f32.mrf.mxu0 }
 0x210   :  { %v1851_v19 = vadd.f32 %v1843_v25, %v1743_v29 }
 0x211   :  { %v1890_v2 = vpop.f32.mrf.mxu1  ;;  %v1845_v42 = vpop.f32.mrf.mxu0 }
 0x212   :  { %v1852_v1 = vadd.f32 %v1845_v42, %v1745_v23 }
 0x213   :  { %v1892_v18 = vpop.f32.mrf.mxu1  ;;  %v9035_v4 = vpop.f32.mrf.mxu0 }
 0x215   :  { %v1894_v12 = vpop.f32.mrf.mxu1  ;;  %v1931_v36 = vpop.f32.mrf.mxu0 }
 0x216   :  { %v1932_v53 = vadd.f32 %v1931_v36, %v1888_v39 }
 0x217   :  { %v1974_v17 = vpop.f32.mrf.mxu1  ;;  %v1933_v5 = vpop.f32.mrf.mxu0 }
 0x218   :  { %v1934_v33 = vadd.f32 %v1933_v5, %v1890_v2  ;;  %v1983_v20 = vadd.f32 %v1974_v17, %v1932_v53 }
 0x219   :  { %v1976_v30 = vpop.f32.mrf.mxu1  ;;  %v1935_v44 = vpop.f32.mrf.mxu0 }
 0x21a   :  { %v1936_v43 = vadd.f32 %v1935_v44, %v1892_v18  ;;  %v1984_v6 = vadd.f32 %v1976_v30, %v1934_v33  ;;  %v1987_v62 = vmax.f32 %v1850_v26, %v1983_v20  ;;  %v1853_v26 = vadd.f32 %v9035_v4, %v1747_v9 }
 0x21b   :  { %v1978_v63 = vpop.f32.mrf.mxu1  ;;  %v1937_v15 = vpop.f32.mrf.mxu0 }
 0x21c   :  { %v1938_v8 = vadd.f32 %v1937_v15, %v1894_v12  ;;  %v1985_v17 = vadd.f32 %v1978_v63, %v1936_v43  ;;  %v1988_v32 = vmax.f32 %v1851_v19, %v1984_v6  ;;  %v9066_v12 = vld [vmem:[%s10311_s3 + $0x370] ss:$8 sps:$4 sm:$0xff]  }
 0x21d   :  { %v1980_v45 = vpop.f32.mrf.mxu1  ;;  %v2025_v16 = vpop.f32.mrf.mxu0 }
 0x21e   :  { %v1986_v29 = vadd.f32 %v1980_v45, %v1938_v8  ;;  %v9079_v45 = vld [vmem:[%s10311_s3 + $0x364] ss:$8 sps:$4 sm:$0xff]  }
 0x21f   :  { %v2068_v60 = vpop.f32.mrf.mxu1  ;;  %v2027_v50 = vpop.f32.mrf.mxu0 }
 0x220   :  { %v2069_v21 = vadd.f32 %v2068_v60, %v2025_v16  ;;  %v1990_v6 = vmax.f32 %v1853_v26, %v1986_v29  ;;  %v9183_v29 = vld [vmem:[%s10311_s3 + $0x324] ss:$8 sps:$4 sm:$0xff]   ;;  %v9237_v26 = vld [vmem:[%s10311_s3 + $0x1f4] ss:$8 sps:$4 sm:$0xff]  }
 0x221   :  { %v2070_v47 = vpop.f32.mrf.mxu1  ;;  %v2029_v22 = vpop.f32.mrf.mxu0 }
 0x222   :  { %v2071_v36 = vadd.f32 %v2070_v47, %v2027_v50  ;;  %v9047_v47 = vld [vmem:[%s10311_s3 + $0x170] ss:$8 sps:$4 sm:$0xff]   ;;  %v7241_v50 = vld [vmem:[%s10311_s3 + $0x264] ss:$8 sps:$4 sm:$0xff]  }
 0x223   :  { %v2072_v37 = vpop.f32.mrf.mxu1  ;;  %v2031_v40 = vpop.f32.mrf.mxu0 }
 0x224   :  { %v2073_v18 = vadd.f32 %v2072_v37, %v2029_v22 }
 0x225   :  { %v2074_v10 = vpop.f32.mrf.mxu1 }
 0x226   :  { %v2075_v30 = vadd.f32 %v2074_v10, %v2031_v40 }
 0x230   :  { %v2169_v52 = vpop.f32.mrf.mxu0 }
 0x231   :  { %v2178_v39 = vadd.f32 %v2169_v52, %v2069_v21 }
 0x232   :  { %v2216_v31 = vpop.f32.mrf.mxu1  ;;  %v2171_v38 = vpop.f32.mrf.mxu0 }
 0x233   :  { %v2179_v35 = vadd.f32 %v2171_v38, %v2071_v36  ;;  %v9088_v36 = vld [vmem:[%s10311_s3 + $0x154] ss:$8 sps:$4 sm:$0xff]  }
 0x234   :  { %v2218_v61 = vpop.f32.mrf.mxu1  ;;  %v2173_v55 = vpop.f32.mrf.mxu0 }
 0x235   :  { %v2180_v15 = vadd.f32 %v2173_v55, %v2073_v18  ;;  %v9135_v18 = vld [vmem:[%s10311_s3 + $0x344] ss:$8 sps:$4 sm:$0xff]  }
 0x236   :  { %v2220_v11 = vpop.f32.mrf.mxu1  ;;  %v2175_v41 = vpop.f32.mrf.mxu0 }
 0x237   :  { %v2181_v23 = vadd.f32 %v2175_v41, %v2075_v30  ;;  %v9189_v30 = vld [vmem:[%s10311_s3 + $0x114] ss:$8 sps:$4 sm:$0xff]  }
 0x238   :  { %v2222_v28 = vpop.f32.mrf.mxu1 }
 0x250   :  { %v2259_v27 = vpop.f32.mrf.mxu0 }
 0x251   :  { %v2260_v56 = vadd.f32 %v2259_v27, %v2216_v31 }
 0x252   :  { %v2302_v34 = vpop.f32.mrf.mxu1  ;;  %v2261_v24 = vpop.f32.mrf.mxu0 }
 0x253   :  { %v2311_v2 = vadd.f32 %v2302_v34, %v2260_v56  ;;  %v2262_v5 = vadd.f32 %v2261_v24, %v2218_v61  ;;  %v1989_v56 = vmax.f32 %v1852_v1, %v1985_v17  ;;  %v9117_v1 = vld [vmem:[%s10311_s3 + $0x144] ss:$8 sps:$4 sm:$0xff]   ;;  %v9130_v17 = vld [vmem:[%s10311_s3 + $0x140] ss:$8 sps:$4 sm:$0xff]  }
 0x254   :  { %v2304_v44 = vpop.f32.mrf.mxu1  ;;  %v2263_v53 = vpop.f32.mrf.mxu0 }
 0x255   :  { %v2315_v14 = vmax.f32 %v2178_v39, %v2311_v2  ;;  %v2312_v58 = vadd.f32 %v2304_v44, %v2262_v5  ;;  %v2264_v27 = vadd.f32 %v2263_v53, %v2220_v11  ;;  %v9099_v39 = vld [vmem:[%s10311_s3 + $0x360] ss:$8 sps:$4 sm:$0xff]   ;;  %v9106_v2 = vld [vmem:[%s10311_s3 + $0x150] ss:$8 sps:$4 sm:$0xff]   ;;  %v9111_v5 = vld [vmem:[%s10311_s3 + $0x354] ss:$8 sps:$4 sm:$0xff]  }
 0x256   :  { %v2306_v33 = vpop.f32.mrf.mxu1  ;;  %v2265_v31 = vpop.f32.mrf.mxu0  ;;  %v9141_v44 = vld [vmem:[%s10311_s3 + $0x134] ss:$8 sps:$4 sm:$0xff]   ;;  %v9147_v53 = vld [vmem:[%s10311_s3 + $0x340] ss:$8 sps:$4 sm:$0xff]  }
 0x257   :  { %v2319_v54 = vmax.f32 %v1987_v62, %v2315_v14  ;;  %v2316_v21 = vmax.f32 %v2179_v35, %v2312_v58  ;;  %v2313_v34 = vadd.f32 %v2306_v33, %v2264_v27  ;;  %v2266_v24 = vadd.f32 %v2265_v31, %v2222_v28  ;;  %v9123_v62 = vld [vmem:[%s10311_s3 + $0x350] ss:$8 sps:$4 sm:$0xff]   ;;  %v9159_v14 = vld [vmem:[%s10311_s3 + $0x334] ss:$8 sps:$4 sm:$0xff]   ;;  %v9165_v58 = vld [vmem:[%s10311_s3 + $0x124] ss:$8 sps:$4 sm:$0xff]  }
 0x258   :  { %v2308_v22 = vpop.f32.mrf.mxu1  ;;  %v9154_v35 = vld [vmem:[%s10311_s3 + $0x130] ss:$8 sps:$4 sm:$0xff]   ;;  %v9207_v31 = vld [vmem:[%s10311_s3 + $0x314] ss:$8 sps:$4 sm:$0xff]  }
 0x259   :  { %v2320_v43 = vmax.f32 %v1988_v32, %v2316_v21  ;;  %v2317_v20 = vmax.f32 %v2180_v15, %v2313_v34  ;;  %v2314_v42 = vadd.f32 %v2308_v22, %v2266_v24  ;;  %v2342_v11 = vadd.f32 %v8458_v3, %v2319_v54  ;;  %v9171_v27 = vld [vmem:[%s10311_s3 + $0x330] ss:$8 sps:$4 sm:$0xff]   ;;  %v9178_v32 = vld [vmem:[%s10311_s3 + $0x120] ss:$8 sps:$4 sm:$0xff]   ;;  %v9213_v54 = vld [vmem:[%s10311_s3 + $0x104] ss:$8 sps:$4 sm:$0xff]  }
 0x25a   :  { %v9195_v15 = vld [vmem:[%s10311_s3 + $0x320] ss:$8 sps:$4 sm:$0xff]   ;;  %v9202_v33 = vld [vmem:[%s10311_s3 + $0x110] ss:$8 sps:$4 sm:$0xff]   ;;  %v9231_v24 = vld [vmem:[%s10311_s3 + $0x304] ss:$8 sps:$4 sm:$0xff]  }
 0x25b   :  { %v2343_v8 = vadd.f32 %v8462_v59, %v2320_v43  ;;  %v2321_v19 = vmax.f32 %v1989_v56, %v2317_v20  ;;  %v2318_v55 = vmax.f32 %v2181_v23, %v2314_v42  ;;  %v2346_v52 = vmax.f32 %v2342_v11, 0.0  ;;  %v9219_v21 = vld [vmem:[%s10311_s3 + $0x310] ss:$8 sps:$4 sm:$0xff]   ;;  %v9226_v34 = vld [vmem:[%s10311_s3 + $0x100] ss:$8 sps:$4 sm:$0xff]  }
 0x25c   :  { %v9243_v56 = vld [vmem:[%s10311_s3 + $0x300] ss:$8 sps:$4 sm:$0xff]   ;;  %v9250_v22 = vld [vmem:[%s10311_s3 + $0x1f0] ss:$8 sps:$4 sm:$0xff]   ;;  %v9255_v23 = vld [vmem:[%s10311_s3 + $0x3f4] ss:$8 sps:$4 sm:$0xff]  }
 0x25d   :  { %v2344_v61 = vadd.f32 %v8458_v3, %v2321_v19  ;;  %v2322_v38 = vmax.f32 %v1990_v6, %v2318_v55  ;;  %v2347_v28 = vmax.f32 %v2343_v8, 0.0  ;;  %v2355_v10 = vrot.slane %v2346_v52, 6  ;;  %v9261_v43 = vld [vmem:[%s10311_s3 + $0x1e4] ss:$8 sps:$4 sm:$0xff]   ;;  %v9267_v20 = vld [vmem:[%s10311_s3 + $0x3f0] ss:$8 sps:$4 sm:$0xff]  }
 0x25e   :  { %v9274_v42 = vld [vmem:[%s10311_s3 + $0x1e0] ss:$8 sps:$4 sm:$0xff]   ;;  %v9279_v11 = vld [vmem:[%s10311_s3 + $0x3e4] ss:$8 sps:$4 sm:$0xff]   ;;  %v9285_v6 = vld [vmem:[%s10311_s3 + $0x1d4] ss:$8 sps:$4 sm:$0xff]  }
 0x25f   :  { %v2348_v63 = vmax.f32 %v2344_v61, 0.0  ;;  %v2345_v9 = vadd.f32 %v8462_v59, %v2322_v38  ;;  %v2356_v40 = vrot.slane %v2347_v28, 6  ;;  %v9291_v8 = vld [vmem:[%s10311_s3 + $0x3e0] ss:$8 sps:$4 sm:$0xff]   ;;  %v9298_v19 = vld [vmem:[%s10311_s3 + $0x1d0] ss:$8 sps:$4 sm:$0xff]  }
 0x260   :  { %v9303_v55 = vld [vmem:[%s10311_s3 + $0x3d4] ss:$8 sps:$4 sm:$0xff]   ;;  %v9309_v61 = vld [vmem:[%s10311_s3 + $0x1c4] ss:$8 sps:$4 sm:$0xff]   ;;  %v9315_v38 = vld [vmem:[%s10311_s3 + $0x3d0] ss:$8 sps:$4 sm:$0xff]  }
 0x261   :  { %v2357_v4 = vrot.slane %v2348_v63, 6  ;;  %v2349_v41 = vmax.f32 %v2345_v9, 0.0  ;;  %v9049_v3 = vpack.c.bf16 %v2348_v63, %v2346_v52  ;;  %v9322_v52 = vld [vmem:[%s10311_s3 + $0x1c0] ss:$8 sps:$4 sm:$0xff]   ;;  %v9333_v63 = vld [vmem:[%s10311_s3 + $0x1b4] ss:$8 sps:$4 sm:$0xff]  }
 0x262   :  { %v9339_v9 = vld [vmem:[%s10311_s3 + $0x3c0] ss:$8 sps:$4 sm:$0xff]  }
 0x263   :  { %v2359_v49 = vrot.slane %v2349_v41, 6  ;;  %v9042_v37 = vpack.c.bf16 %v2349_v41, %v2347_v28  ;;  %10817 = vst [vmem:[#allocation98_spill] sm:$0xff] %v9049_v3  ;;  %v2358_v25 = vsel %vm2354_vm1, %v2355_v10, %v2357_v4  ;;  %v9327_v28 = vld [vmem:[%s10311_s3 + $0x3c4] ss:$8 sps:$4 sm:$0xff]   ;;  %v9346_v4 = vld [vmem:[%s10311_s3 + $0x1b0] ss:$8 sps:$4 sm:$0xff]  }
 0x264   :  { %v9069_v16 = vpack.c.bf16 %v2358_v25, %v2355_v10  ;;  %v9351_v41 = vld [vmem:[%s10311_s3 + $0x3b4] ss:$8 sps:$4 sm:$0xff]   ;;  %v9357_v10 = vld [vmem:[%s10311_s3 + $0x1a4] ss:$8 sps:$4 sm:$0xff]  }
 0x265   :  { %2990 = vmatprep.mubr.bf16.mxu0 %v9042_v37  ;;  %v2360_v59 = vsel %vm2354_vm1, %v2356_v40, %v2359_v49  ;;  %10820 = vst [vmem:[#allocation99_spill] sm:$0xff] %v9351_v41  ;;  %10821 = vst [vmem:[#allocation100_spill] sm:$0xff] %v9357_v10  ;;  %v9370_v49 = vld [vmem:[%s10311_s3 + $0x1a0] ss:$8 sps:$4 sm:$0xff]   ;;  %v9375_v25 = vld [vmem:[%s10311_s3 + $0x3a4] ss:$8 sps:$4 sm:$0xff]  }
 0x266   :  { %2991 = vmatmul.mubr.bf16.vlgmr.msra.gmra.mxu0 %v9049_v3  ;;  %v5861_v60 = vpack.c.bf16 %v2360_v59, %v2356_v40  ;;  %v9363_v40 = vld [vmem:[%s10311_s3 + $0x3b0] ss:$8 sps:$4 sm:$0xff]   ;;  %10823 = vst [vmem:[#allocation102_spill] sm:$0xff] %v9370_v49  ;;  %10824 = vst [vmem:[#allocation103_spill] sm:$0xff] %v9375_v25  ;;  %v9381_v59 = vld [vmem:[%s10311_s3 + $0x194] ss:$8 sps:$4 sm:$0xff]  }
 0x267   :  { %3369 = vmatpush1.bf16.msra.mxu0 %v9047_v47  ;;  %10822 = vst [vmem:[#allocation101_spill] sm:$0xff] %v9363_v40  ;;  %10825 = vst [vmem:[#allocation104_spill] sm:$0xff] %v9381_v59 }
 0x268   :  { %5862 = vmatprep.mubr.msk.bf16.mxu1 %vm9053_vm4, %v5861_v60  ;;  %5966 = vmatprep.mubr.msk.bf16.mxu0 %vm9053_vm4, %v5861_v60  ;;  %v9387_v60 = vld [vmem:[%s10311_s3 + $0x3a0] ss:$8 sps:$4 sm:$0xff]  }
 0x269   :  { %5866 = vmatmul.mubr.msk.bf16.vlgmr.msra.gmra.mxu1 %vm9053_vm4, %v9069_v16  ;;  %3370 = vmatprep.subr.bf16.mxu0 %v9060_v46 }
 0x26a   :  { %3166 = vmatpush1.bf16.msra.mxu1 %v9066_v12  ;;  %3197 = vmatprep.mubr.bf16.mxu1 %v8540_v13 }
 0x26b   :  { %3371 = vmatpush1.bf16.msra.mxu0 %v9074_v0  ;;  %3167 = vmatprep.subr.bf16.mxu1 %v9079_v45 }
 0x26c   :  { %3372 = vmatprep.subr.bf16.mxu0 %v9088_v36 }
 0x26e   :  { %3168 = vmatpush1.bf16.msra.mxu1 %v9099_v39 }
 0x26f   :  { %3373 = vmatpush1.bf16.msra.mxu0 %v9106_v2  ;;  %3169 = vmatprep.subr.bf16.mxu1 %v9111_v5 }
 0x270   :  { %3374 = vmatprep.subr.bf16.mxu0 %v9117_v1 }
 0x272   :  { %3170 = vmatpush1.bf16.msra.mxu1 %v9123_v62 }
 0x273   :  { %3375 = vmatpush1.bf16.msra.mxu0 %v9130_v17  ;;  %3171 = vmatprep.subr.bf16.mxu1 %v9135_v18 }
 0x274   :  { %3376 = vmatprep.subr.bf16.mxu0 %v9141_v44 }
 0x276   :  { %3172 = vmatpush1.bf16.msra.mxu1 %v9147_v53 }
 0x277   :  { %3377 = vmatpush1.bf16.msra.mxu0 %v9154_v35  ;;  %3173 = vmatprep.subr.bf16.mxu1 %v9159_v14 }
 0x278   :  { %3378 = vmatprep.subr.bf16.mxu0 %v9165_v58 }
 0x27a   :  { %3174 = vmatpush1.bf16.msra.mxu1 %v9171_v27 }
 0x27b   :  { %3379 = vmatpush1.bf16.msra.mxu0 %v9178_v32  ;;  %3175 = vmatprep.subr.bf16.mxu1 %v9183_v29 }
 0x27c   :  { %3380 = vmatprep.subr.bf16.mxu0 %v9189_v30 }
 0x27e   :  { %3176 = vmatpush1.bf16.msra.mxu1 %v9195_v15 }
 0x27f   :  { %3381 = vmatpush1.bf16.msra.mxu0 %v9202_v33  ;;  %3177 = vmatprep.subr.bf16.mxu1 %v9207_v31 }
 0x280   :  { %3382 = vmatprep.subr.bf16.mxu0 %v9213_v54 }
 0x282   :  { %3178 = vmatpush1.bf16.msra.mxu1 %v9219_v21 }
 0x283   :  { %3383 = vmatpush1.bf16.msra.mxu0 %v9226_v34  ;;  %3179 = vmatprep.subr.bf16.mxu1 %v9231_v24 }
 0x284   :  { %3384 = vmatprep.subr.bf16.mxu0 %v9237_v26 }
 0x286   :  { %3180 = vmatpush1.bf16.msra.mxu1 %v9243_v56 }
 0x287   :  { %3385 = vmatpush2.bf16.msra.mxu0 %v9250_v22  ;;  %3181 = vmatprep.subr.bf16.mxu1 %v9255_v23 }
 0x288   :  { %3386 = vmatprep.subr.bf16.mxu0 %v9261_v43 }
 0x28a   :  { %3182 = vmatpush2.bf16.msra.mxu1 %v9267_v20 }
 0x28b   :  { %3387 = vmatpush2.bf16.msra.mxu0 %v9274_v42  ;;  %3183 = vmatprep.subr.bf16.mxu1 %v9279_v11 }
 0x28c   :  { %3388 = vmatprep.subr.bf16.mxu0 %v9285_v6 }
 0x28e   :  { %3184 = vmatpush2.bf16.msra.mxu1 %v9291_v8 }
 0x28f   :  { %3389 = vmatpush2.bf16.msra.mxu0 %v9298_v19  ;;  %3185 = vmatprep.subr.bf16.mxu1 %v9303_v55 }
 0x290   :  { %3390 = vmatprep.subr.bf16.mxu0 %v9309_v61 }
 0x292   :  { %3186 = vmatpush2.bf16.msra.mxu1 %v9315_v38 }
 0x293   :  { %3391 = vmatpush2.bf16.msra.mxu0 %v9322_v52  ;;  %3187 = vmatprep.subr.bf16.mxu1 %v9327_v28 }
 0x294   :  { %3392 = vmatprep.subr.bf16.mxu0 %v9333_v63 }
 0x296   :  { %3188 = vmatpush2.bf16.msra.mxu1 %v9339_v9 }
 0x297   :  { %3393 = vmatpush2.bf16.msra.mxu0 %v9346_v4  ;;  %3189 = vmatprep.subr.bf16.mxu1 %v9351_v41  ;;  %v9399_v41 = vld [vmem:[%s10311_s3 + $0x394] ss:$8 sps:$4 sm:$0xff]  }
 0x298   :  { %3394 = vmatprep.subr.bf16.mxu0 %v9357_v10  ;;  %v9394_v10 = vld [vmem:[%s10311_s3 + $0x190] ss:$8 sps:$4 sm:$0xff]   ;;  %10827 = vst [vmem:[#allocation106_spill] sm:$0xff] %v9399_v41 }
 0x299   :  { %10826 = vst [vmem:[#allocation105_spill] sm:$0xff] %v9394_v10 }
 0x29a   :  { %3190 = vmatpush2.bf16.msra.mxu1 %v9363_v40  ;;  %v9405_v40 = vld [vmem:[%s10311_s3 + $0x184] ss:$8 sps:$4 sm:$0xff]  }
 0x29b   :  { %3395 = vmatpush2.bf16.msra.mxu0 %v9370_v49  ;;  %3191 = vmatprep.subr.bf16.mxu1 %v9375_v25  ;;  %10828 = vst [vmem:[#allocation107_spill] sm:$0xff] %v9405_v40  ;;  %v9411_v25 = vld [vmem:[%s10311_s3 + $0x390] ss:$8 sps:$4 sm:$0xff]   ;;  %v9423_v49 = vld [vmem:[%s10311_s3 + $0x384] ss:$8 sps:$4 sm:$0xff]  }
 0x29c   :  { %3396 = vmatprep.subr.bf16.mxu0 %v9381_v59  ;;  %10829 = vst [vmem:[#allocation108_spill] sm:$0xff] %v9411_v25  ;;  %v9418_v59 = vld [vmem:[%s10311_s3 + $0x180] ss:$8 sps:$4 sm:$0xff]   ;;  %10831 = vst [vmem:[#allocation110_spill] sm:$0xff] %v9423_v49 }
 0x29d   :  { %10830 = vst [vmem:[#allocation109_spill] sm:$0xff] %v9418_v59 }
 0x29e   :  { %3192 = vmatpush2.bf16.msra.mxu1 %v9387_v60 }
 0x29f   :  { %3397 = vmatpush2.bf16.msra.mxu0 %v9394_v10  ;;  %3193 = vmatprep.subr.bf16.mxu1 %v9399_v41  ;;  %v9430_v10 = vld [vmem:[%s10311_s3 + $0x380] ss:$8 sps:$4 sm:$0xff]   ;;  %v7239_v41 = vld [vmem:[%s10311_s3 + $0x274] ss:$8 sps:$4 sm:$0xff]  }
 0x2a0   :  { %3398 = vmatprep.subr.bf16.mxu0 %v9405_v40  ;;  %10832 = vst [vmem:[#allocation111_spill] sm:$0xff] %v9430_v10  ;;  %v9440_v40 = vld [vmem:[%s10311_s3 + $0x574] ss:$8 sps:$4 sm:$0xff]  }
 0x2a1   :  { %10833 = vst [vmem:[#allocation112_spill] sm:$0xff] %v9440_v40 }
 0x2a2   :  { %3194 = vmatpush2.bf16.msra.mxu1 %v9411_v25  ;;  %v10909_v25 = vld [vmem:[#allocation35_spill] sm:$0xff] }
 0x2a3   :  { %3399 = vmatpush2.bf16.msra.mxu0 %v9418_v59  ;;  %3195 = vmatprep.subr.bf16.mxu1 %v9423_v49  ;;  %v9449_v49 = vld [vmem:[%s10311_s3 + $0x570] ss:$8 sps:$4 sm:$0xff]  }
 0x2a4   :  { %3622 = vmatprep.subr.bf16.mxu0 %v7239_v41  ;;  %10834 = vst [vmem:[#allocation113_spill] sm:$0xff] %v9449_v49  ;;  %v7240_v41 = vld [vmem:[%s10311_s3 + $0x270] ss:$8 sps:$4 sm:$0xff]  }
 0x2a5   :  { %v10908_v59 = vld [vmem:[#allocation70_spill] sm:$0xff] }
 0x2a6   :  { %3196 = vmatpush2.bf16.msra.mxu1 %v9430_v10  ;;  %5970 = vmatmul.mubr.msk.bf16.vlgmr.msra.gmra.mxu0 %vm9053_vm4, %v9069_v16  ;;  %v9458_v10 = vld [vmem:[%s10311_s3 + $0x564] ss:$8 sps:$4 sm:$0xff]   ;;  %v9470_v16 = vld [vmem:[%s10311_s3 + $0x560] ss:$8 sps:$4 sm:$0xff]  }
 0x2a7   :  { %3623 = vmatpush1.bf16.msra.mxu0 %v7240_v41  ;;  %3654 = vmatprep.mubr.bf16.mxu0 %v9042_v37  ;;  %10835 = vst [vmem:[#allocation114_spill] sm:$0xff] %v9458_v10  ;;  %10836 = vst [vmem:[#allocation115_spill] sm:$0xff] %v9470_v16  ;;  %v9477_v41 = vld [vmem:[%s10311_s3 + $0x554] ss:$8 sps:$4 sm:$0xff]  }
 0x2a8   :  { %3571 = vmatprep.subr.bf16.mxu1 %v9440_v40  ;;  %3624 = vmatprep.subr.bf16.mxu0 %v7241_v50  ;;  %10837 = vst [vmem:[#allocation116_spill] sm:$0xff] %v9477_v41  ;;  %v9484_v50 = vld [vmem:[%s10311_s3 + $0x550] ss:$8 sps:$4 sm:$0xff]  }
 0x2a9   :  { %3198 = vmatmul.mubr.bf16.vlgmr.msra.gmra.mxu1 %v8532_v7  ;;  %10838 = vst [vmem:[#allocation117_spill] sm:$0xff] %v9484_v50  ;;  %v10905_v40 = vld [vmem:[#allocation33_spill] sm:$0xff] }
 0x2aa   :  { %3572 = vmatpush1.bf16.msra.mxu1 %v9449_v49  ;;  %3603 = vmatprep.mubr.bf16.mxu1 %v9042_v37  ;;  %v10901_v49 = vld [vmem:[#allocation28_spill] sm:$0xff] }
 0x2ab   :  { %3625 = vmatpush1.bf16.msra.mxu0 %v8442_v57  ;;  %3573 = vmatprep.subr.bf16.mxu1 %v9458_v10  ;;  %v9491_v57 = vld [vmem:[%s10311_s3 + $0x544] ss:$8 sps:$4 sm:$0xff]   ;;  %v10840_v10 = vld [vmem:[#allocation11_spill] sm:$0xff] }
 0x2ac   :  { %3626 = vmatprep.subr.bf16.mxu0 %v8453_v51  ;;  %10839 = vst [vmem:[#allocation118_spill] sm:$0xff] %v9491_v57  ;;  %v9498_v51 = vld [vmem:[%s10311_s3 + $0x540] ss:$8 sps:$4 sm:$0xff]  }
 0x2ad   :  { %10841 = vst [vmem:[#allocation11_spill] sm:$0xff] %v9498_v51 }
 0x2ae   :  { %3574 = vmatpush1.bf16.msra.mxu1 %v9470_v16  ;;  %v10842_v16 = vld [vmem:[#allocation12_spill] sm:$0xff] }
 0x2af   :  { %3627 = vmatpush1.bf16.msra.mxu0 %v8468_v48  ;;  %3575 = vmatprep.subr.bf16.mxu1 %v9477_v41  ;;  %v9505_v48 = vld [vmem:[%s10311_s3 + $0x534] ss:$8 sps:$4 sm:$0xff]   ;;  %v10844_v41 = vld [vmem:[#allocation13_spill] sm:$0xff] }
 0x2b0   :  { %3628 = vmatprep.subr.bf16.mxu0 %v10840_v10  ;;  %10843 = vst [vmem:[#allocation12_spill] sm:$0xff] %v9505_v48  ;;  %v9512_v10 = vld [vmem:[%s10311_s3 + $0x530] ss:$8 sps:$4 sm:$0xff]  }
 0x2b1   :  { %10845 = vst [vmem:[#allocation13_spill] sm:$0xff] %v9512_v10 }
 0x2b2   :  { %3576 = vmatpush1.bf16.msra.mxu1 %v9484_v50  ;;  %v10846_v50 = vld [vmem:[#allocation14_spill] sm:$0xff] }
 0x2b3   :  { %3629 = vmatpush1.bf16.msra.mxu0 %v10842_v16  ;;  %3577 = vmatprep.subr.bf16.mxu1 %v9491_v57  ;;  %v9519_v16 = vld [vmem:[%s10311_s3 + $0x524] ss:$8 sps:$4 sm:$0xff]   ;;  %v10848_v57 = vld [vmem:[#allocation15_spill] sm:$0xff] }
 0x2b4   :  { %3630 = vmatprep.subr.bf16.mxu0 %v10844_v41  ;;  %10847 = vst [vmem:[#allocation14_spill] sm:$0xff] %v9519_v16  ;;  %v9526_v41 = vld [vmem:[%s10311_s3 + $0x520] ss:$8 sps:$4 sm:$0xff]  }
 0x2b5   :  { %10849 = vst [vmem:[#allocation15_spill] sm:$0xff] %v9526_v41 }
 0x2b6   :  { %3578 = vmatpush1.bf16.msra.mxu1 %v9498_v51  ;;  %v10850_v51 = vld [vmem:[#allocation16_spill] sm:$0xff] }
 0x2b7   :  { %3631 = vmatpush1.bf16.msra.mxu0 %v10846_v50  ;;  %3579 = vmatprep.subr.bf16.mxu1 %v9505_v48  ;;  %v9533_v50 = vld [vmem:[%s10311_s3 + $0x514] ss:$8 sps:$4 sm:$0xff]   ;;  %v10852_v48 = vld [vmem:[#allocation17_spill] sm:$0xff] }
 0x2b8   :  { %3632 = vmatprep.subr.bf16.mxu0 %v10848_v57  ;;  %10851 = vst [vmem:[#allocation16_spill] sm:$0xff] %v9533_v50  ;;  %v9540_v57 = vld [vmem:[%s10311_s3 + $0x510] ss:$8 sps:$4 sm:$0xff]  }
 0x2b9   :  { %10853 = vst [vmem:[#allocation17_spill] sm:$0xff] %v9540_v57 }
 0x2ba   :  { %3580 = vmatpush1.bf16.msra.mxu1 %v9512_v10  ;;  %v10854_v10 = vld [vmem:[#allocation19_spill] sm:$0xff] }
 0x2bb   :  { %3633 = vmatpush1.bf16.msra.mxu0 %v10850_v51  ;;  %3581 = vmatprep.subr.bf16.mxu1 %v9519_v16  ;;  %v9547_v51 = vld [vmem:[%s10311_s3 + $0x504] ss:$8 sps:$4 sm:$0xff]  }
 0x2bc   :  { %3634 = vmatprep.subr.bf16.mxu0 %v10852_v48  ;;  %10855 = vst [vmem:[#allocation19_spill] sm:$0xff] %v9547_v51  ;;  %v10856_v16 = vld [vmem:[#allocation20_spill] sm:$0xff] }
 0x2bd   :  { %v9554_v48 = vld [vmem:[%s10311_s3 + $0x500] ss:$8 sps:$4 sm:$0xff]  }
 0x2be   :  { %3582 = vmatpush1.bf16.msra.mxu1 %v9526_v41  ;;  %10857 = vst [vmem:[#allocation20_spill] sm:$0xff] %v9554_v48  ;;  %v10858_v41 = vld [vmem:[#allocation22_spill] sm:$0xff] }
 0x2bf   :  { %3635 = vmatpush1.bf16.msra.mxu0 %v10854_v10  ;;  %3583 = vmatprep.subr.bf16.mxu1 %v9533_v50  ;;  %v9561_v10 = vld [vmem:[%s10311_s3 + $0x5f4] ss:$8 sps:$4 sm:$0xff]  }
 0x2c0   :  { %3636 = vmatprep.subr.bf16.mxu0 %v10856_v16  ;;  %10859 = vst [vmem:[#allocation22_spill] sm:$0xff] %v9561_v10  ;;  %v10860_v50 = vld [vmem:[#allocation23_spill] sm:$0xff] }
 0x2c1   :  { %v9568_v16 = vld [vmem:[%s10311_s3 + $0x5f0] ss:$8 sps:$4 sm:$0xff]  }
 0x2c2   :  { %3584 = vmatpush1.bf16.msra.mxu1 %v9540_v57  ;;  %10861 = vst [vmem:[#allocation23_spill] sm:$0xff] %v9568_v16  ;;  %v10862_v57 = vld [vmem:[#allocation24_spill] sm:$0xff] }
 0x2c3   :  { %3637 = vmatpush1.bf16.msra.mxu0 %v10858_v41  ;;  %3585 = vmatprep.subr.bf16.mxu1 %v9547_v51  ;;  %v9575_v41 = vld [vmem:[%s10311_s3 + $0x5e4] ss:$8 sps:$4 sm:$0xff]   ;;  %v10864_v51 = vld [vmem:[#allocation26_spill] sm:$0xff] }
 0x2c4   :  { %3638 = vmatprep.subr.bf16.mxu0 %v10860_v50  ;;  %10863 = vst [vmem:[#allocation24_spill] sm:$0xff] %v9575_v41  ;;  %v9582_v50 = vld [vmem:[%s10311_s3 + $0x5e0] ss:$8 sps:$4 sm:$0xff]  }
 0x2c5   :  { %10865 = vst [vmem:[#allocation26_spill] sm:$0xff] %v9582_v50 }
 0x2c6   :  { %3586 = vmatpush1.bf16.msra.mxu1 %v9554_v48  ;;  %v10866_v48 = vld [vmem:[#allocation27_spill] sm:$0xff] }
 0x2c7   :  { %3639 = vmatpush2.bf16.msra.mxu0 %v10862_v57  ;;  %3587 = vmatprep.subr.bf16.mxu1 %v9561_v10  ;;  %v9589_v57 = vld [vmem:[%s10311_s3 + $0x5d4] ss:$8 sps:$4 sm:$0xff]   ;;  %v10868_v10 = vld [vmem:[#allocation29_spill] sm:$0xff] }
 0x2c8   :  { %3640 = vmatprep.subr.bf16.mxu0 %v10864_v51  ;;  %10867 = vst [vmem:[#allocation27_spill] sm:$0xff] %v9589_v57  ;;  %v9596_v51 = vld [vmem:[%s10311_s3 + $0x5d0] ss:$8 sps:$4 sm:$0xff]  }
 0x2c9   :  { %10869 = vst [vmem:[#allocation29_spill] sm:$0xff] %v9596_v51 }
 0x2ca   :  { %3588 = vmatpush2.bf16.msra.mxu1 %v9568_v16  ;;  %v10870_v16 = vld [vmem:[#allocation32_spill] sm:$0xff] }
 0x2cb   :  { %3641 = vmatpush2.bf16.msra.mxu0 %v10866_v48  ;;  %3589 = vmatprep.subr.bf16.mxu1 %v9575_v41  ;;  %v9603_v48 = vld [vmem:[%s10311_s3 + $0x5c4] ss:$8 sps:$4 sm:$0xff]   ;;  %v10872_v41 = vld [vmem:[#allocation34_spill] sm:$0xff] }
 0x2cc   :  { %3642 = vmatprep.subr.bf16.mxu0 %v10868_v10  ;;  %10871 = vst [vmem:[#allocation32_spill] sm:$0xff] %v9603_v48  ;;  %v9610_v10 = vld [vmem:[%s10311_s3 + $0x5c0] ss:$8 sps:$4 sm:$0xff]  }
 0x2cd   :  { %10873 = vst [vmem:[#allocation34_spill] sm:$0xff] %v9610_v10 }
 0x2ce   :  { %3590 = vmatpush2.bf16.msra.mxu1 %v9582_v50  ;;  %v10874_v50 = vld [vmem:[#allocation36_spill] sm:$0xff] }
 0x2cf   :  { %3643 = vmatpush2.bf16.msra.mxu0 %v10870_v16  ;;  %3591 = vmatprep.subr.bf16.mxu1 %v9589_v57  ;;  %v9617_v16 = vld [vmem:[%s10311_s3 + $0x5b4] ss:$8 sps:$4 sm:$0xff]  }
 0x2d0   :  { %3644 = vmatprep.subr.bf16.mxu0 %v10872_v41  ;;  %10875 = vst [vmem:[#allocation36_spill] sm:$0xff] %v9617_v16  ;;  %v10876_v57 = vld [vmem:[#allocation39_spill] sm:$0xff] }
 0x2d1   :  { %v9624_v41 = vld [vmem:[%s10311_s3 + $0x5b0] ss:$8 sps:$4 sm:$0xff]  }
 0x2d2   :  { %3592 = vmatpush2.bf16.msra.mxu1 %v9596_v51  ;;  %10877 = vst [vmem:[#allocation39_spill] sm:$0xff] %v9624_v41  ;;  %v10878_v51 = vld [vmem:[#allocation42_spill] sm:$0xff] }
 0x2d3   :  { %3645 = vmatpush2.bf16.msra.mxu0 %v10874_v50  ;;  %3593 = vmatprep.subr.bf16.mxu1 %v9603_v48  ;;  %v9631_v50 = vld [vmem:[%s10311_s3 + $0x5a4] ss:$8 sps:$4 sm:$0xff]   ;;  %v10880_v48 = vld [vmem:[#allocation43_spill] sm:$0xff] }
 0x2d4   :  { %3646 = vmatprep.subr.bf16.mxu0 %v10876_v57  ;;  %10879 = vst [vmem:[#allocation42_spill] sm:$0xff] %v9631_v50  ;;  %v9638_v57 = vld [vmem:[%s10311_s3 + $0x5a0] ss:$8 sps:$4 sm:$0xff]  }
 0x2d5   :  { %10881 = vst [vmem:[#allocation43_spill] sm:$0xff] %v9638_v57 }
 0x2d6   :  { %3594 = vmatpush2.bf16.msra.mxu1 %v9610_v10  ;;  %v10882_v10 = vld [vmem:[#allocation46_spill] sm:$0xff] }
 0x2d7   :  { %3647 = vmatpush2.bf16.msra.mxu0 %v10878_v51  ;;  %3595 = vmatprep.subr.bf16.mxu1 %v9617_v16  ;;  %v9645_v51 = vld [vmem:[%s10311_s3 + $0x594] ss:$8 sps:$4 sm:$0xff]   ;;  %v10884_v16 = vld [vmem:[#allocation48_spill] sm:$0xff] }
 0x2d8   :  { %3648 = vmatprep.subr.bf16.mxu0 %v10880_v48  ;;  %10883 = vst [vmem:[#allocation46_spill] sm:$0xff] %v9645_v51  ;;  %v9652_v48 = vld [vmem:[%s10311_s3 + $0x590] ss:$8 sps:$4 sm:$0xff]  }
 0x2d9   :  { %10885 = vst [vmem:[#allocation48_spill] sm:$0xff] %v9652_v48 }
 0x2da   :  { %3596 = vmatpush2.bf16.msra.mxu1 %v9624_v41  ;;  %v10886_v41 = vld [vmem:[#allocation51_spill] sm:$0xff] }
 0x2db   :  { %3649 = vmatpush2.bf16.msra.mxu0 %v10882_v10  ;;  %3597 = vmatprep.subr.bf16.mxu1 %v9631_v50  ;;  %v9659_v10 = vld [vmem:[%s10311_s3 + $0x584] ss:$8 sps:$4 sm:$0xff]  }
 0x2dc   :  { %3650 = vmatprep.subr.bf16.mxu0 %v10884_v16  ;;  %10887 = vst [vmem:[#allocation51_spill] sm:$0xff] %v9659_v10  ;;  %v10888_v50 = vld [vmem:[#allocation52_spill] sm:$0xff] }
 0x2dd   :  { %v9666_v16 = vld [vmem:[%s10311_s3 + $0x580] ss:$8 sps:$4 sm:$0xff]  }
 0x2de   :  { %3598 = vmatpush2.bf16.msra.mxu1 %v9638_v57  ;;  %10889 = vst [vmem:[#allocation52_spill] sm:$0xff] %v9666_v16  ;;  %v10890_v57 = vld [vmem:[#allocation56_spill] sm:$0xff] }
 0x2df   :  { %3651 = vmatpush2.bf16.msra.mxu0 %v10886_v41  ;;  %3599 = vmatprep.subr.bf16.mxu1 %v9645_v51  ;;  %v10891_v41 = vld [vmem:[#allocation57_spill] sm:$0xff] }
 0x2e0   :  { %3652 = vmatprep.subr.bf16.mxu0 %v10888_v50  ;;  %v10894_v50 = vld [vmem:[#allocation59_spill] sm:$0xff]  ;;  %v7021_v51 = vld [vmem:[%s10313_s5 + $0xf0] sm:$0xff]  }
 0x2e2   :  { %3600 = vmatpush2.bf16.msra.mxu1 %v9652_v48  ;;  %v10895_v48 = vld [vmem:[#allocation21_spill] sm:$0xff] }
 0x2e3   :  { %3653 = vmatpush2.bf16.msra.mxu0 %v10890_v57  ;;  %3601 = vmatprep.subr.bf16.mxu1 %v9659_v10  ;;  %v7242_v57 = vld [vmem:[%s10311_s3 + $0x74] ss:$8 sps:$4 sm:$0xff]   ;;  %v7244_v10 = vld [vmem:[%s10311_s3 + $0x64] ss:$8 sps:$4 sm:$0xff]  }
 0x2e4   :  { %3708 = vmatprep.subr.bf16.mxu0 %v10891_v41  ;;  %v10896_v41 = vld [vmem:[#allocation60_spill] sm:$0xff] }
 0x2e6   :  { %3602 = vmatpush2.bf16.msra.mxu1 %v9666_v16  ;;  %3655 = vmatmul.mubr.bf16.vlgmr.msra.gmra.mxu0 %v9049_v3  ;;  %v7243_v16 = vld [vmem:[%s10311_s3 + $0x70] ss:$8 sps:$4 sm:$0xff]  }
 0x2e7   :  { %3709 = vmatpush1.bf16.msra.mxu0 %v10894_v50  ;;  %6005 = vmatprep.mubr.msk.bf16.mxu0 %vm9673_vm5, %v10895_v48  ;;  %v10897_v50 = vld [vmem:[#allocation9_spill] sm:$0xff] }
 0x2e8   :  { %3665 = vmatprep.subr.bf16.mxu1 %v7242_v57  ;;  %3710 = vmatprep.subr.bf16.mxu0 %v10896_v41  ;;  %v10898_v48 = vld [vmem:[#allocation25_spill] sm:$0xff]  ;;  %v10899_v41 = vld [vmem:[#allocation30_spill] sm:$0xff] }
 0x2e9   :  { %3604 = vmatmul.mubr.bf16.vlgmr.msra.gmra.mxu1 %v9049_v3  ;;  %v7245_v57 = vld [vmem:[%s10311_s3 + $0x60] ss:$8 sps:$4 sm:$0xff]  }
 0x2ea   :  { %3666 = vmatpush1.bf16.msra.mxu1 %v7243_v16  ;;  %3697 = vmatprep.mubr.bf16.mxu1 %v8540_v13  ;;  %v7246_v16 = vld [vmem:[%s10311_s3 + $0x54] ss:$8 sps:$4 sm:$0xff]   ;;  %v10902_v3 = vld [vmem:[#allocation64_spill] sm:$0xff] }
 0x2eb   :  { %3711 = vmatpush1.bf16.msra.mxu0 %v10897_v50  ;;  %3667 = vmatprep.subr.bf16.mxu1 %v7244_v10  ;;  %v10900_v50 = vld [vmem:[#allocation62_spill] sm:$0xff]  ;;  %v10903_v10 = vld [vmem:[#allocation31_spill] sm:$0xff] }
 0x2ec   :  { %3712 = vmatprep.subr.bf16.mxu0 %v10898_v48  ;;  %v10904_v48 = vld [vmem:[#allocation66_spill] sm:$0xff] }
 0x2ee   :  { %3668 = vmatpush1.bf16.msra.mxu1 %v7245_v57  ;;  %v10906_v57 = vld [vmem:[#allocation68_spill] sm:$0xff] }
 0x2ef   :  { %3713 = vmatpush1.bf16.msra.mxu0 %v10899_v41  ;;  %3669 = vmatprep.subr.bf16.mxu1 %v7246_v16  ;;  %v10907_v41 = vld [vmem:[#allocation37_spill] sm:$0xff]  ;;  %v10910_v16 = vld [vmem:[#allocation72_spill] sm:$0xff] }
 0x2f0   :  { %3714 = vmatprep.subr.bf16.mxu0 %v10900_v50  ;;  %v10911_v50 = vld [vmem:[#allocation38_spill] sm:$0xff] }
 0x2f2   :  { %3670 = vmatpush1.bf16.msra.mxu1 %v10901_v49  ;;  %v10912_v49 = vld [vmem:[#allocation74_spill] sm:$0xff] }
 0x2f3   :  { %3715 = vmatpush1.bf16.msra.mxu0 %v10902_v3  ;;  %3671 = vmatprep.subr.bf16.mxu1 %v10903_v10  ;;  %v10913_v3 = vld [vmem:[#allocation40_spill] sm:$0xff]  ;;  %v10914_v10 = vld [vmem:[#allocation77_spill] sm:$0xff] }
 0x2f4   :  { %3716 = vmatprep.subr.bf16.mxu0 %v10904_v48  ;;  %v10915_v48 = vld [vmem:[#allocation41_spill] sm:$0xff] }
 0x2f6   :  { %3672 = vmatpush1.bf16.msra.mxu1 %v10905_v40  ;;  %v10916_v40 = vld [vmem:[#allocation78_spill] sm:$0xff] }
 0x2f7   :  { %3717 = vmatpush1.bf16.msra.mxu0 %v10906_v57  ;;  %3673 = vmatprep.subr.bf16.mxu1 %v10907_v41  ;;  %v10917_v57 = vld [vmem:[#allocation44_spill] sm:$0xff] }
 0x2f8   :  { %3718 = vmatprep.subr.bf16.mxu0 %v10908_v59  ;;  %v10918_v41 = vld [vmem:[#allocation80_spill] sm:$0xff]  ;;  %v10919_v59 = vld [vmem:[#allocation45_spill] sm:$0xff] }
 0x2fa   :  { %3674 = vmatpush1.bf16.msra.mxu1 %v10909_v25  ;;  %v10920_v25 = vld [vmem:[#allocation81_spill] sm:$0xff] }
 0x2fb   :  { %3719 = vmatpush1.bf16.msra.mxu0 %v10910_v16  ;;  %3675 = vmatprep.subr.bf16.mxu1 %v10911_v50  ;;  %v10921_v16 = vld [vmem:[#allocation49_spill] sm:$0xff]  ;;  %v10922_v50 = vld [vmem:[#allocation82_spill] sm:$0xff] }
 0x2fc   :  { %3720 = vmatprep.subr.bf16.mxu0 %v10912_v49  ;;  %v10923_v49 = vld [vmem:[#allocation50_spill] sm:$0xff] }
 0x2fe   :  { %3676 = vmatpush1.bf16.msra.mxu1 %v10913_v3  ;;  %v10924_v3 = vld [vmem:[#allocation83_spill] sm:$0xff] }
 0x2ff   :  { %3721 = vmatpush1.bf16.msra.mxu0 %v10914_v10  ;;  %3677 = vmatprep.subr.bf16.mxu1 %v10915_v48  ;;  %v10925_v10 = vld [vmem:[#allocation53_spill] sm:$0xff]  ;;  %v10926_v48 = vld [vmem:[#allocation84_spill] sm:$0xff] }
 0x300   :  { %3722 = vmatprep.subr.bf16.mxu0 %v10916_v40  ;;  %v10927_v40 = vld [vmem:[#allocation55_spill] sm:$0xff] }
 0x302   :  { %3678 = vmatpush1.bf16.msra.mxu1 %v10917_v57  ;;  %v10928_v57 = vld [vmem:[#allocation85_spill] sm:$0xff] }
 0x303   :  { %3723 = vmatpush1.bf16.msra.mxu0 %v10918_v41  ;;  %3679 = vmatprep.subr.bf16.mxu1 %v10919_v59  ;;  %v10929_v41 = vld [vmem:[#allocation58_spill] sm:$0xff] }
 0x304   :  { %3724 = vmatprep.subr.bf16.mxu0 %v10920_v25  ;;  %v10930_v59 = vld [vmem:[#allocation86_spill] sm:$0xff] }
 0x305   :  { %v10931_v25 = vld [vmem:[#allocation54_spill] sm:$0xff] }
 0x306   :  { %3680 = vmatpush1.bf16.msra.mxu1 %v10921_v16  ;;  %v10932_v16 = vld [vmem:[#allocation87_spill] sm:$0xff] }
 0x307   :  { %3725 = vmatpush2.bf16.msra.mxu0 %v10922_v50  ;;  %3681 = vmatprep.subr.bf16.mxu1 %v10923_v49  ;;  %v10933_v50 = vld [vmem:[#allocation10_spill] sm:$0xff]  ;;  %v10934_v49 = vld [vmem:[#allocation88_spill] sm:$0xff] }
 0x308   :  { %3726 = vmatprep.subr.bf16.mxu0 %v10924_v3  ;;  %v10935_v3 = vld [vmem:[#allocation47_spill] sm:$0xff] }
 0x30a   :  { %3682 = vmatpush2.bf16.msra.mxu1 %v10925_v10  ;;  %v10936_v10 = vld [vmem:[#allocation89_spill] sm:$0xff] }
 0x30b   :  { %3727 = vmatpush2.bf16.msra.mxu0 %v10926_v48  ;;  %3683 = vmatprep.subr.bf16.mxu1 %v10927_v40  ;;  %v10937_v48 = vld [vmem:[#allocation61_spill] sm:$0xff]  ;;  %v10938_v40 = vld [vmem:[#allocation90_spill] sm:$0xff] }
 0x30c   :  { %3728 = vmatprep.subr.bf16.mxu0 %v10928_v57  ;;  %v10939_v57 = vld [vmem:[#allocation63_spill] sm:$0xff] }
 0x30e   :  { %3684 = vmatpush2.bf16.msra.mxu1 %v10929_v41  ;;  %v10940_v41 = vld [vmem:[#allocation91_spill] sm:$0xff] }
 0x30f   :  { %3729 = vmatpush2.bf16.msra.mxu0 %v10930_v59  ;;  %3685 = vmatprep.subr.bf16.mxu1 %v10931_v25  ;;  %v10941_v59 = vld [vmem:[#allocation65_spill] sm:$0xff]  ;;  %v10942_v25 = vld [vmem:[#allocation92_spill] sm:$0xff] }
 0x310   :  { %3730 = vmatprep.subr.bf16.mxu0 %v10932_v16  ;;  %v10943_v16 = vld [vmem:[#allocation67_spill] sm:$0xff] }
 0x312   :  { %3686 = vmatpush2.bf16.msra.mxu1 %v10933_v50  ;;  %v10944_v50 = vld [vmem:[#allocation93_spill] sm:$0xff] }
 0x313   :  { %3731 = vmatpush2.bf16.msra.mxu0 %v10934_v49  ;;  %3687 = vmatprep.subr.bf16.mxu1 %v10935_v3  ;;  %v10945_v49 = vld [vmem:[#allocation69_spill] sm:$0xff]  ;;  %v10946_v3 = vld [vmem:[#allocation94_spill] sm:$0xff] }
 0x314   :  { %3732 = vmatprep.subr.bf16.mxu0 %v10936_v10  ;;  %v10947_v10 = vld [vmem:[#allocation71_spill] sm:$0xff] }
 0x316   :  { %3688 = vmatpush2.bf16.msra.mxu1 %v10937_v48  ;;  %v10948_v48 = vld [vmem:[#allocation95_spill] sm:$0xff] }
 0x317   :  { %3733 = vmatpush2.bf16.msra.mxu0 %v10938_v40  ;;  %3689 = vmatprep.subr.bf16.mxu1 %v10939_v57  ;;  %v10949_v40 = vld [vmem:[#allocation73_spill] sm:$0xff]  ;;  %v10950_v57 = vld [vmem:[#allocation96_spill] sm:$0xff] }
 0x318   :  { %3734 = vmatprep.subr.bf16.mxu0 %v10940_v41  ;;  %v10951_v41 = vld [vmem:[#allocation76_spill] sm:$0xff] }
 0x31a   :  { %3690 = vmatpush2.bf16.msra.mxu1 %v10941_v59  ;;  %v10952_v59 = vld [vmem:[#allocation97_spill] sm:$0xff] }
 0x31b   :  { %3735 = vmatpush2.bf16.msra.mxu0 %v10942_v25  ;;  %3691 = vmatprep.subr.bf16.mxu1 %v10943_v16  ;;  %v10953_v25 = vld [vmem:[#allocation75_spill] sm:$0xff]  ;;  %v10954_v16 = vld [vmem:[#allocation18_spill] sm:$0xff] }
 0x31c   :  { %3736 = vmatprep.subr.bf16.mxu0 %v10944_v50  ;;  %v10955_v50 = vld [vmem:[#allocation79_spill] sm:$0xff] }
 0x31e   :  { %3692 = vmatpush2.bf16.msra.mxu1 %v10945_v49  ;;  %v7020_v49 = vld [vmem:[%s10313_s5 + $0x30] sm:$0xff]  }
 0x31f   :  { %3737 = vmatpush2.bf16.msra.mxu0 %v10946_v3  ;;  %3693 = vmatprep.subr.bf16.mxu1 %v10947_v10  ;;  %v7022_v3 = vld [vmem:[%s10313_s5 + $0xb0] sm:$0xff]   ;;  %v7023_v10 = vld [vmem:[%s10313_s5 + $0x68] sm:$0xff]  }
 0x320   :  { %3738 = vmatprep.subr.bf16.mxu0 %v10948_v48  ;;  %v7025_v48 = vld [vmem:[%s10313_s5 + $0xe8] sm:$0xff]  }
 0x322   :  { %3694 = vmatpush2.bf16.msra.mxu1 %v10949_v40  ;;  %v7024_v40 = vld [vmem:[%s10313_s5 + $0x28] sm:$0xff]  }
 0x323   :  { %3739 = vmatpush2.bf16.msra.mxu0 %v10950_v57  ;;  %3695 = vmatprep.subr.bf16.mxu1 %v10951_v41  ;;  %v7026_v57 = vld [vmem:[%s10313_s5 + $0xa8] sm:$0xff]   ;;  %v7027_v41 = vld [vmem:[%s10313_s5 + $0x60] sm:$0xff]  }
 0x324   :  { %3798 = vmatprep.subr.bf16.mxu0 %v10952_v59  ;;  %v7028_v59 = vld [vmem:[%s10313_s5 + $0x20] sm:$0xff]  }
 0x326   :  { %3696 = vmatpush2.bf16.msra.mxu1 %v10953_v25  ;;  %6008 = vmatmul.mubr.msk.bf16.vlgmr.msra.gmra.mxu0 %vm9673_vm5, %v10954_v16  ;;  %v7029_v25 = vld [vmem:[%s10313_s5 + $0xe0] sm:$0xff]  }
 0x327   :  { %3799 = vmatpush1.bf16.msra.mxu0 %v9047_v47  ;;  %3830 = vmatprep.mubr.bf16.mxu0 %v8540_v13  ;;  %v10956_v13 = vld [vmem:[#allocation99_spill] sm:$0xff]  ;;  %v10958_v47 = vld [vmem:[#allocation101_spill] sm:$0xff] }
 0x328   :  { %3755 = vmatprep.subr.bf16.mxu1 %v10955_v50  ;;  %3800 = vmatprep.subr.bf16.mxu0 %v9060_v46  ;;  %v10959_v46 = vld [vmem:[#allocation102_spill] sm:$0xff] }
 0x329   :  { %3698 = vmatmul.mubr.bf16.vlgmr.msra.gmra.mxu1 %v8532_v7  ;;  %v7031_v50 = vld [vmem:[%s10313_s5 + $0x58] sm:$0xff]  }
 0x32a   :  { %3756 = vmatpush1.bf16.msra.mxu1 %v9066_v12  ;;  %3787 = vmatprep.mubr.bf16.mxu1 %v9042_v37  ;;  %v10957_v37 = vld [vmem:[#allocation100_spill] sm:$0xff]  ;;  %v10960_v12 = vld [vmem:[#allocation103_spill] sm:$0xff] }
 0x32b   :  { %3801 = vmatpush1.bf16.msra.mxu0 %v9074_v0  ;;  %3757 = vmatprep.subr.bf16.mxu1 %v9079_v45  ;;  %v10961_v0 = vld [vmem:[#allocation104_spill] sm:$0xff]  ;;  %v10962_v45 = vld [vmem:[#allocation105_spill] sm:$0xff] }
 0x32c   :  { %3802 = vmatprep.subr.bf16.mxu0 %v9088_v36  ;;  %v10963_v36 = vld [vmem:[#allocation106_spill] sm:$0xff] }
 0x32e   :  { %3758 = vmatpush1.bf16.msra.mxu1 %v9099_v39  ;;  %v10964_v39 = vld [vmem:[#allocation107_spill] sm:$0xff] }
 0x32f   :  { %3803 = vmatpush1.bf16.msra.mxu0 %v9106_v2  ;;  %3759 = vmatprep.subr.bf16.mxu1 %v9111_v5  ;;  %v10965_v2 = vld [vmem:[#allocation108_spill] sm:$0xff]  ;;  %v10966_v5 = vld [vmem:[#allocation109_spill] sm:$0xff] }
 0x330   :  { %3804 = vmatprep.subr.bf16.mxu0 %v9117_v1  ;;  %v10967_v1 = vld [vmem:[#allocation110_spill] sm:$0xff] }
 0x332   :  { %3760 = vmatpush1.bf16.msra.mxu1 %v9123_v62  ;;  %v10968_v62 = vld [vmem:[#allocation111_spill] sm:$0xff] }
 0x333   :  { %3805 = vmatpush1.bf16.msra.mxu0 %v9130_v17  ;;  %3761 = vmatprep.subr.bf16.mxu1 %v9135_v18  ;;  %v10969_v17 = vld [vmem:[#allocation112_spill] sm:$0xff]  ;;  %v10970_v18 = vld [vmem:[#allocation98_spill] sm:$0xff] }
 0x334   :  { %3806 = vmatprep.subr.bf16.mxu0 %v9141_v44  ;;  %v10971_v44 = vld [vmem:[#allocation113_spill] sm:$0xff] }
 0x336   :  { %3762 = vmatpush1.bf16.msra.mxu1 %v9147_v53  ;;  %v10972_v53 = vld [vmem:[#allocation21_spill] sm:$0xff] }
 0x337   :  { %3807 = vmatpush1.bf16.msra.mxu0 %v9154_v35  ;;  %3763 = vmatprep.subr.bf16.mxu1 %v9159_v14  ;;  %v10973_v35 = vld [vmem:[#allocation114_spill] sm:$0xff]  ;;  %v10974_v14 = vld [vmem:[#allocation115_spill] sm:$0xff] }
 0x338   :  { %3808 = vmatprep.subr.bf16.mxu0 %v9165_v58  ;;  %v10975_v58 = vld [vmem:[#allocation116_spill] sm:$0xff] }
 0x33a   :  { %3764 = vmatpush1.bf16.msra.mxu1 %v9171_v27  ;;  %v10976_v27 = vld [vmem:[#allocation117_spill] sm:$0xff] }
 0x33b   :  { %3809 = vmatpush1.bf16.msra.mxu0 %v9178_v32  ;;  %3765 = vmatprep.subr.bf16.mxu1 %v9183_v29  ;;  %v10977_v32 = vld [vmem:[#allocation118_spill] sm:$0xff]  ;;  %v10979_v29 = vld [vmem:[#allocation12_spill] sm:$0xff] }
 0x33c   :  { %3810 = vmatprep.subr.bf16.mxu0 %v9189_v30  ;;  %v10980_v30 = vld [vmem:[#allocation13_spill] sm:$0xff] }
 0x33e   :  { %3766 = vmatpush1.bf16.msra.mxu1 %v9195_v15  ;;  %v10981_v15 = vld [vmem:[#allocation14_spill] sm:$0xff] }
 0x33f   :  { %3811 = vmatpush1.bf16.msra.mxu0 %v9202_v33  ;;  %3767 = vmatprep.subr.bf16.mxu1 %v9207_v31  ;;  %v10982_v33 = vld [vmem:[#allocation15_spill] sm:$0xff]  ;;  %v10983_v31 = vld [vmem:[#allocation16_spill] sm:$0xff] }
 0x340   :  { %3812 = vmatprep.subr.bf16.mxu0 %v9213_v54  ;;  %v10984_v54 = vld [vmem:[#allocation17_spill] sm:$0xff] }
 0x342   :  { %3768 = vmatpush1.bf16.msra.mxu1 %v9219_v21  ;;  %v10985_v21 = vld [vmem:[#allocation19_spill] sm:$0xff] }
 0x343   :  { %3813 = vmatpush1.bf16.msra.mxu0 %v9226_v34  ;;  %3769 = vmatprep.subr.bf16.mxu1 %v9231_v24  ;;  %v10986_v34 = vld [vmem:[#allocation20_spill] sm:$0xff]  ;;  %v10987_v24 = vld [vmem:[#allocation22_spill] sm:$0xff] }
 0x344   :  { %3814 = vmatprep.subr.bf16.mxu0 %v9237_v26  ;;  %v10988_v26 = vld [vmem:[#allocation23_spill] sm:$0xff] }
 0x346   :  { %3770 = vmatpush1.bf16.msra.mxu1 %v9243_v56  ;;  %v10989_v56 = vld [vmem:[#allocation24_spill] sm:$0xff] }
 0x347   :  { %3815 = vmatpush2.bf16.msra.mxu0 %v9250_v22  ;;  %3771 = vmatprep.subr.bf16.mxu1 %v9255_v23  ;;  %v10990_v22 = vld [vmem:[#allocation26_spill] sm:$0xff]  ;;  %v10991_v23 = vld [vmem:[#allocation27_spill] sm:$0xff] }
 0x348   :  { %3816 = vmatprep.subr.bf16.mxu0 %v9261_v43  ;;  %v10992_v43 = vld [vmem:[#allocation29_spill] sm:$0xff] }
 0x34a   :  { %3772 = vmatpush2.bf16.msra.mxu1 %v9267_v20  ;;  %v10993_v20 = vld [vmem:[#allocation32_spill] sm:$0xff] }
 0x34b   :  { %3817 = vmatpush2.bf16.msra.mxu0 %v9274_v42  ;;  %3773 = vmatprep.subr.bf16.mxu1 %v9279_v11  ;;  %v10994_v42 = vld [vmem:[#allocation34_spill] sm:$0xff]  ;;  %v10995_v11 = vld [vmem:[#allocation36_spill] sm:$0xff] }
 0x34c   :  { %3818 = vmatprep.subr.bf16.mxu0 %v9285_v6  ;;  %v10996_v6 = vld [vmem:[#allocation39_spill] sm:$0xff] }
 0x34e   :  { %3774 = vmatpush2.bf16.msra.mxu1 %v9291_v8  ;;  %v10997_v8 = vld [vmem:[#allocation42_spill] sm:$0xff] }
 0x34f   :  { %3819 = vmatpush2.bf16.msra.mxu0 %v9298_v19  ;;  %3775 = vmatprep.subr.bf16.mxu1 %v9303_v55  ;;  %v10998_v19 = vld [vmem:[#allocation43_spill] sm:$0xff]  ;;  %v10999_v55 = vld [vmem:[#allocation46_spill] sm:$0xff] }
 0x350   :  { %3820 = vmatprep.subr.bf16.mxu0 %v9309_v61  ;;  %v11000_v61 = vld [vmem:[#allocation48_spill] sm:$0xff] }
 0x352   :  { %3776 = vmatpush2.bf16.msra.mxu1 %v9315_v38  ;;  %v11001_v38 = vld [vmem:[#allocation51_spill] sm:$0xff] }
 0x353   :  { %3821 = vmatpush2.bf16.msra.mxu0 %v9322_v52  ;;  %3777 = vmatprep.subr.bf16.mxu1 %v9327_v28  ;;  %v11002_v52 = vld [vmem:[#allocation52_spill] sm:$0xff]  ;;  %v7015_v28 = vld [vmem:[%s10313_s5 + $0x78] sm:$0xff]  }
 0x354   :  { %3822 = vmatprep.subr.bf16.mxu0 %v9333_v63  ;;  %v7016_v63 = vld [vmem:[%s10313_s5 + $0x38] sm:$0xff]  }
 0x356   :  { %3778 = vmatpush2.bf16.msra.mxu1 %v9339_v9  ;;  %v7017_v9 = vld [vmem:[%s10313_s5 + $0xf8] sm:$0xff]  }
 0x357   :  { %3823 = vmatpush2.bf16.msra.mxu0 %v9346_v4  ;;  %3779 = vmatprep.subr.bf16.mxu1 %v10956_v13  ;;  %v7018_v4 = vld [vmem:[%s10313_s5 + $0xb8] sm:$0xff]  }
 0x358   :  { %3824 = vmatprep.subr.bf16.mxu0 %v10957_v37  ;;  %v7032_v13 = vld [vmem:[%s10313_s5 + $0x18] sm:$0xff]  }
 0x359   :  { %v7033_v37 = vld [vmem:[%s10313_s5 + $0xd8] sm:$0xff]  }
 0x35a   :  { %3780 = vmatpush2.bf16.msra.mxu1 %v10958_v47  ;;  %v7034_v47 = vld [vmem:[%s10313_s5 + $0x98] sm:$0xff]  }
 0x35b   :  { %3825 = vmatpush2.bf16.msra.mxu0 %v10959_v46  ;;  %3781 = vmatprep.subr.bf16.mxu1 %v10960_v12  ;;  %v7035_v46 = vld [vmem:[%s10313_s5 + $0x50] sm:$0xff]  }
 0x35c   :  { %3826 = vmatprep.subr.bf16.mxu0 %v10961_v0  ;;  %v7036_v12 = vld [vmem:[%s10313_s5 + $0x10] sm:$0xff]  }
 0x35d   :  { %v7037_v0 = vld [vmem:[%s10313_s5 + $0xd0] sm:$0xff]  }
 0x35e   :  { %3782 = vmatpush2.bf16.msra.mxu1 %v9387_v60  ;;  %v7019_v60 = vld [vmem:[%s10313_s5 + $0x70] sm:$0xff]  }
 0x35f   :  { %3827 = vmatpush2.bf16.msra.mxu0 %v10962_v45  ;;  %3783 = vmatprep.subr.bf16.mxu1 %v10963_v36  ;;  %v7038_v45 = vld [vmem:[%s10313_s5 + $0x90] sm:$0xff]   ;;  %v7039_v36 = vld [vmem:[%s10313_s5 + $0x48] sm:$0xff]  }
 0x360   :  { %3828 = vmatprep.subr.bf16.mxu0 %v10964_v39  ;;  %v7040_v39 = vld [vmem:[%s10313_s5 + $0x8] sm:$0xff]  }
 0x362   :  { %3784 = vmatpush2.bf16.msra.mxu1 %v10965_v2  ;;  %v7041_v2 = vld [vmem:[%s10313_s5 + $0xc8] sm:$0xff]  }
 0x363   :  { %3829 = vmatpush2.bf16.msra.mxu0 %v10966_v5  ;;  %3785 = vmatprep.subr.bf16.mxu1 %v10967_v1  ;;  %v7042_v5 = vld [vmem:[%s10313_s5 + $0x88] sm:$0xff]   ;;  %v7043_v1 = vld [vmem:[%s10313_s5 + $0x40] sm:$0xff]  }
 0x364   :  { %6372 = vmatprep.subr.bf16.mxu0 %v7017_v9 }
 0x366   :  { %3786 = vmatpush2.bf16.msra.mxu1 %v10968_v62  ;;  %3831 = vmatmul.mubr.bf16.vlgmr.msra.gmra.mxu0 %v8532_v7  ;;  %v10978_v7 = vld [vmem:[#allocation11_spill] sm:$0xff] }
 0x367   :  { %3841 = vmatprep.subr.bf16.mxu1 %v10969_v17  ;;  %6373 = vmatpush3.bf16.msra.mxu0 %v7018_v4  ;;  %v7044_v62 = vld [vmem:[%s10313_s5] sm:$0xff]  }
 0x368   :  { %6374 = vmatprep.subr.bf16.mxu0 %v7021_v51  ;;  %v7045_v17 = vld [vmem:[%s10313_s5 + $0xc0] sm:$0xff]  }
 0x369   :  { %3788 = vmatmul.mubr.bf16.vlgmr.msra.gmra.mxu1 %v10970_v18  ;;  %v7046_v18 = vld [vmem:[%s10313_s5 + $0x80] sm:$0xff]  }
 0x36a   :  { %3842 = vmatpush1.bf16.msra.mxu1 %v10971_v44  ;;  %6011 = vmatprep.mubr.msk.bf16.mxu1 %vm9673_vm5, %v10972_v53  ;;  %v7047_v44 = vld [vmem:[%s10313_s5 + $0x1f8] sm:$0xff]  }
 0x36b   :  { %3843 = vmatprep.subr.bf16.mxu1 %v10973_v35  ;;  %6375 = vmatpush3.bf16.msra.mxu0 %v7022_v3  ;;  %v7049_v53 = vld [vmem:[%s10313_s5 + $0x178] sm:$0xff]   ;;  %v2586_v35 = vpop.f32.mrf.mxu0 }
 0x36c   :  { %6376 = vmatprep.subr.bf16.mxu0 %v7025_v48 }
 0x36e   :  { %3844 = vmatpush1.bf16.msra.mxu1 %v10974_v14  ;;  %v2588_v14 = vpop.f32.mrf.mxu0 }
 0x36f   :  { %3845 = vmatprep.subr.bf16.mxu1 %v10975_v58  ;;  %6377 = vmatpush3.bf16.msra.mxu0 %v7026_v57 }
 0x370   :  { %6378 = vmatprep.subr.bf16.mxu0 %v7029_v25  ;;  %v2590_v58 = vpop.f32.mrf.mxu0 }
 0x372   :  { %3846 = vmatpush1.bf16.msra.mxu1 %v10976_v27  ;;  %v2789_v27 = vpop.f32.mrf.mxu1 }
 0x373   :  { %3847 = vmatprep.subr.bf16.mxu1 %v10977_v32  ;;  %v2592_v32 = vpop.f32.mrf.mxu0 }
 0x376   :  { %3848 = vmatpush1.bf16.msra.mxu1 %v10978_v7  ;;  %v2791_v7 = vpop.f32.mrf.mxu1 }
 0x377   :  { %3849 = vmatprep.subr.bf16.mxu1 %v10979_v29  ;;  %v2992_v29 = vpop.f32.mrf.mxu0  ;;  %v2792_v57 = vadd.f32 %v2791_v7, %v2588_v14 }
 0x37a   :  { %3850 = vmatpush1.bf16.msra.mxu1 %v10980_v30  ;;  %v2793_v30 = vpop.f32.mrf.mxu1 }
 0x37b   :  { %3851 = vmatprep.subr.bf16.mxu1 %v10981_v15  ;;  %v2994_v15 = vpop.f32.mrf.mxu0  ;;  %v2794_v25 = vadd.f32 %v2793_v30, %v2590_v58 }
 0x37e   :  { %3852 = vmatpush1.bf16.msra.mxu1 %v10982_v33  ;;  %v2795_v33 = vpop.f32.mrf.mxu1 }
 0x37f   :  { %3853 = vmatprep.subr.bf16.mxu1 %v10983_v31  ;;  %v2996_v31 = vpop.f32.mrf.mxu0 }
 0x382   :  { %3854 = vmatpush1.bf16.msra.mxu1 %v10984_v54  ;;  %v3199_v54 = vpop.f32.mrf.mxu1 }
 0x383   :  { %3855 = vmatprep.subr.bf16.mxu1 %v10985_v21  ;;  %v2998_v21 = vpop.f32.mrf.mxu0 }
 0x386   :  { %3856 = vmatpush1.bf16.msra.mxu1 %v10986_v34  ;;  %v3201_v34 = vpop.f32.mrf.mxu1 }
 0x387   :  { %3857 = vmatprep.subr.bf16.mxu1 %v10987_v24  ;;  %v3402_v24 = vpop.f32.mrf.mxu0 }
 0x38a   :  { %3858 = vmatpush2.bf16.msra.mxu1 %v10988_v26  ;;  %v3203_v26 = vpop.f32.mrf.mxu1 }
 0x38b   :  { %3859 = vmatprep.subr.bf16.mxu1 %v10989_v56  ;;  %v3404_v56 = vpop.f32.mrf.mxu0 }
 0x38e   :  { %3860 = vmatpush2.bf16.msra.mxu1 %v10990_v22  ;;  %v3205_v22 = vpop.f32.mrf.mxu1 }
 0x38f   :  { %3861 = vmatprep.subr.bf16.mxu1 %v10991_v23  ;;  %v3406_v23 = vpop.f32.mrf.mxu0 }
 0x392   :  { %3862 = vmatpush2.bf16.msra.mxu1 %v10992_v43 }
 0x393   :  { %3863 = vmatprep.subr.bf16.mxu1 %v10993_v20  ;;  %v3408_v20 = vpop.f32.mrf.mxu0 }
 0x396   :  { %3864 = vmatpush2.bf16.msra.mxu1 %v10994_v42 }
 0x397   :  { %3865 = vmatprep.subr.bf16.mxu1 %v10995_v11 }
 0x39a   :  { %3866 = vmatpush2.bf16.msra.mxu1 %v10996_v6 }
 0x39b   :  { %3867 = vmatprep.subr.bf16.mxu1 %v10997_v8 }
 0x39e   :  { %3868 = vmatpush2.bf16.msra.mxu1 %v10998_v19 }
 0x39f   :  { %3869 = vmatprep.subr.bf16.mxu1 %v10999_v55 }
 0x3a2   :  { %3870 = vmatpush2.bf16.msra.mxu1 %v11000_v61 }
 0x3a3   :  { %3871 = vmatprep.subr.bf16.mxu1 %v11001_v38 }
 0x3a6   :  { %3872 = vmatpush2.bf16.msra.mxu1 %v11002_v52  ;;  %v3656_v11 = vpop.f32.mrf.mxu0 }
 0x3a7   :  { %6394 = vmatprep.subr.bf16.mxu1 %v7015_v28 }
 0x3a8   :  { %v3658_v8 = vpop.f32.mrf.mxu0 }
 0x3a9   :  { %6014 = vmatmul.mubr.msk.bf16.vlgmr.msra.gmra.mxu1 %vm9673_vm5, %v10954_v16  ;;  %v7030_v16 = vld [vmem:[%s10313_s5 + $0xa0] sm:$0xff]   ;;  %v3605_v43 = vpop.f32.mrf.mxu1 }
 0x3aa   :  { %6395 = vmatpush3.bf16.msra.mxu1 %v7016_v63  ;;  %6379 = vmatpush3.bf16.msra.mxu0 %v7030_v16  ;;  %v3660_v55 = vpop.f32.mrf.mxu0  ;;  %v3403_v16 = vadd.f32 %v3402_v24, %v3199_v54 }
 0x3ab   :  { %6396 = vmatprep.subr.bf16.mxu1 %v7019_v60  ;;  %6380 = vmatprep.subr.bf16.mxu0 %v7033_v37  ;;  %v3607_v42 = vpop.f32.mrf.mxu1 }
 0x3ac   :  { %v3662_v38 = vpop.f32.mrf.mxu0 }
 0x3ad   :  { %v3609_v6 = vpop.f32.mrf.mxu1 }
 0x3ae   :  { %6397 = vmatpush3.bf16.msra.mxu1 %v7020_v49  ;;  %6381 = vmatpush3.bf16.msra.mxu0 %v7034_v47 }
 0x3af   :  { %6398 = vmatprep.subr.bf16.mxu1 %v7023_v10  ;;  %6382 = vmatprep.subr.bf16.mxu0 %v7037_v0  ;;  %v3611_v19 = vpop.f32.mrf.mxu1  ;;  %v2796_v0 = vadd.f32 %v2795_v33, %v2592_v32  ;;  %v406_v32 = vld [vmem:[%s10312_s4] sm:$0x3] }
 0x3b2   :  { %6399 = vmatpush3.bf16.msra.mxu1 %v7024_v40  ;;  %6383 = vmatpush3.bf16.msra.mxu0 %v7038_v45  ;;  %v2790_v40 = vadd.f32 %v2789_v27, %v2586_v35  ;;  %v3407_v45 = vadd.f32 %v3406_v23, %v3203_v26 }
 0x3b3   :  { %6400 = vmatprep.subr.bf16.mxu1 %v7027_v41  ;;  %6384 = vmatprep.subr.bf16.mxu0 %v7041_v2 }
 0x3b4   :  { %v3001_v47 = vadd.f32 %v2992_v29, %v2790_v40  ;;  %v3616_v35 = vadd.f32 %v3609_v6, %v3407_v45  ;;  %v7055_v45 = vld [vmem:[%s10313_s5 + $0x1e8] sm:$0xff]  }
 0x3b6   :  { %6401 = vmatpush3.bf16.msra.mxu1 %v7028_v59  ;;  %6385 = vmatpush3.bf16.msra.mxu0 %v7042_v5 }
 0x3b7   :  { %6402 = vmatprep.subr.bf16.mxu1 %v7031_v50  ;;  %6386 = vmatprep.subr.bf16.mxu0 %v7045_v17  ;;  %v3405_v50 = vadd.f32 %v3404_v56, %v3201_v34 }
 0x3ba   :  { %6403 = vmatpush3.bf16.msra.mxu1 %v7032_v13  ;;  %6387 = vmatpush3.bf16.msra.mxu0 %v7046_v18 }
 0x3bb   :  { %6404 = vmatprep.subr.bf16.mxu1 %v7035_v46  ;;  %6416 = vmatprep.subr.bf16.mxu0 %v7049_v53  ;;  %v3002_v46 = vadd.f32 %v2994_v15, %v2792_v57  ;;  %v3409_v53 = vadd.f32 %v3408_v20, %v3205_v22  ;;  %v3004_v15 = vadd.f32 %v2998_v21, %v2796_v0  ;;  %v7052_v0 = vld [vmem:[%s10313_s5 + $0x1b0] sm:$0xff]  }
 0x3bd   :  { %v3617_v34 = vadd.f32 %v3611_v19, %v3409_v53  ;;  %v7065_v53 = vld [vmem:[%s10313_s5 + $0x158] sm:$0xff]  }
 0x3be   :  { %6405 = vmatpush3.bf16.msra.mxu1 %v7036_v12 }
 0x3bf   :  { %6406 = vmatprep.subr.bf16.mxu1 %v7039_v36  ;;  %v3614_v36 = vadd.f32 %v3605_v43, %v3403_v16  ;;  %v3621_v19 = vmax.f32 %v3004_v15, %v3617_v34  ;;  %v7072_v15 = vld [vmem:[%s10313_s5 + $0x188] sm:$0xff]   ;;  %v7077_v34 = vld [vmem:[%s10313_s5 + $0x140] sm:$0xff]  }
 0x3c1   :  { %v3618_v33 = vmax.f32 %v3001_v47, %v3614_v36  ;;  %v7051_v47 = vld [vmem:[%s10313_s5 + $0x1f0] sm:$0xff]  }
 0x3c2   :  { %6407 = vmatpush3.bf16.msra.mxu1 %v7040_v39  ;;  %v3615_v39 = vadd.f32 %v3607_v42, %v3405_v50  ;;  %v11003_v42 = vld [vmem:[#allocation8_spill] sm:$0xff]  ;;  %v7054_v36 = vld [vmem:[%s10313_s5 + $0x130] sm:$0xff]  }
 0x3c3   :  { %6408 = vmatprep.subr.bf16.mxu1 %v7043_v1 }
 0x3c4   :  { %v3619_v54 = vmax.f32 %v3002_v46, %v3615_v39  ;;  %v7053_v46 = vld [vmem:[%s10313_s5 + $0x170] sm:$0xff]   ;;  %v7057_v39 = vld [vmem:[%s10313_s5 + $0x168] sm:$0xff]  }
 0x3c6   :  { %6409 = vmatpush3.bf16.msra.mxu1 %v7044_v62 }
 0x3c7   :  { %6438 = vmatprep.subr.bf16.mxu1 %v7047_v44  ;;  %v3003_v44 = vadd.f32 %v2996_v31, %v2794_v25 }
 0x3c9   :  { %v3620_v43 = vmax.f32 %v3003_v44, %v3616_v35  ;;  %v7062_v44 = vld [vmem:[%s10313_s5 + $0x120] sm:$0xff]   ;;  %v7064_v35 = vld [vmem:[%s10313_s5 + $0x198] sm:$0xff]  }
 0x3e6   :  { %v3742_v28 = vpop.f32.mrf.mxu0 }
 0x3e8   :  { %v3744_v9 = vpop.f32.mrf.mxu0 }
 0x3e9   :  { %v3699_v61 = vpop.f32.mrf.mxu1 }
 0x3ea   :  { %v3746_v60 = vpop.f32.mrf.mxu0  ;;  %v3700_v59 = vadd.f32 %v3699_v61, %v3656_v11  ;;  %v11004_v11 = vsub.s32 0, %v11003_v42 }
 0x3eb   :  { %v3701_v52 = vpop.f32.mrf.mxu1 }
 0x3ec   :  { %v3748_v49 = vpop.f32.mrf.mxu0  ;;  %v3702_v13 = vadd.f32 %v3701_v52, %v3658_v8  ;;  %v3751_v1 = vadd.f32 %v3742_v28, %v3700_v59  ;;  %v3900_v6 = vrot.slane %v406_v32, %v11004_v11  ;;  %v11005_v8 = vsub.s32 1, %v11003_v42  ;;  %v7082_v42 = vld [vmem:[%s10313_s5 + $0x238] sm:$0xff]  }
 0x3ed   :  { %v3703_v63 = vpop.f32.mrf.mxu1 }
 0x3ee   :  { %v3704_v62 = vadd.f32 %v3703_v63, %v3660_v55  ;;  %v3752_v14 = vadd.f32 %v3744_v9, %v3702_v13  ;;  %v3904_v55 = vrot.slane %v406_v32, %v11005_v8  ;;  %v7050_v13 = vld [vmem:[%s10313_s5 + $0x138] sm:$0xff]   ;;  %v7071_v32 = vld [vmem:[%s10313_s5 + $0x1c8] sm:$0xff]  }
 0x3ef   :  { %v3705_v4 = vpop.f32.mrf.mxu1 }
 0x3f0   :  { %v3706_v27 = vadd.f32 %v3705_v4, %v3662_v38  ;;  %v3753_v56 = vadd.f32 %v3746_v60, %v3704_v62  ;;  %v7061_v62 = vld [vmem:[%s10313_s5 + $0x160] sm:$0xff]  }
 0x3f2   :  { %v3754_v38 = vadd.f32 %v3748_v49, %v3706_v27  ;;  %v7048_v49 = vld [vmem:[%s10313_s5 + $0x1b8] sm:$0xff]   ;;  %v7069_v27 = vld [vmem:[%s10313_s5 + $0x150] sm:$0xff]  }
 0x426   :  { %v3832_v10 = vpop.f32.mrf.mxu0 }
 0x428   :  { %v3834_v41 = vpop.f32.mrf.mxu0 }
 0x429   :  { %v3789_v51 = vpop.f32.mrf.mxu1 }
 0x42a   :  { %v3833_v12 = vadd.f32 %v3832_v10, %v3789_v51  ;;  %v3836_v2 = vpop.f32.mrf.mxu0 }
 0x42b   :  { %v3791_v3 = vpop.f32.mrf.mxu1 }
 0x42c   :  { %v3835_v17 = vadd.f32 %v3834_v41, %v3791_v3  ;;  %v3838_v24 = vpop.f32.mrf.mxu0 }
 0x42d   :  { %v3793_v48 = vpop.f32.mrf.mxu1 }
 0x42e   :  { %v3837_v7 = vadd.f32 %v3836_v2, %v3793_v48  ;;  %v7056_v2 = vld [vmem:[%s10313_s5 + $0x1a8] sm:$0xff]  }
 0x42f   :  { %v3795_v37 = vpop.f32.mrf.mxu1 }
 0x430   :  { %v3839_v31 = vadd.f32 %v3838_v24, %v3795_v37  ;;  %v7076_v24 = vld [vmem:[%s10313_s5 + $0x180] sm:$0xff]  }
 0x469   :  { %v3875_v5 = vpop.f32.mrf.mxu1 }
 0x46a   :  { %v3884_v18 = vadd.f32 %v3875_v5, %v3833_v12  ;;  %v7059_v5 = vld [vmem:[%s10313_s5 + $0x1e0] sm:$0xff]  }
 0x46b   :  { %v3877_v58 = vpop.f32.mrf.mxu1 }
 0x46c   :  { %v3888_v29 = vmax.f32 %v3751_v1, %v3884_v18  ;;  %v3885_v30 = vadd.f32 %v3877_v58, %v3835_v17  ;;  %v7058_v1 = vld [vmem:[%s10313_s5 + $0x128] sm:$0xff]   ;;  %v7060_v17 = vld [vmem:[%s10313_s5 + $0x1a0] sm:$0xff]   ;;  %v7063_v18 = vld [vmem:[%s10313_s5 + $0x1d8] sm:$0xff]  }
 0x46d   :  { %v3879_v26 = vpop.f32.mrf.mxu1  ;;  %v7066_v58 = vld [vmem:[%s10313_s5 + $0x118] sm:$0xff]  }
 0x46e   :  { %v3889_v22 = vmax.f32 %v3752_v14, %v3885_v30  ;;  %v3886_v23 = vadd.f32 %v3879_v26, %v3837_v7  ;;  %v3892_v20 = vmax.f32 %v3618_v33, %v3888_v29  ;;  %v7067_v14 = vld [vmem:[%s10313_s5 + $0x1d0] sm:$0xff]   ;;  %v7073_v30 = vld [vmem:[%s10313_s5 + $0x148] sm:$0xff]   ;;  %v7075_v33 = vld [vmem:[%s10313_s5 + $0x1c0] sm:$0xff]  }
 0x46f   :  { %v3881_v61 = vpop.f32.mrf.mxu1  ;;  %v7068_v7 = vld [vmem:[%s10313_s5 + $0x190] sm:$0xff]   ;;  %v7079_v26 = vld [vmem:[%s10313_s5 + $0x2f8] sm:$0xff]  }
 0x470   :  { %v3893_v21 = vmax.f32 %v3619_v54, %v3889_v22  ;;  %v3890_v52 = vmax.f32 %v3753_v56, %v3886_v23  ;;  %v3887_v28 = vadd.f32 %v3881_v61, %v3839_v31  ;;  %v3907_v4 = vadd.f32 %v3900_v6, %v3892_v20  ;;  %v7070_v29 = vld [vmem:[%s10313_s5 + $0x110] sm:$0xff]   ;;  %v7074_v54 = vld [vmem:[%s10313_s5 + $0x108] sm:$0xff]   ;;  %v7078_v56 = vld [vmem:[%s10313_s5 + $0x100] sm:$0xff]  }
 0x471   :  { %v7081_v31 = vld [vmem:[%s10313_s5 + $0x278] sm:$0xff]   ;;  %v7087_v61 = vld [vmem:[%s10313_s5 + $0x2e8] sm:$0xff]  }
 0x472   :  { %v3894_v63 = vmax.f32 %v3620_v43, %v3890_v52  ;;  %v3891_v9 = vmax.f32 %v3754_v38, %v3887_v28  ;;  %v3908_v60 = vadd.f32 %v3904_v55, %v3893_v21  ;;  %v3911_v40 = vmax.f32 %v3907_v4, 0.0  ;;  %v7080_v22 = vld [vmem:[%s10313_s5 + $0x2b8] sm:$0xff]   ;;  %v7083_v43 = vld [vmem:[%s10313_s5 + $0x2f0] sm:$0xff]   ;;  %v7089_v21 = vld [vmem:[%s10313_s5 + $0x268] sm:$0xff]  }
 0x473   :  { %v7086_v38 = vld [vmem:[%s10313_s5 + $0x230] sm:$0xff]   ;;  %v7088_v52 = vld [vmem:[%s10313_s5 + $0x2a8] sm:$0xff]   ;;  %v7091_v28 = vld [vmem:[%s10313_s5 + $0x2e0] sm:$0xff]  }
 0x474   :  { %v3909_v51 = vadd.f32 %v3900_v6, %v3894_v63  ;;  %v3895_v3 = vmax.f32 %v3621_v19, %v3891_v9  ;;  %v3912_v57 = vmax.f32 %v3908_v60, 0.0  ;;  %v7085_v6 = vld [vmem:[%s10313_s5 + $0x270] sm:$0xff]   ;;  %v7090_v19 = vld [vmem:[%s10313_s5 + $0x228] sm:$0xff]   ;;  %v7093_v63 = vld [vmem:[%s10313_s5 + $0x260] sm:$0xff]  }
 0x475   :  { %v7092_v9 = vld [vmem:[%s10313_s5 + $0x2a0] sm:$0xff]   ;;  %v7095_v4 = vld [vmem:[%s10313_s5 + $0x2d8] sm:$0xff]  }
 0x476   :  { %v3913_v10 = vmax.f32 %v3909_v51, 0.0  ;;  %v3910_v48 = vadd.f32 %v3904_v55, %v3895_v3  ;;  %v7084_v55 = vld [vmem:[%s10313_s5 + $0x2b0] sm:$0xff]   ;;  %v7094_v60 = vld [vmem:[%s10313_s5 + $0x220] sm:$0xff]   ;;  %v7097_v51 = vld [vmem:[%s10313_s5 + $0x258] sm:$0xff]  }
 0x477   :  { %v7096_v3 = vld [vmem:[%s10313_s5 + $0x298] sm:$0xff]  }
 0x478   :  { %v3914_v41 = vmax.f32 %v3910_v48, 0.0  ;;  %v9976_v59 = vpack.c.bf16 %v3913_v10, %v3911_v40  ;;  %v7099_v10 = vld [vmem:[%s10313_s5 + $0x2d0] sm:$0xff]   ;;  %v7098_v48 = vld [vmem:[%s10313_s5 + $0x218] sm:$0xff]  }
 0x479   :  { %v7101_v40 = vld [vmem:[%s10313_s5 + $0x250] sm:$0xff]  }
 0x47a   :  { %v9978_v25 = vpack.c.bf16 %v3914_v41, %v3912_v57  ;;  %v3984_v37 = vrot.slane %v9976_v59, 1  ;;  %v4467_v23 = vrot.slane %v9976_v59, 3  ;;  %v4293_v11 = vrot.slane %v9976_v59, 2  ;;  %v7100_v57 = vld [vmem:[%s10313_s5 + $0x290] sm:$0xff]   ;;  %v7103_v41 = vld [vmem:[%s10313_s5 + $0x2c8] sm:$0xff]  }
 0x47c   :  { %4252 = vmatprep.mubr.bf16.mxu1 %v9978_v25  ;;  %v3985_v16 = vrot.slane %v9978_v25, 1  ;;  %v4468_v50 = vrot.slane %v9978_v25, 3  ;;  %v4294_v12 = vrot.slane %v9978_v25, 2  ;;  %v4816_v20 = vrot.slane %v9978_v25, 5 }
 0x47d   :  { %4253 = vmatmul.mubr.bf16.vlgmr.msra.gmra.mxu1 %v9976_v59  ;;  %v4642_v8 = vrot.slane %v9978_v25, 4 }
 0x47e   :  { %6439 = vmatpush3.bf16.msra.mxu1 %v7048_v49  ;;  %4116 = vmatprep.mubr.bf16.mxu0 %v3985_v16  ;;  %v7102_v49 = vld [vmem:[%s10313_s5 + $0x210] sm:$0xff]   ;;  %v7105_v16 = vld [vmem:[%s10313_s5 + $0x248] sm:$0xff]  }
 0x47f   :  { %4599 = vmatprep.mubr.bf16.mxu1 %v4468_v50  ;;  %4117 = vmatmul.mubr.bf16.vlgmr.msra.gmra.mxu0 %v3984_v37  ;;  %v7104_v50 = vld [vmem:[%s10313_s5 + $0x288] sm:$0xff]  }
 0x480   :  { %6417 = vmatpush3.bf16.msra.mxu0 %v7050_v13  ;;  %4425 = vmatprep.mubr.bf16.mxu0 %v4294_v12  ;;  %v7107_v13 = vld [vmem:[%s10313_s5 + $0x2c0] sm:$0xff]   ;;  %v7106_v37 = vld [vmem:[%s10313_s5 + $0x208] sm:$0xff]   ;;  %v7111_v12 = vld [vmem:[%s10313_s5 + $0x3f8] sm:$0xff]  }
 0x481   :  { %6440 = vmatprep.subr.bf16.mxu1 %v7051_v47  ;;  %6418 = vmatprep.subr.bf16.mxu0 %v7053_v46  ;;  %v7109_v47 = vld [vmem:[%s10313_s5 + $0x240] sm:$0xff]  }
 0x482   :  { %6441 = vmatpush3.bf16.msra.mxu1 %v7052_v0  ;;  %v7108_v46 = vld [vmem:[%s10313_s5 + $0x280] sm:$0xff]  }
 0x483   :  { %6442 = vmatprep.subr.bf16.mxu1 %v7055_v45  ;;  %v7110_v0 = vld [vmem:[%s10313_s5 + $0x200] sm:$0xff]   ;;  %v7113_v45 = vld [vmem:[%s10313_s5 + $0x378] sm:$0xff]  }
 0x484   :  { %6419 = vmatpush3.bf16.msra.mxu0 %v7054_v36  ;;  %v7112_v36 = vld [vmem:[%s10313_s5 + $0x3b8] sm:$0xff]  }
 0x485   :  { %6420 = vmatprep.subr.bf16.mxu0 %v7057_v39  ;;  %v4815_v39 = vrot.slane %v9976_v59, 5 }
 0x486   :  { %6443 = vmatpush3.bf16.msra.mxu1 %v7056_v2  ;;  %v7115_v2 = vld [vmem:[%s10313_s5 + $0x3f0] sm:$0xff]  }
 0x487   :  { %6444 = vmatprep.subr.bf16.mxu1 %v7059_v5  ;;  %v5164_v5 = vrot.slane %v9978_v25, 7 }
 0x488   :  { %6421 = vmatpush3.bf16.msra.mxu0 %v7058_v1  ;;  %v7114_v1 = vld [vmem:[%s10313_s5 + $0x338] sm:$0xff]  }
 0x489   :  { %6422 = vmatprep.subr.bf16.mxu0 %v7061_v62  ;;  %v4641_v62 = vrot.slane %v9976_v59, 4 }
 0x48a   :  { %6445 = vmatpush3.bf16.msra.mxu1 %v7060_v17  ;;  %v7117_v17 = vld [vmem:[%s10313_s5 + $0x370] sm:$0xff]  }
 0x48b   :  { %6446 = vmatprep.subr.bf16.mxu1 %v7063_v18  ;;  %v4990_v18 = vrot.slane %v9978_v25, 6  ;;  %v7121_v25 = vld [vmem:[%s10313_s5 + $0x368] sm:$0xff]  }
 0x48c   :  { %6423 = vmatpush3.bf16.msra.mxu0 %v7062_v44  ;;  %v7116_v44 = vld [vmem:[%s10313_s5 + $0x3b0] sm:$0xff]  }
 0x48d   :  { %6424 = vmatprep.subr.bf16.mxu0 %v7065_v53  ;;  %v7119_v53 = vld [vmem:[%s10313_s5 + $0x3e8] sm:$0xff]  }
 0x48e   :  { %6447 = vmatpush3.bf16.msra.mxu1 %v7064_v35  ;;  %v7118_v35 = vld [vmem:[%s10313_s5 + $0x330] sm:$0xff]  }
 0x48f   :  { %6448 = vmatprep.subr.bf16.mxu1 %v7067_v14  ;;  %v7120_v14 = vld [vmem:[%s10313_s5 + $0x3a8] sm:$0xff]  }
 0x490   :  { %6425 = vmatpush3.bf16.msra.mxu0 %v7066_v58  ;;  %v7123_v58 = vld [vmem:[%s10313_s5 + $0x3e0] sm:$0xff]  }
 0x491   :  { %6426 = vmatprep.subr.bf16.mxu0 %v7069_v27  ;;  %v7122_v27 = vld [vmem:[%s10313_s5 + $0x328] sm:$0xff]  }
 0x492   :  { %6449 = vmatpush3.bf16.msra.mxu1 %v7068_v7  ;;  %v7125_v7 = vld [vmem:[%s10313_s5 + $0x360] sm:$0xff]  }
 0x493   :  { %6450 = vmatprep.subr.bf16.mxu1 %v7071_v32  ;;  %v7124_v32 = vld [vmem:[%s10313_s5 + $0x3a0] sm:$0xff]  }
 0x494   :  { %6427 = vmatpush3.bf16.msra.mxu0 %v7070_v29  ;;  %v7127_v29 = vld [vmem:[%s10313_s5 + $0x3d8] sm:$0xff]  }
 0x495   :  { %6428 = vmatprep.subr.bf16.mxu0 %v7073_v30  ;;  %v7126_v30 = vld [vmem:[%s10313_s5 + $0x320] sm:$0xff]  }
 0x496   :  { %6451 = vmatpush3.bf16.msra.mxu1 %v7072_v15  ;;  %v7129_v15 = vld [vmem:[%s10313_s5 + $0x358] sm:$0xff]  }
 0x497   :  { %6452 = vmatprep.subr.bf16.mxu1 %v7075_v33  ;;  %v7128_v33 = vld [vmem:[%s10313_s5 + $0x398] sm:$0xff]  }
 0x498   :  { %6429 = vmatpush3.bf16.msra.mxu0 %v7074_v54  ;;  %v7131_v54 = vld [vmem:[%s10313_s5 + $0x3d0] sm:$0xff]  }
 0x499   :  { %6430 = vmatprep.subr.bf16.mxu0 %v7077_v34  ;;  %v7130_v34 = vld [vmem:[%s10313_s5 + $0x318] sm:$0xff]  }
 0x49a   :  { %6453 = vmatpush3.bf16.msra.mxu1 %v7076_v24  ;;  %v7133_v24 = vld [vmem:[%s10313_s5 + $0x350] sm:$0xff]  }
 0x49b   :  { %6482 = vmatprep.subr.bf16.mxu1 %v7079_v26  ;;  %v7132_v26 = vld [vmem:[%s10313_s5 + $0x390] sm:$0xff]  }
 0x49c   :  { %6431 = vmatpush3.bf16.msra.mxu0 %v7078_v56  ;;  %v7135_v56 = vld [vmem:[%s10313_s5 + $0x3c8] sm:$0xff]  }
 0x49d   :  { %4600 = vmatmul.mubr.bf16.vlgmr.msra.gmra.mxu1 %v4467_v23  ;;  %6460 = vmatprep.subr.bf16.mxu0 %v7081_v31  ;;  %v7134_v31 = vld [vmem:[%s10313_s5 + $0x310] sm:$0xff]   ;;  %v7136_v23 = vld [vmem:[%s10313_s5 + $0x388] sm:$0xff]  }
 0x49e   :  { %6483 = vmatpush3.bf16.msra.mxu1 %v7080_v22  ;;  %4947 = vmatprep.mubr.bf16.mxu1 %v4816_v20  ;;  %v7137_v22 = vld [vmem:[%s10313_s5 + $0x348] sm:$0xff]  }
 0x49f   :  { %4426 = vmatmul.mubr.bf16.vlgmr.msra.gmra.mxu0 %v4293_v11  ;;  %6484 = vmatprep.subr.bf16.mxu1 %v7083_v43  ;;  %v7139_v43 = vld [vmem:[%s10313_s5 + $0x3c0] sm:$0xff]   ;;  %v7138_v20 = vld [vmem:[%s10313_s5 + $0x308] sm:$0xff]  }
 0x4a0   :  { %6461 = vmatpush3.bf16.msra.mxu0 %v7082_v42  ;;  %4773 = vmatprep.mubr.bf16.mxu0 %v4642_v8  ;;  %v7141_v42 = vld [vmem:[%s10313_s5 + $0x340] sm:$0xff]   ;;  %v5163_v8 = vrot.slane %v9976_v59, 7 }
 0x4a1   :  { %6462 = vmatprep.subr.bf16.mxu0 %v7085_v6  ;;  %v7140_v11 = vld [vmem:[%s10313_s5 + $0x380] sm:$0xff]  }
 0x4a2   :  { %6485 = vmatpush3.bf16.msra.mxu1 %v7084_v55  ;;  %v7142_v6 = vld [vmem:[%s10313_s5 + $0x300] sm:$0xff]   ;;  %v4989_v55 = vrot.slane %v9976_v59, 6  ;;  %v5314_v59 = vld [vmem:[%s10315_s7 + $0x8] sm:$0xff] }
 0x4a3   :  { %6486 = vmatprep.subr.bf16.mxu1 %v7087_v61  ;;  %v7297_v61 = vmov 0.0  }
 0x4a4   :  { %6463 = vmatpush3.bf16.msra.mxu0 %v7086_v38  ;;  %v5316_v38 = vld [vmem:[%s10315_s7 + $0x18] sm:$0xff] }
 0x4a5   :  { %6464 = vmatprep.subr.bf16.mxu0 %v7089_v21  ;;  %v5315_v21 = vld [vmem:[%s10315_s7 + $0x10] sm:$0xff] }
 0x4a6   :  { %6487 = vmatpush3.bf16.msra.mxu1 %v7088_v52  ;;  %v5313_v52 = vld [vmem:[%s10315_s7] sm:$0xff] }
 0x4a7   :  { %6488 = vmatprep.subr.bf16.mxu1 %v7091_v28  ;;  %v5400_v28 = vld [vmem:[%s10317_s9 + $0x8] sm:$0xff] }
 0x4a8   :  { %6465 = vmatpush3.bf16.msra.mxu0 %v7090_v19 }
 0x4a9   :  { %6466 = vmatprep.subr.bf16.mxu0 %v7093_v63 }
 0x4aa   :  { %6489 = vmatpush3.bf16.msra.mxu1 %v7092_v9 }
 0x4ab   :  { %6490 = vmatprep.subr.bf16.mxu1 %v7095_v4 }
 0x4ac   :  { %6467 = vmatpush3.bf16.msra.mxu0 %v7094_v60 }
 0x4ad   :  { %6468 = vmatprep.subr.bf16.mxu0 %v7097_v51 }
 0x4ae   :  { %6491 = vmatpush3.bf16.msra.mxu1 %v7096_v3 }
 0x4af   :  { %6492 = vmatprep.subr.bf16.mxu1 %v7099_v10 }
 0x4b0   :  { %6469 = vmatpush3.bf16.msra.mxu0 %v7098_v48 }
 0x4b1   :  { %6470 = vmatprep.subr.bf16.mxu0 %v7101_v40 }
 0x4b2   :  { %6493 = vmatpush3.bf16.msra.mxu1 %v7100_v57 }
 0x4b3   :  { %6494 = vmatprep.subr.bf16.mxu1 %v7103_v41 }
 0x4b4   :  { %6471 = vmatpush3.bf16.msra.mxu0 %v7102_v49 }
 0x4b5   :  { %6472 = vmatprep.subr.bf16.mxu0 %v7105_v16 }
 0x4b6   :  { %6495 = vmatpush3.bf16.msra.mxu1 %v7104_v50 }
 0x4b7   :  { %6496 = vmatprep.subr.bf16.mxu1 %v7107_v13 }
 0x4b8   :  { %6473 = vmatpush3.bf16.msra.mxu0 %v7106_v37 }
 0x4b9   :  { %6474 = vmatprep.subr.bf16.mxu0 %v7109_v47 }
 0x4ba   :  { %6497 = vmatpush3.bf16.msra.mxu1 %v7108_v46 }
 0x4bb   :  { %6526 = vmatprep.subr.bf16.mxu1 %v7111_v12 }
 0x4bc   :  { %6475 = vmatpush3.bf16.msra.mxu0 %v7110_v0 }
 0x4bd   :  { %4948 = vmatmul.mubr.bf16.vlgmr.msra.gmra.mxu1 %v4815_v39  ;;  %6504 = vmatprep.subr.bf16.mxu0 %v7113_v45 }
 0x4be   :  { %6527 = vmatpush3.bf16.msra.mxu1 %v7112_v36  ;;  %5295 = vmatprep.mubr.bf16.mxu1 %v5164_v5 }
 0x4bf   :  { %4774 = vmatmul.mubr.bf16.vlgmr.msra.gmra.mxu0 %v4641_v62  ;;  %6528 = vmatprep.subr.bf16.mxu1 %v7115_v2 }
 0x4c0   :  { %6505 = vmatpush3.bf16.msra.mxu0 %v7114_v1  ;;  %5121 = vmatprep.mubr.bf16.mxu0 %v4990_v18 }
 0x4c1   :  { %6506 = vmatprep.subr.bf16.mxu0 %v7117_v17 }
 0x4c2   :  { %6529 = vmatpush3.bf16.msra.mxu1 %v7116_v44 }
 0x4c3   :  { %6530 = vmatprep.subr.bf16.mxu1 %v7119_v53 }
 0x4c4   :  { %6507 = vmatpush3.bf16.msra.mxu0 %v7118_v35 }
 0x4c5   :  { %6508 = vmatprep.subr.bf16.mxu0 %v7121_v25 }
 0x4c6   :  { %6531 = vmatpush3.bf16.msra.mxu1 %v7120_v14 }
 0x4c7   :  { %6532 = vmatprep.subr.bf16.mxu1 %v7123_v58 }
 0x4c8   :  { %6509 = vmatpush3.bf16.msra.mxu0 %v7122_v27 }
 0x4c9   :  { %6510 = vmatprep.subr.bf16.mxu0 %v7125_v7 }
 0x4ca   :  { %6533 = vmatpush3.bf16.msra.mxu1 %v7124_v32 }
 0x4cb   :  { %6534 = vmatprep.subr.bf16.mxu1 %v7127_v29 }
 0x4cc   :  { %6511 = vmatpush3.bf16.msra.mxu0 %v7126_v30 }
 0x4cd   :  { %6512 = vmatprep.subr.bf16.mxu0 %v7129_v15 }
 0x4ce   :  { %6535 = vmatpush3.bf16.msra.mxu1 %v7128_v33 }
 0x4cf   :  { %6536 = vmatprep.subr.bf16.mxu1 %v7131_v54 }
 0x4d0   :  { %6513 = vmatpush3.bf16.msra.mxu0 %v7130_v34 }
 0x4d1   :  { %6514 = vmatprep.subr.bf16.mxu0 %v7133_v24  ;;  %v6367_v24 = vld [vmem:[%s10314_s6] ss:$0 sm:$0xff] }
 0x4d2   :  { %6537 = vmatpush3.bf16.msra.mxu1 %v7132_v26 }
 0x4d3   :  { %6538 = vmatprep.subr.bf16.mxu1 %v7135_v56 }
 0x4d4   :  { %6515 = vmatpush3.bf16.msra.mxu0 %v7134_v31 }
 0x4d5   :  { %6516 = vmatprep.subr.bf16.mxu0 %v7137_v22 }
 0x4d6   :  { %6539 = vmatpush3.bf16.msra.mxu1 %v7136_v23  ;;  %v5399_v23 = vld [vmem:[%s10317_s9] sm:$0xff]  ;;  %s7267_s9 = scalar_lea.vmem %s5491_s15, 32 }
 0x4d7   :  { %6540 = vmatprep.subr.bf16.mxu1 %v7139_v43  ;;  %v6368_v43 = vld [vmem:[%s10316_s8] ss:$0 sm:$0xff]  ;;  %p7268_p5 = scmp.ne.s32.totalorder %s5491_s15, %s7267_s9  ;;  %p7273_p7 = scmp.lt.s32.totalorder %s7267_s9, %s7267_s9 }
 0x4d8   :  { %6517 = vmatpush3.bf16.msra.mxu0 %v7138_v20 }
 0x4d9   :  { %6518 = vmatprep.subr.bf16.mxu0 %v7141_v42  ;;  %p7274_p8 = por %p7273_p7, %p7272_p6 }
 0x4da   :  { %6541 = vmatpush3.bf16.msra.mxu1 %v7140_v11 }
 0x4db   :  { %6567 = vmatprep.subr.mxu1 %v7297_v61  ;;  %p7275_p9 = pnand %p7274_p8, %p7268_p5 }
 0x4dc   :  { %6519 = vmatpush3.bf16.msra.mxu0 %v7142_v6 }
 0x4dd   :  { %5296 = vmatmul.mubr.bf16.vlgmr.msra.gmra.mxu1 %v5163_v8  ;;  %6556 = vmatprep.subr.mxu0 %v7297_v61  ;;  %v6370_v8 = vld [vmem:[%s10318_s10] ss:$0 sm:$0xff] }
 0x4de   :  { %6571 = vmatprep.mubr.msk.f32.mxu1 %vm7298_vm6, %v7297_v61  ;;  %6568 = vmatpush3.msra.mxu1 %v5400_v28 }
 0x4df   :  { %5122 = vmatmul.mubr.bf16.vlgmr.msra.gmra.mxu0 %v4989_v55  ;;  %6569 = vmatprep.subr.mxu1 %v7297_v61 }
 0x4e0   :  { %6557 = vmatpush3.msra.mxu0 %v5316_v38  ;;  %6564 = vmatprep.mubr.msk.f32.mxu0 %vm7298_vm6, %v7297_v61 }
 0x4e1   :  { %6558 = vmatprep.subr.mxu0 %v7297_v61  ;;  %6570 = vmatpush3.msra.mxu1 %v5399_v23 }
 0x4e2   :  { %6559 = vmatpush3.msra.mxu0 %v5315_v21 }
 0x4e3   :  { %6560 = vmatprep.subr.mxu0 %v7297_v61 }
 0x4e4   :  { %6561 = vmatpush3.msra.mxu0 %v5314_v59 }
 0x4e5   :  { %6562 = vmatprep.subr.mxu0 %v7297_v61 }
 0x4e6   :  { %6563 = vmatpush3.msra.mxu0 %v5313_v52 }
 0x53d   :  { %v6410_v19 = vpop.f32.mrf.mxu1 }
 0x53f   :  { %v6388_v63 = vpop.f32.mrf.mxu0  ;;  %v6411_v9 = vpop.f32.mrf.mxu1 }
 0x540   :  { %v6412_v4 = vadd.f32 %v6411_v9, %v6410_v19 }
 0x541   :  { %v6389_v60 = vpop.f32.mrf.mxu0  ;;  %v6413_v51 = vpop.f32.mrf.mxu1 }
 0x542   :  { %v6390_v3 = vadd.f32 %v6389_v60, %v6388_v63 }
 0x543   :  { %v6391_v10 = vpop.f32.mrf.mxu0  ;;  %v6414_v48 = vpop.f32.mrf.mxu1 }
 0x544   :  { %v4255_v40 = vadd.f32 %v6412_v4, %v6390_v3 }
 0x545   :  { %v6392_v57 = vpop.f32.mrf.mxu0 }
 0x55d   :  { %v6454_v41 = vpop.f32.mrf.mxu1 }
 0x55f   :  { %v6432_v49 = vpop.f32.mrf.mxu0  ;;  %v6455_v16 = vpop.f32.mrf.mxu1 }
 0x560   :  { %v6456_v18 = vadd.f32 %v6455_v16, %v6454_v41 }
 0x561   :  { %v6433_v50 = vpop.f32.mrf.mxu0  ;;  %v6457_v13 = vpop.f32.mrf.mxu1 }
 0x562   :  { %v6434_v62 = vadd.f32 %v6433_v50, %v6432_v49 }
 0x563   :  { %v6435_v37 = vpop.f32.mrf.mxu0  ;;  %v6458_v47 = vpop.f32.mrf.mxu1 }
 0x564   :  { %v4433_v17 = vadd.f32 %v6434_v62, %v4255_v40 }
 0x565   :  { %v6436_v46 = vpop.f32.mrf.mxu0 }
 0x566   :  { %v4607_v53 = vadd.f32 %v6456_v18, %v4433_v17 }
 0x57d   :  { %v6498_v12 = vpop.f32.mrf.mxu1 }
 0x57f   :  { %v6476_v0 = vpop.f32.mrf.mxu0  ;;  %v6499_v45 = vpop.f32.mrf.mxu1 }
 0x580   :  { %v6500_v27 = vadd.f32 %v6499_v45, %v6498_v12 }
 0x581   :  { %v6477_v36 = vpop.f32.mrf.mxu0  ;;  %v6501_v39 = vpop.f32.mrf.mxu1 }
 0x582   :  { %v6478_v44 = vadd.f32 %v6477_v36, %v6476_v0 }
 0x583   :  { %v6479_v2 = vpop.f32.mrf.mxu0  ;;  %v6502_v5 = vpop.f32.mrf.mxu1 }
 0x584   :  { %v4781_v25 = vadd.f32 %v6478_v44, %v4607_v53 }
 0x585   :  { %v6480_v1 = vpop.f32.mrf.mxu0 }
 0x586   :  { %v4955_v29 = vadd.f32 %v6500_v27, %v4781_v25 }
 0x59d   :  { %v6542_v35 = vpop.f32.mrf.mxu1 }
 0x59f   :  { %v6520_v14 = vpop.f32.mrf.mxu0  ;;  %v6543_v58 = vpop.f32.mrf.mxu1 }
 0x5a0   :  { %v6544_v54 = vadd.f32 %v6543_v58, %v6542_v35 }
 0x5a1   :  { %v6521_v7 = vpop.f32.mrf.mxu0  ;;  %v6545_v32 = vpop.f32.mrf.mxu1 }
 0x5a2   :  { %v6522_v30 = vadd.f32 %v6521_v7, %v6520_v14 }
 0x5a3   :  { %v6523_v15 = vpop.f32.mrf.mxu0  ;;  %v6546_v33 = vpop.f32.mrf.mxu1 }
 0x5a4   :  { %v5129_v34 = vadd.f32 %v6522_v30, %v4955_v29 }
 0x5a5   :  { %v6524_v26 = vpop.f32.mrf.mxu0 }
 0x5a6   :  { %v5303_v56 = vadd.f32 %v6544_v54, %v5129_v34 }
 0x5a8   :  { %v5311_v31 = vadd.f32 %v6367_v24, %v5303_v56 }
 0x5aa   :  { %v5312_v22 = vmax.f32 %v5311_v31, 0.0 }
 0x5ac   :  { %6565 = vmatmul.mubr.msk.f32.vlgmr.msra.gmra.mxu0 %vm5324_vm7, %v5312_v22 }
 0x66c   :  { %v5394_v20 = vpop.f32.mrf.mxu0 }
 0x66d   :  { %v5395_v42 = vadd.f32 %v6368_v43, %v5394_v20 }
 0x66e   :  { %v6566_v11 = vpop.f32.mrf.mxu0 }
 0x66f   :  { %v5398_v6 = vmax.f32 %v5395_v42, 0.0 }
 0x671   :  { %6572 = vmatmul.mubr.msk.f32.vlgmr.msra.gmra.mxu1 %vm5408_vm8, %v5398_v6 }
 0x731   :  { %v5478_v55 = vpop.f32.mrf.mxu1 }
 0x732   :  { %v5479_v61 = vadd.f32 %v6370_v8, %v5478_v55 }
 0x733   :  { %v6573_v38 = vpop.f32.mrf.mxu1 }
 0x734   :  { %5483 = vst.msk [vmem:[#allocation5] sm:$0x3] %vm5482_vm9, %v5479_v61 }
 0x735   :  { %7278 = shalt.err (!%p7275_p9)
}
 0x736   :  { %5493 = dma.vmem_to_hbm [thread:$0]  %s5491_s15, 32, %s10319_s11, [#allocation4]  }
 0x737   :  { %7289 = dma.done.wait [#allocation4], 32  }
 0x738   :  { %7290 = vsyncadd [#allocation4], 4294967264 }
 0x739   :  { %5497 = vsyncpa [#allocation3], 1 }
 0x73a   :  { %5498 = vsyncpa [#allocation4], 1 }

</bundles_post_ra>
